<compile_context>
chip_gen: v7x
topology: tpu7x:2x2x1
jax: 0.10.0
libtpu: 0.0.40
codegen_flags: <defaults>
</compile_context>

<pallas_src>
import functools

import jax
import jax.numpy as jnp
from jax.experimental import pallas as pl
from jax.experimental.pallas import tpu as pltpu


def _round_up(x: int, m: int) -> int:
    return ((x + m - 1) // m) * m


def _fnn_kernel(*refs, num_layers: int, matmul_dtype):
    # refs = (x_ref, w0, b0, w1, b1, ..., w_{L-1}, b_{L-1}, o_ref)
    x_ref = refs[0]
    o_ref = refs[-1]
    param_refs = refs[1:-1]

    h = x_ref[...].astype(jnp.float32)           # (TB, D0)
    for j in range(num_layers):                  # unrolled at trace time
        w_ref = param_refs[2 * j]                # (Din[_pad], Dout[_pad]) in matmul_dtype
        b_ref = param_refs[2 * j + 1]            # (1, Dout[_pad]) in f32
        y = jnp.dot(
            h.astype(matmul_dtype),              # bf16 operands -> MXU-native
            w_ref[...],
            preferred_element_type=jnp.float32,  # f32 accumulation
        )
        y = y + b_ref[...].astype(jnp.float32)   # f32 bias add (VPU)
        if j < num_layers - 1:
            y = jnp.tanh(y)                      # f32 tanh (EUP)
        h = y
    o_ref[...] = h.astype(o_ref.dtype)


def fnn_forward(x_pad, weights, biases, *, out_dtype, batch_tile, matmul_dtype,
                single_buffer_params=True):
    """Single fused Pallas call for the whole FNN."""
    num_layers = len(weights)
    B_pad, din = x_pad.shape
    dout = int(weights[-1].shape[1])

    tb = batch_tile
    assert tb % 8 == 0 and B_pad % tb == 0
    grid = (B_pad // tb,)

    buffered_cls = getattr(pl, "Buffered", None)
    use_single = single_buffer_params and buffered_cls is not None

    def param_spec(shape):
        # Grid-invariant parameters: resident in VMEM, single-buffered when possible.
        if use_single:
            return pl.BlockSpec(shape, lambda i: (0, 0), pipeline_mode=buffered_cls(1))
        return pl.BlockSpec(shape, lambda i: (0, 0))

    # Input keeps its real feature width (block last dim == full array dim).
    in_specs = [pl.BlockSpec((tb, din), lambda i: (i, 0))]
    flat_params = []
    for w, b in zip(weights, biases):
        in_specs.append(param_spec(w.shape))
        in_specs.append(param_spec(b.shape))
        flat_params.extend([w, b])
    # Output keeps its real width (tiny writeback, no 128-lane amplification).
    out_specs = pl.BlockSpec((tb, dout), lambda i: (i, 0))

    flops = 2 * B_pad * sum(int(w.shape[0]) * int(w.shape[1]) for w in weights)
    transcendentals = B_pad * sum(int(w.shape[1]) for w in weights[:-1])
    bytes_accessed = (
        int(x_pad.size) * x_pad.dtype.itemsize
        + sum(int(w.size) * w.dtype.itemsize for w in weights)
        + sum(int(b.size) * b.dtype.itemsize for b in biases)
        + B_pad * dout * jnp.dtype(out_dtype).itemsize
    )

    # VMEM budget from the actual footprint (+headroom), capped for v7x (64 MiB/TC).
    buf_factor = 1 if use_single else 2
    param_bytes = buf_factor * (
        sum(int(w.size) * w.dtype.itemsize for w in weights)
        + sum(int(b.size) * b.dtype.itemsize for b in biases)
    )
    max_width = max([din, dout] + [int(w.shape[1]) for w in weights])
    io_bytes = (2 * tb * din * x_pad.dtype.itemsize
                + 2 * tb * dout * jnp.dtype(out_dtype).itemsize)
    act_bytes = 2 * tb * max_width * 4
    vmem_limit = int(1.5 * (param_bytes + io_bytes + act_bytes)) + (1 << 20)
    vmem_limit = max(min(vmem_limit, 64 << 20), 1 << 20)

    kernel = functools.partial(
        _fnn_kernel, num_layers=num_layers, matmul_dtype=matmul_dtype
    )
    return pl.pallas_call(
        kernel,
        out_shape=jax.ShapeDtypeStruct((B_pad, dout), out_dtype),
        grid=grid,
        in_specs=in_specs,
        out_specs=out_specs,
        compiler_params=pltpu.CompilerParams(
            # TODO(synk): on v7x, verify dual-TC sharding of the batch axis; switch
            # to pltpu.CORE_PARALLEL / core_map if plain "parallel" does not split.
            dimension_semantics=("parallel",),
            vmem_limit_bytes=vmem_limit,
        ),
        cost_estimate=pl.CostEstimate(
            flops=flops,
            transcendentals=transcendentals,
            bytes_accessed=bytes_accessed,
        ),
    )(x_pad, *flat_params)


class FNNPallas:
    """Fully-connected network (deepxde FNN) with a single fused Pallas forward.

    Matches: x = tanh(Linear(x)) for hidden layers; last layer linear only.
    Glorot-normal weights, zero biases (deterministic via PRNGKey).
    """

    def __init__(self, layer_sizes, key, *, dtype=jnp.float32,
                 matmul_dtype=jnp.bfloat16, batch_tile=1024):
        assert batch_tile % 8 == 0
        self.layer_sizes = list(layer_sizes)
        self.dtype = dtype
        self.matmul_dtype = matmul_dtype
        self.batch_tile = batch_tile          # fixed at construction: no per-B retiling
        self._single_buffer_params = True

        self.weights = []          # logical (unpadded) f32 params, for reference checks
        self.biases = []
        self.padded_weights = []   # lane-padded (hidden dims only) params in matmul_dtype
        self.padded_biases = []    # (1, Dout[_pad]) f32, stored once at init

        num_layers = len(layer_sizes) - 1
        keys = jax.random.split(key, num_layers)
        for i in range(1, len(layer_sizes)):
            fan_in, fan_out = layer_sizes[i - 1], layer_sizes[i]
            std = (2.0 / (fan_in + fan_out)) ** 0.5  # Glorot normal
            w = std * jax.random.normal(keys[i - 1], (fan_in, fan_out), jnp.float32)
            b = jnp.zeros((fan_out,), jnp.float32)
            self.weights.append(w)
            self.biases.append(b)

            # First layer keeps its real K (input dim); last layer keeps its real N
            # (output dim); hidden widths are padded to 128 lanes with zeros.
            k_pad = fan_in if i == 1 else _round_up(fan_in, 128)
            n_pad = fan_out if i == num_layers else _round_up(fan_out, 128)
            w_pad = (jnp.zeros((k_pad, n_pad), jnp.float32)
                     .at[:fan_in, :fan_out].set(w)
                     .astype(matmul_dtype))
            b_pad = (jnp.zeros((1, n_pad), jnp.float32)
                     .at[:, :fan_out].set(b.reshape(1, fan_out)))
            self.padded_weights.append(w_pad)
            self.padded_biases.append(b_pad)

        self.din = layer_sizes[0]
        self.dout = layer_sizes[-1]

    def _run(self, x_pad, tb, single_buffer):
        return fnn_forward(
            x_pad, self.padded_weights, self.padded_biases,
            out_dtype=self.dtype, batch_tile=tb,
            matmul_dtype=self.matmul_dtype,
            single_buffer_params=single_buffer,
        )

    def __call__(self, inputs):
        B, din = inputs.shape
        assert din == self.din
        tb = self.batch_tile
        b_pad = _round_up(max(B, 1), tb)
        x_pad = (jnp.zeros((b_pad, din), self.dtype)
                 .at[:B, :].set(inputs.astype(self.dtype)))

        if self._single_buffer_params:
            try:
                return self._run(x_pad, tb, True)[:B]
            except Exception:
                # pipeline_mode=Buffered(1) not accepted -> fall back to default specs.
                self._single_buffer_params = False
        return self._run(x_pad, tb, False)[:B]


def fnn_reference(inputs, weights, biases, *, matmul_dtype=jnp.float32):
    """Pure-JAX reference (optionally with bf16 matmul operands like the kernel)."""
    h = inputs.astype(jnp.float32)
    for j, (w, b) in enumerate(zip(weights, biases)):
        y = jnp.dot(h.astype(matmul_dtype), w.astype(matmul_dtype),
                    preferred_element_type=jnp.float32) + b.astype(jnp.float32)
        h = jnp.tanh(y) if j < len(weights) - 1 else y
    return h


if __name__ == "__main__":
    key = jax.random.PRNGKey(0)
    k_in, k_params = jax.random.split(key)

    # Small, FNN-consistent shapes: layer_sizes = [4, 32, 32, 1], batch = 8.
    layer_sizes = [4, 32, 32, 1]
    batch = 8

    x = jax.random.normal(k_in, (batch, layer_sizes[0]), jnp.float32)

    net = FNNPallas(layer_sizes, k_params)      # bf16 matmul, f32 accumulation
    out = jax.block_until_ready(net(x))
    assert out.shape == (batch, layer_sizes[-1])

    # Tight check vs a reference using the same bf16-operand / f32-accum recipe.
    ref_mixed = fnn_reference(x, net.weights, net.biases,
                              matmul_dtype=net.matmul_dtype)
    assert jnp.allclose(out, ref_mixed, atol=2e-3, rtol=2e-3), "mismatch vs mixed ref"

    # Loose check vs the full-f32 reference (bf16 rounding only).
    ref_f32 = fnn_reference(x, net.weights, net.biases)
    assert jnp.allclose(out, ref_f32, atol=5e-2, rtol=5e-2), "mismatch vs f32 ref"

    print("KERNEL_OK")
</pallas_src>

<mosaic_0001>
module attributes {stable_mosaic.version = 11 : i64} {
  func.func @_fnn_kernel(%arg0: i32, %arg1: memref<1024x4xf32, #tpu.memory_space<vmem>>, %arg2: memref<4x128xbf16, #tpu.memory_space<vmem>>, %arg3: memref<1x128xf32, #tpu.memory_space<vmem>>, %arg4: memref<128x128xbf16, #tpu.memory_space<vmem>>, %arg5: memref<1x128xf32, #tpu.memory_space<vmem>>, %arg6: memref<128x1xbf16, #tpu.memory_space<vmem>>, %arg7: memref<1x1xf32, #tpu.memory_space<vmem>>, %arg8: memref<1024x1xf32, #tpu.memory_space<vmem>>) attributes {dimension_semantics = [#tpu.dimension_semantics<parallel>], iteration_bounds = array<i64: 1>, scalar_prefetch = 0 : i64, scratch_operands = 0 : i64, tpu.core_type = #tpu.core_type<tc>, window_params = [{transform_indices = @transform_0, window_bounds = array<i64: 1024, 4>}, {pipeline_mode = #tpu.pipeline_mode<synchronous>, transform_indices = @transform_1, window_bounds = array<i64: 4, 128>}, {pipeline_mode = #tpu.pipeline_mode<synchronous>, transform_indices = @transform_2, window_bounds = array<i64: 1, 128>}, {pipeline_mode = #tpu.pipeline_mode<synchronous>, transform_indices = @transform_3, window_bounds = array<i64: 128, 128>}, {pipeline_mode = #tpu.pipeline_mode<synchronous>, transform_indices = @transform_4, window_bounds = array<i64: 1, 128>}, {pipeline_mode = #tpu.pipeline_mode<synchronous>, transform_indices = @transform_5, window_bounds = array<i64: 128, 1>}, {pipeline_mode = #tpu.pipeline_mode<synchronous>, transform_indices = @transform_6, window_bounds = array<i64: 1, 1>}, {transform_indices = @transform_7, window_bounds = array<i64: 1024, 1>}]} {
    %c0 = arith.constant 0 : index
    %c0_0 = arith.constant 0 : index
    %0 = vector.load %arg1[%c0, %c0_0] : memref<1024x4xf32, #tpu.memory_space<vmem>>, vector<1024x4xf32>
    %1 = arith.truncf %0 : vector<1024x4xf32> to vector<1024x4xbf16>
    %c0_1 = arith.constant 0 : index
    %c0_2 = arith.constant 0 : index
    %2 = vector.load %arg2[%c0_1, %c0_2] : memref<4x128xbf16, #tpu.memory_space<vmem>>, vector<4x128xbf16>
    %cst = arith.constant dense<0.000000e+00> : vector<1024x128xf32>
    %3 = tpu.matmul %1, %2, %cst {dimension_numbers = #tpu.dot_dimension_numbers<[1], [0], [0], [1], [0, 0, 1, 1], [], []>} : vector<1024x4xbf16>, vector<4x128xbf16>, vector<1024x128xf32> -> vector<1024x128xf32>
    %c0_3 = arith.constant 0 : index
    %c0_4 = arith.constant 0 : index
    %4 = vector.load %arg3[%c0_3, %c0_4] : memref<1x128xf32, #tpu.memory_space<vmem>>, vector<1x128xf32>
    %5 = vector.broadcast %4 : vector<1x128xf32> to vector<1024x128xf32>
    %6 = arith.addf %3, %5 : vector<1024x128xf32>
    %7 = math.tanh %6 : vector<1024x128xf32>
    %8 = arith.truncf %7 : vector<1024x128xf32> to vector<1024x128xbf16>
    %c0_5 = arith.constant 0 : index
    %c0_6 = arith.constant 0 : index
    %9 = vector.load %arg4[%c0_5, %c0_6] : memref<128x128xbf16, #tpu.memory_space<vmem>>, vector<128x128xbf16>
    %cst_7 = arith.constant dense<0.000000e+00> : vector<1024x128xf32>
    %10 = tpu.matmul %8, %9, %cst_7 {dimension_numbers = #tpu.dot_dimension_numbers<[1], [0], [0], [1], [0, 0, 1, 1], [], []>} : vector<1024x128xbf16>, vector<128x128xbf16>, vector<1024x128xf32> -> vector<1024x128xf32>
    %c0_8 = arith.constant 0 : index
    %c0_9 = arith.constant 0 : index
    %11 = vector.load %arg5[%c0_8, %c0_9] : memref<1x128xf32, #tpu.memory_space<vmem>>, vector<1x128xf32>
    %12 = vector.broadcast %11 : vector<1x128xf32> to vector<1024x128xf32>
    %13 = arith.addf %10, %12 : vector<1024x128xf32>
    %14 = math.tanh %13 : vector<1024x128xf32>
    %15 = arith.truncf %14 : vector<1024x128xf32> to vector<1024x128xbf16>
    %c0_10 = arith.constant 0 : index
    %c0_11 = arith.constant 0 : index
    %16 = vector.load %arg6[%c0_10, %c0_11] : memref<128x1xbf16, #tpu.memory_space<vmem>>, vector<128x1xbf16>
    %cst_12 = arith.constant dense<0.000000e+00> : vector<1024x1xf32>
    %17 = tpu.matmul %15, %16, %cst_12 {dimension_numbers = #tpu.dot_dimension_numbers<[1], [0], [0], [1], [0, 0, 1, 1], [], []>} : vector<1024x128xbf16>, vector<128x1xbf16>, vector<1024x1xf32> -> vector<1024x1xf32>
    %c0_13 = arith.constant 0 : index
    %c0_14 = arith.constant 0 : index
    %18 = vector.load %arg7[%c0_13, %c0_14] : memref<1x1xf32, #tpu.memory_space<vmem>>, vector<1x1xf32>
    %19 = vector.broadcast %18 : vector<1x1xf32> to vector<1024x1xf32>
    %20 = arith.addf %17, %19 : vector<1024x1xf32>
    %c0_15 = arith.constant 0 : index
    %c0_16 = arith.constant 0 : index
    %21 = vector.load %arg8[%c0_15, %c0_16] : memref<1024x1xf32, #tpu.memory_space<vmem>>, vector<1024x1xf32>
    tpu.vector_store %arg8[%c0_15, %c0_16], %20 {strides = array<i32>} : memref<1024x1xf32, #tpu.memory_space<vmem>>, vector<1024x1xf32>,
    return
  }
  func.func @transform_0(%arg0: i32) -> (i32, i32) {
    %c0_i32 = arith.constant 0 : i32
    %c0_i32_0 = arith.constant 0 : i32
    return %arg0, %c0_i32 : i32, i32
  }
  func.func @transform_1(%arg0: i32) -> (i32, i32) {
    %c0_i32 = arith.constant 0 : i32
    %c0_i32_0 = arith.constant 0 : i32
    %c0_i32_1 = arith.constant 0 : i32
    return %c0_i32, %c0_i32_0 : i32, i32
  }
  func.func @transform_2(%arg0: i32) -> (i32, i32) {
    %c0_i32 = arith.constant 0 : i32
    %c0_i32_0 = arith.constant 0 : i32
    %c0_i32_1 = arith.constant 0 : i32
    return %c0_i32, %c0_i32_0 : i32, i32
  }
  func.func @transform_3(%arg0: i32) -> (i32, i32) {
    %c0_i32 = arith.constant 0 : i32
    %c0_i32_0 = arith.constant 0 : i32
    %c0_i32_1 = arith.constant 0 : i32
    return %c0_i32, %c0_i32_0 : i32, i32
  }
  func.func @transform_4(%arg0: i32) -> (i32, i32) {
    %c0_i32 = arith.constant 0 : i32
    %c0_i32_0 = arith.constant 0 : i32
    %c0_i32_1 = arith.constant 0 : i32
    return %c0_i32, %c0_i32_0 : i32, i32
  }
  func.func @transform_5(%arg0: i32) -> (i32, i32) {
    %c0_i32 = arith.constant 0 : i32
    %c0_i32_0 = arith.constant 0 : i32
    %c0_i32_1 = arith.constant 0 : i32
    return %c0_i32, %c0_i32_0 : i32, i32
  }
  func.func @transform_6(%arg0: i32) -> (i32, i32) {
    %c0_i32 = arith.constant 0 : i32
    %c0_i32_0 = arith.constant 0 : i32
    %c0_i32_1 = arith.constant 0 : i32
    return %c0_i32, %c0_i32_0 : i32, i32
  }
  func.func @transform_7(%arg0: i32) -> (i32, i32) {
    %c0_i32 = arith.constant 0 : i32
    %c0_i32_0 = arith.constant 0 : i32
    return %arg0, %c0_i32 : i32, i32
  }
}

module attributes {stable_mosaic.version = 11 : i64} {
  func.func @_fnn_kernel(%arg0: i32, %arg1: memref<1024x4xf32, #tpu.memory_space<vmem>>, %arg2: memref<4x128xbf16, #tpu.memory_space<vmem>>, %arg3: memref<1x128xf32, #tpu.memory_space<vmem>>, %arg4: memref<128x128xbf16, #tpu.memory_space<vmem>>, %arg5: memref<1x128xf32, #tpu.memory_space<vmem>>, %arg6: memref<128x1xbf16, #tpu.memory_space<vmem>>, %arg7: memref<1x1xf32, #tpu.memory_space<vmem>>, %arg8: memref<1024x1xf32, #tpu.memory_space<vmem>>) attributes {dimension_semantics = [#tpu.dimension_semantics<parallel>], iteration_bounds = array<i64: 1>, scalar_prefetch = 0 : i64, scratch_operands = 0 : i64, tpu.core_type = #tpu.core_type<tc>, window_params = [{transform_indices = @transform_0, window_bounds = array<i64: 1024, 4>}, {pipeline_mode = #tpu.pipeline_mode<synchronous>, transform_indices = @transform_1, window_bounds = array<i64: 4, 128>}, {pipeline_mode = #tpu.pipeline_mode<synchronous>, transform_indices = @transform_2, window_bounds = array<i64: 1, 128>}, {pipeline_mode = #tpu.pipeline_mode<synchronous>, transform_indices = @transform_3, window_bounds = array<i64: 128, 128>}, {pipeline_mode = #tpu.pipeline_mode<synchronous>, transform_indices = @transform_4, window_bounds = array<i64: 1, 128>}, {pipeline_mode = #tpu.pipeline_mode<synchronous>, transform_indices = @transform_5, window_bounds = array<i64: 128, 1>}, {pipeline_mode = #tpu.pipeline_mode<synchronous>, transform_indices = @transform_6, window_bounds = array<i64: 1, 1>}, {transform_indices = @transform_7, window_bounds = array<i64: 1024, 1>}]} {
    %c0 = arith.constant 0 : index
    %c0_0 = arith.constant 0 : index
    %0 = vector.load %arg1[%c0, %c0_0] : memref<1024x4xf32, #tpu.memory_space<vmem>>, vector<1024x4xf32>
    %1 = arith.truncf %0 : vector<1024x4xf32> to vector<1024x4xbf16>
    %c0_1 = arith.constant 0 : index
    %c0_2 = arith.constant 0 : index
    %2 = vector.load %arg2[%c0_1, %c0_2] : memref<4x128xbf16, #tpu.memory_space<vmem>>, vector<4x128xbf16>
    %cst = arith.constant dense<0.000000e+00> : vector<1024x128xf32>
    %3 = tpu.matmul %1, %2, %cst {dimension_numbers = #tpu.dot_dimension_numbers<[1], [0], [0], [1], [0, 0, 1, 1], [], []>} : vector<1024x4xbf16>, vector<4x128xbf16>, vector<1024x128xf32> -> vector<1024x128xf32>
    %c0_3 = arith.constant 0 : index
    %c0_4 = arith.constant 0 : index
    %4 = vector.load %arg3[%c0_3, %c0_4] : memref<1x128xf32, #tpu.memory_space<vmem>>, vector<1x128xf32>
    %5 = vector.broadcast %4 : vector<1x128xf32> to vector<1024x128xf32>
    %6 = arith.addf %3, %5 : vector<1024x128xf32>
    %7 = math.tanh %6 : vector<1024x128xf32>
    %8 = arith.truncf %7 : vector<1024x128xf32> to vector<1024x128xbf16>
    %c0_5 = arith.constant 0 : index
    %c0_6 = arith.constant 0 : index
    %9 = vector.load %arg4[%c0_5, %c0_6] : memref<128x128xbf16, #tpu.memory_space<vmem>>, vector<128x128xbf16>
    %cst_7 = arith.constant dense<0.000000e+00> : vector<1024x128xf32>
    %10 = tpu.matmul %8, %9, %cst_7 {dimension_numbers = #tpu.dot_dimension_numbers<[1], [0], [0], [1], [0, 0, 1, 1], [], []>} : vector<1024x128xbf16>, vector<128x128xbf16>, vector<1024x128xf32> -> vector<1024x128xf32>
    %c0_8 = arith.constant 0 : index
    %c0_9 = arith.constant 0 : index
    %11 = vector.load %arg5[%c0_8, %c0_9] : memref<1x128xf32, #tpu.memory_space<vmem>>, vector<1x128xf32>
    %12 = vector.broadcast %11 : vector<1x128xf32> to vector<1024x128xf32>
    %13 = arith.addf %10, %12 : vector<1024x128xf32>
    %14 = math.tanh %13 : vector<1024x128xf32>
    %15 = arith.truncf %14 : vector<1024x128xf32> to vector<1024x128xbf16>
    %c0_10 = arith.constant 0 : index
    %c0_11 = arith.constant 0 : index
    %16 = vector.load %arg6[%c0_10, %c0_11] : memref<128x1xbf16, #tpu.memory_space<vmem>>, vector<128x1xbf16>
    %cst_12 = arith.constant dense<0.000000e+00> : vector<1024x1xf32>
    %17 = tpu.matmul %15, %16, %cst_12 {dimension_numbers = #tpu.dot_dimension_numbers<[1], [0], [0], [1], [0, 0, 1, 1], [], []>} : vector<1024x128xbf16>, vector<128x1xbf16>, vector<1024x1xf32> -> vector<1024x1xf32>
    %c0_13 = arith.constant 0 : index
    %c0_14 = arith.constant 0 : index
    %18 = vector.load %arg7[%c0_13, %c0_14] : memref<1x1xf32, #tpu.memory_space<vmem>>, vector<1x1xf32>
    %19 = vector.broadcast %18 : vector<1x1xf32> to vector<1024x1xf32>
    %20 = arith.addf %17, %19 : vector<1024x1xf32>
    %c0_15 = arith.constant 0 : index
    %c0_16 = arith.constant 0 : index
    %21 = vector.load %arg8[%c0_15, %c0_16] : memref<1024x1xf32, #tpu.memory_space<vmem>>, vector<1024x1xf32>
    tpu.vector_store %arg8[%c0_15, %c0_16], %20 {strides = array<i32>} : memref<1024x1xf32, #tpu.memory_space<vmem>>, vector<1024x1xf32>,
    return
  }
  func.func @transform_0(%arg0: i32) -> (i32, i32) {
    %c0_i32 = arith.constant 0 : i32
    %c0_i32_0 = arith.constant 0 : i32
    return %arg0, %c0_i32 : i32, i32
  }
  func.func @transform_1(%arg0: i32) -> (i32, i32) {
    %c0_i32 = arith.constant 0 : i32
    %c0_i32_0 = arith.constant 0 : i32
    %c0_i32_1 = arith.constant 0 : i32
    return %c0_i32, %c0_i32_0 : i32, i32
  }
  func.func @transform_2(%arg0: i32) -> (i32, i32) {
    %c0_i32 = arith.constant 0 : i32
    %c0_i32_0 = arith.constant 0 : i32
    %c0_i32_1 = arith.constant 0 : i32
    return %c0_i32, %c0_i32_0 : i32, i32
  }
  func.func @transform_3(%arg0: i32) -> (i32, i32) {
    %c0_i32 = arith.constant 0 : i32
    %c0_i32_0 = arith.constant 0 : i32
    %c0_i32_1 = arith.constant 0 : i32
    return %c0_i32, %c0_i32_0 : i32, i32
  }
  func.func @transform_4(%arg0: i32) -> (i32, i32) {
    %c0_i32 = arith.constant 0 : i32
    %c0_i32_0 = arith.constant 0 : i32
    %c0_i32_1 = arith.constant 0 : i32
    return %c0_i32, %c0_i32_0 : i32, i32
  }
  func.func @transform_5(%arg0: i32) -> (i32, i32) {
    %c0_i32 = arith.constant 0 : i32
    %c0_i32_0 = arith.constant 0 : i32
    %c0_i32_1 = arith.constant 0 : i32
    return %c0_i32, %c0_i32_0 : i32, i32
  }
  func.func @transform_6(%arg0: i32) -> (i32, i32) {
    %c0_i32 = arith.constant 0 : i32
    %c0_i32_0 = arith.constant 0 : i32
    %c0_i32_1 = arith.constant 0 : i32
    return %c0_i32, %c0_i32_0 : i32, i32
  }
  func.func @transform_7(%arg0: i32) -> (i32, i32) {
    %c0_i32 = arith.constant 0 : i32
    %c0_i32_0 = arith.constant 0 : i32
    return %arg0, %c0_i32 : i32, i32
  }
}

</mosaic_0001>

<bundles_post_ra>
// kernel: tpu_custom_call.1
= control target key start
LH: loop header
LB: loop body
LE: loop exit
PB: predicated region body
PF: predicated region fallthrough
CT: control target
= control target key end

     0   :  { %vm422_vm0 = vcmask 1041408   ;;  %vm229_vm1 = vcmask 31744   ;;  %vm2587_vm2 = vcmask 7168   ;;  %s5712_s1 = inlined_call_operand.vmem [shape: bf16[4,128], index: 1, kind: input, shape index: {}]   ;;  %s5713_s0 = inlined_call_operand.vmem [shape: f32[1024,4], index: 0, kind: input, shape index: {}]   ;;  %s5714_s3 = inlined_call_operand.vmem [shape: bf16[128,128], index: 3, kind: input, shape index: {}]   ;;  %s5715_s2 = inlined_call_operand.vmem [shape: f32[1,128], index: 2, kind: input, shape index: {}]   ;;  %s5716_s5 = inlined_call_operand.vmem [shape: bf16[128,1], index: 5, kind: input, shape index: {}]   ;;  %s5717_s4 = inlined_call_operand.vmem [shape: f32[1,128], index: 4, kind: input, shape index: {}]   ;;  %s5718_s6 = inlined_call_operand.<no memory space> [shape: f32[1,1], index: 6, kind: input, shape index: {}]   ;;  %s5719_s7 = inlined_call_operand.vmem [shape: f32[1024,1], index: 7, kind: output, shape index: {}]  }
   0x1   :  { %v221_v0 = vld [vmem:[%s5712_s1] sm:$0x3]  ;;  %v30_v2 = vld [vmem:[%s5713_s0 + $0x8] sm:$0xff]  ;;  %v31_v5 = vld [vmem:[%s5713_s0 + $0x10] sm:$0xff] }
   0x2   :  { %v29_v1 = vld [vmem:[%s5713_s0] sm:$0xff]  ;;  %3432 = vmatprep.subr.msk.bf16.mxu0 %vm422_vm0, %v221_v0  ;;  %v424_v3 = vsel %vm422_vm0, %v221_v0, 0  ;;  %v32_v6 = vld [vmem:[%s5713_s0 + $0x18] sm:$0xff]  ;;  %3433 = vmatprep.subr.msk.bf16.mxu1 %vm422_vm0, %v221_v0  ;;  %v34_v9 = vld [vmem:[%s5713_s0 + $0x28] sm:$0xff] }
   0x3   :  { %v157_v4 = vpack.c.bf16 %v30_v2, %v29_v1  ;;  %v33_v7 = vld [vmem:[%s5713_s0 + $0x20] sm:$0xff]  ;;  %3013 = vmatpush3.bf16.msra.mxu0 %v424_v3  ;;  %v158_v8 = vpack.c.bf16 %v32_v6, %v31_v5  ;;  %3431 = vmatpush3.bf16.msra.mxu1 %v424_v3  ;;  %v35_v11 = vld [vmem:[%s5713_s0 + $0x30] sm:$0xff]  ;;  %v36_v12 = vld [vmem:[%s5713_s0 + $0x38] sm:$0xff] }
   0x4   :  { %v159_v10 = vpack.c.bf16 %v34_v9, %v33_v7  ;;  %v37_v13 = vld [vmem:[%s5713_s0 + $0x40] sm:$0xff]  ;;  %v38_v14 = vld [vmem:[%s5713_s0 + $0x48] sm:$0xff]  ;;  %v160_v15 = vpack.c.bf16 %v36_v12, %v35_v11  ;;  %v39_v17 = vld [vmem:[%s5713_s0 + $0x50] sm:$0xff] }
   0x5   :  { %3014 = vmatprep.mubr.msk.bf16.mxu0 %vm229_vm1, %v157_v4  ;;  %v161_v16 = vpack.c.bf16 %v38_v14, %v37_v13  ;;  %v40_v18 = vld [vmem:[%s5713_s0 + $0x58] sm:$0xff]  ;;  %v41_v19 = vld [vmem:[%s5713_s0 + $0x60] sm:$0xff]  ;;  %v42_v20 = vld [vmem:[%s5713_s0 + $0x68] sm:$0xff] }
   0x6   :  { %3015 = vmatmul.mubr.msk.bf16.vlgmr.msra.gmra.mrb[0].mxu0 %vm229_vm1, %v158_v8  ;;  %v162_v21 = vpack.c.bf16 %v40_v18, %v39_v17  ;;  %v93_v22 = vld [vmem:[%s5713_s0 + $0x200] sm:$0xff]  ;;  %v163_v23 = vpack.c.bf16 %v42_v20, %v41_v19  ;;  %v94_v24 = vld [vmem:[%s5713_s0 + $0x208] sm:$0xff]  ;;  %v95_v25 = vld [vmem:[%s5713_s0 + $0x210] sm:$0xff] }
   0x7   :  { %3018 = vmatprep.mubr.msk.bf16.mxu0 %vm229_vm1, %v159_v10  ;;  %v96_v26 = vld [vmem:[%s5713_s0 + $0x218] sm:$0xff]  ;;  %v189_v27 = vpack.c.bf16 %v94_v24, %v93_v22  ;;  %v3434_v29 = vld [vmem:[%s5714_s3] sm:$0xff]   ;;  %v98_v31 = vld [vmem:[%s5713_s0 + $0x228] sm:$0xff] }
   0x8   :  { %v190_v28 = vpack.c.bf16 %v96_v26, %v95_v25  ;;  %v97_v30 = vld [vmem:[%s5713_s0 + $0x220] sm:$0xff]  ;;  %v43_v32 = vld [vmem:[%s5713_s0 + $0x70] sm:$0xff]  ;;  %v44_v33 = vld [vmem:[%s5713_s0 + $0x78] sm:$0xff]  ;;  %3142 = vmatprep.subr.bf16.mxu1 %v3434_v29 }
   0x9   :  { %3078 = vmatprep.mubr.msk.bf16.mxu1 %vm229_vm1, %v189_v27  ;;  %v45_v34 = vld [vmem:[%s5713_s0 + $0x80] sm:$0xff]  ;;  %v191_v35 = vpack.c.bf16 %v98_v31, %v97_v30  ;;  %v46_v36 = vld [vmem:[%s5713_s0 + $0x88] sm:$0xff]  ;;  %v99_v37 = vld [vmem:[%s5713_s0 + $0x230] sm:$0xff]  ;;  %v164_v41 = vpack.c.bf16 %v44_v33, %v43_v32 }
   0xa   :  { %3079 = vmatmul.mubr.msk.bf16.vlgmr.msra.gmra.mrb[0].mxu1 %vm229_vm1, %v190_v28  ;;  %v100_v38 = vld [vmem:[%s5713_s0 + $0x238] sm:$0xff]  ;;  %v101_v39 = vld [vmem:[%s5713_s0 + $0x240] sm:$0xff]  ;;  %v102_v40 = vld [vmem:[%s5713_s0 + $0x248] sm:$0xff]  ;;  %v165_v42 = vpack.c.bf16 %v46_v36, %v45_v34 }
   0xb   :  { %3143 = vmatpush3.bf16.msra.mxu1 %v3434_v29  ;;  %3082 = vmatprep.mubr.msk.bf16.mxu1 %vm229_vm1, %v191_v35  ;;  %v192_v43 = vpack.c.bf16 %v100_v38, %v99_v37  ;;  %v3435_v44 = vld [vmem:[%s5714_s3 + $0x8] sm:$0xff]   ;;  %v193_v45 = vpack.c.bf16 %v102_v40, %v101_v39  ;;  %v47_v46 = vld [vmem:[%s5713_s0 + $0x90] sm:$0xff]  ;;  %v48_v47 = vld [vmem:[%s5713_s0 + $0x98] sm:$0xff] }
   0xc   :  { %3144 = vmatprep.subr.bf16.mxu1 %v3435_v44  ;;  %v49_v48 = vld [vmem:[%s5713_s0 + $0xa0] sm:$0xff]  ;;  %v50_v49 = vld [vmem:[%s5713_s0 + $0xa8] sm:$0xff]  ;;  %v103_v50 = vld [vmem:[%s5713_s0 + $0x250] sm:$0xff]  ;;  %v166_v55 = vpack.c.bf16 %v48_v47, %v47_v46 }
   0xd   :  { %v104_v51 = vld [vmem:[%s5713_s0 + $0x258] sm:$0xff]  ;;  %v3436_v52 = vld [vmem:[%s5714_s3 + $0x10] sm:$0xff]   ;;  %v105_v53 = vld [vmem:[%s5713_s0 + $0x260] sm:$0xff]  ;;  %v167_v56 = vpack.c.bf16 %v50_v49, %v49_v48 }
   0xe   :  { %3019 = vmatmul.mubr.msk.bf16.gmra.mrb[4].mxu0 %vm229_vm1, %v160_v15  ;;  %v106_v54 = vld [vmem:[%s5713_s0 + $0x268] sm:$0xff]  ;;  %v194_v57 = vpack.c.bf16 %v104_v51, %v103_v50  ;;  %v3437_v58 = vld [vmem:[%s5714_s3 + $0x18] sm:$0xff]   ;;  %v51_v60 = vld [vmem:[%s5713_s0 + $0xb0] sm:$0xff] }
   0xf   :  { %3022 = vmatprep.mubr.msk.bf16.mxu0 %vm229_vm1, %v161_v16  ;;  %3145 = vmatpush3.bf16.msra.mxu1 %v3435_v44  ;;  %v195_v59 = vpack.c.bf16 %v106_v54, %v105_v53  ;;  %v52_v61 = vld [vmem:[%s5713_s0 + $0xb8] sm:$0xff]  ;;  %v53_v62 = vld [vmem:[%s5713_s0 + $0xc0] sm:$0xff]  ;;  %v54_v0 = vld [vmem:[%s5713_s0 + $0xc8] sm:$0xff] }
  0x10   :  { %3146 = vmatprep.subr.bf16.mxu1 %v3436_v52  ;;  %v3438_v63 = vld [vmem:[%s5714_s3 + $0x20] sm:$0xff]   ;;  %v107_v1 = vld [vmem:[%s5713_s0 + $0x270] sm:$0xff]  ;;  %v108_v2 = vld [vmem:[%s5713_s0 + $0x278] sm:$0xff]  ;;  %v168_v5 = vpack.c.bf16 %v52_v61, %v51_v60  ;;  %v169_v6 = vpack.c.bf16 %v54_v0, %v53_v62 }
  0x11   :  { %v109_v3 = vld [vmem:[%s5713_s0 + $0x280] sm:$0xff]  ;;  %v110_v4 = vld [vmem:[%s5713_s0 + $0x288] sm:$0xff]  ;;  %v196_v7 = vpack.c.bf16 %v108_v2, %v107_v1  ;;  %v55_v10 = vld [vmem:[%s5713_s0 + $0xd0] sm:$0xff] }
  0x12   :  { %3083 = vmatmul.mubr.msk.bf16.gmra.mrb[4].mxu1 %vm229_vm1, %v192_v43  ;;  %v3439_v8 = vld [vmem:[%s5714_s3 + $0x28] sm:$0xff]   ;;  %v197_v9 = vpack.c.bf16 %v110_v4, %v109_v3  ;;  %v56_v11 = vld [vmem:[%s5713_s0 + $0xd8] sm:$0xff]  ;;  %v3440_v12 = vld [vmem:[%s5714_s3 + $0x30] sm:$0xff]  }
  0x13   :  { %3086 = vmatprep.mubr.msk.bf16.mxu1 %vm229_vm1, %v193_v45  ;;  %3147 = vmatpush3.bf16.msra.mxu1 %v3436_v52  ;;  %v57_v13 = vld [vmem:[%s5713_s0 + $0xe0] sm:$0xff]  ;;  %v58_v14 = vld [vmem:[%s5713_s0 + $0xe8] sm:$0xff]  ;;  %v111_v15 = vld [vmem:[%s5713_s0 + $0x290] sm:$0xff]  ;;  %v170_v19 = vpack.c.bf16 %v56_v11, %v55_v10 }
  0x14   :  { %3148 = vmatprep.subr.bf16.mxu1 %v3437_v58  ;;  %v112_v16 = vld [vmem:[%s5713_s0 + $0x298] sm:$0xff]  ;;  %v113_v17 = vld [vmem:[%s5713_s0 + $0x2a0] sm:$0xff]  ;;  %v114_v18 = vld [vmem:[%s5713_s0 + $0x2a8] sm:$0xff]  ;;  %v171_v20 = vpack.c.bf16 %v58_v14, %v57_v13 }
  0x15   :  { %v199_v22 = vpack.c.bf16 %v114_v18, %v113_v17  ;;  %v60_v24 = vld [vmem:[%s5713_s0 + $0xf8] sm:$0xff]  ;;  %v61_v25 = vld [vmem:[%s5713_s0 + $0x100] sm:$0xff]  ;;  %v62_v26 = vld [vmem:[%s5713_s0 + $0x108] sm:$0xff] }
  0x16   :  { %3023 = vmatmul.mubr.msk.bf16.gmra.mrb[8].mxu0 %vm229_vm1, %v162_v21  ;;  %v198_v21 = vpack.c.bf16 %v112_v16, %v111_v15  ;;  %v115_v27 = vld [vmem:[%s5713_s0 + $0x2b0] sm:$0xff]  ;;  %v116_v28 = vld [vmem:[%s5713_s0 + $0x2b8] sm:$0xff]  ;;  %v117_v29 = vld [vmem:[%s5713_s0 + $0x2c0] sm:$0xff]  ;;  %v173_v32 = vpack.c.bf16 %v62_v26, %v61_v25 }
  0x17   :  { %3026 = vmatprep.mubr.msk.bf16.mxu0 %vm229_vm1, %v163_v23  ;;  %3149 = vmatpush3.bf16.msra.mxu1 %v3437_v58  ;;  %v59_v23 = vld [vmem:[%s5713_s0 + $0xf0] sm:$0xff]  ;;  %v118_v30 = vld [vmem:[%s5713_s0 + $0x2c8] sm:$0xff]  ;;  %v200_v33 = vpack.c.bf16 %v116_v28, %v115_v27  ;;  %v64_v36 = vld [vmem:[%s5713_s0 + $0x118] sm:$0xff] }
  0x18   :  { %3150 = vmatprep.subr.bf16.mxu1 %v3438_v63  ;;  %v172_v31 = vpack.c.bf16 %v60_v24, %v59_v23  ;;  %v201_v34 = vpack.c.bf16 %v118_v30, %v117_v29  ;;  %v63_v35 = vld [vmem:[%s5713_s0 + $0x110] sm:$0xff]  ;;  %v65_v37 = vld [vmem:[%s5713_s0 + $0x120] sm:$0xff]  ;;  %v66_v38 = vld [vmem:[%s5713_s0 + $0x128] sm:$0xff] }
  0x19   :  { %v119_v39 = vld [vmem:[%s5713_s0 + $0x2d0] sm:$0xff]  ;;  %v120_v40 = vld [vmem:[%s5713_s0 + $0x2d8] sm:$0xff]  ;;  %v174_v43 = vpack.c.bf16 %v64_v36, %v63_v35  ;;  %v175_v44 = vpack.c.bf16 %v66_v38, %v65_v37  ;;  %v69_v49 = vld [vmem:[%s5713_s0 + $0x140] sm:$0xff] }
  0x1a   :  { %3087 = vmatmul.mubr.msk.bf16.gmra.mrb[8].mxu1 %vm229_vm1, %v194_v57  ;;  %v202_v45 = vpack.c.bf16 %v120_v40, %v119_v39  ;;  %v67_v47 = vld [vmem:[%s5713_s0 + $0x130] sm:$0xff]  ;;  %v68_v48 = vld [vmem:[%s5713_s0 + $0x138] sm:$0xff]  ;;  %v70_v50 = vld [vmem:[%s5713_s0 + $0x148] sm:$0xff] }
  0x1b   :  { %3090 = vmatprep.mubr.msk.bf16.mxu1 %vm229_vm1, %v195_v59  ;;  %3151 = vmatpush3.bf16.msra.mxu1 %v3438_v63  ;;  %v123_v51 = vld [vmem:[%s5713_s0 + $0x2f0] sm:$0xff]  ;;  %v124_v52 = vld [vmem:[%s5713_s0 + $0x2f8] sm:$0xff]  ;;  %v125_v53 = vld [vmem:[%s5713_s0 + $0x300] sm:$0xff] }
  0x1c   :  { %3152 = vmatprep.subr.bf16.mxu1 %v3439_v8  ;;  %v126_v54 = vld [vmem:[%s5713_s0 + $0x308] sm:$0xff]  ;;  %v204_v57 = vpack.c.bf16 %v124_v52, %v123_v51  ;;  %v71_v59 = vld [vmem:[%s5713_s0 + $0x150] sm:$0xff]  ;;  %v72_v60 = vld [vmem:[%s5713_s0 + $0x158] sm:$0xff] }
  0x1d   :  { %v205_v58 = vpack.c.bf16 %v126_v54, %v125_v53  ;;  %v73_v61 = vld [vmem:[%s5713_s0 + $0x160] sm:$0xff]  ;;  %v74_v62 = vld [vmem:[%s5713_s0 + $0x168] sm:$0xff]  ;;  %v127_v63 = vld [vmem:[%s5713_s0 + $0x310] sm:$0xff]  ;;  %v178_v3 = vpack.c.bf16 %v72_v60, %v71_v59 }
  0x1e   :  { %3027 = vmatmul.mubr.msk.bf16.gmra.mrb[12].mxu0 %vm229_vm1, %v164_v41  ;;  %v121_v41 = vld [vmem:[%s5713_s0 + $0x2e0] sm:$0xff]  ;;  %v128_v0 = vld [vmem:[%s5713_s0 + $0x318] sm:$0xff]  ;;  %v130_v2 = vld [vmem:[%s5713_s0 + $0x328] sm:$0xff]  ;;  %v179_v4 = vpack.c.bf16 %v74_v62, %v73_v61 }
  0x1f   :  { %3030 = vmatprep.mubr.msk.bf16.mxu0 %vm229_vm1, %v165_v42  ;;  %3153 = vmatpush3.bf16.msra.mxu1 %v3439_v8  ;;  %v122_v42 = vld [vmem:[%s5713_s0 + $0x2e8] sm:$0xff]  ;;  %v129_v1 = vld [vmem:[%s5713_s0 + $0x320] sm:$0xff]  ;;  %v76_v8 = vld [vmem:[%s5713_s0 + $0x178] sm:$0xff] }
  0x20   :  { %3154 = vmatprep.subr.bf16.mxu1 %v3440_v12  ;;  %v203_v46 = vpack.c.bf16 %v122_v42, %v121_v41  ;;  %v78_v10 = vld [vmem:[%s5713_s0 + $0x188] sm:$0xff]  ;;  %v131_v11 = vld [vmem:[%s5713_s0 + $0x330] sm:$0xff]  ;;  %v133_v13 = vld [vmem:[%s5713_s0 + $0x340] sm:$0xff] }
  0x21   :  { %v134_v14 = vld [vmem:[%s5713_s0 + $0x348] sm:$0xff]  ;;  %v135_v24 = vld [vmem:[%s5713_s0 + $0x350] sm:$0xff]  ;;  %v136_v25 = vld [vmem:[%s5713_s0 + $0x358] sm:$0xff] }
  0x22   :  { %3091 = vmatmul.mubr.msk.bf16.gmra.mrb[12].mxu1 %vm229_vm1, %v196_v7  ;;  %v75_v7 = vld [vmem:[%s5713_s0 + $0x170] sm:$0xff]  ;;  %v209_v18 = vpack.c.bf16 %v134_v14, %v133_v13  ;;  %v82_v23 = vld [vmem:[%s5713_s0 + $0x1a8] sm:$0xff]  ;;  %v137_v26 = vld [vmem:[%s5713_s0 + $0x360] sm:$0xff]  ;;  %v210_v30 = vpack.c.bf16 %v136_v25, %v135_v24 }
  0x23   :  { %3094 = vmatprep.mubr.msk.bf16.mxu1 %vm229_vm1, %v197_v9  ;;  %3155 = vmatpush3.bf16.msra.mxu1 %v3440_v12  ;;  %v77_v9 = vld [vmem:[%s5713_s0 + $0x180] sm:$0xff]  ;;  %v132_v12 = vld [vmem:[%s5713_s0 + $0x338] sm:$0xff]  ;;  %v180_v15 = vpack.c.bf16 %v76_v8, %v75_v7  ;;  %v138_v27 = vld [vmem:[%s5713_s0 + $0x368] sm:$0xff] }
  0x24   :  { %v181_v16 = vpack.c.bf16 %v78_v10, %v77_v9  ;;  %v208_v17 = vpack.c.bf16 %v132_v12, %v131_v11  ;;  %v86_v35 = vld [vmem:[%s5713_s0 + $0x1c8] sm:$0xff]  ;;  %v139_v36 = vld [vmem:[%s5713_s0 + $0x370] sm:$0xff]  ;;  %v140_v37 = vld [vmem:[%s5713_s0 + $0x378] sm:$0xff] }
  0x25   :  { %v141_v38 = vld [vmem:[%s5713_s0 + $0x380] sm:$0xff]  ;;  %v142_v39 = vld [vmem:[%s5713_s0 + $0x388] sm:$0xff]  ;;  %v212_v42 = vpack.c.bf16 %v140_v37, %v139_v36  ;;  %v148_v59 = vld [vmem:[%s5713_s0 + $0x3b8] sm:$0xff] }
  0x26   :  { %3031 = vmatmul.mubr.msk.bf16.gmra.mrb[16].mxu0 %vm229_vm1, %v166_v55  ;;  %v176_v55 = vpack.c.bf16 %v68_v48, %v67_v47  ;;  %v90_v47 = vld [vmem:[%s5713_s0 + $0x1e8] sm:$0xff]  ;;  %v143_v48 = vld [vmem:[%s5713_s0 + $0x390] sm:$0xff]  ;;  %v149_v60 = vld [vmem:[%s5713_s0 + $0x3c0] sm:$0xff] }
  0x27   :  { %3034 = vmatprep.mubr.msk.bf16.mxu0 %vm229_vm1, %v167_v56  ;;  %v177_v56 = vpack.c.bf16 %v70_v50, %v69_v49  ;;  %v144_v49 = vld [vmem:[%s5713_s0 + $0x398] sm:$0xff]  ;;  %v145_v50 = vld [vmem:[%s5713_s0 + $0x3a0] sm:$0xff]  ;;  %v146_v51 = vld [vmem:[%s5713_s0 + $0x3a8] sm:$0xff] }
  0x28   :  { %v214_v54 = vpack.c.bf16 %v144_v49, %v143_v48  ;;  %v150_v61 = vld [vmem:[%s5713_s0 + $0x3c8] sm:$0xff]  ;;  %v155_v7 = vld [vmem:[%s5713_s0 + $0x3f0] sm:$0xff]  ;;  %v156_v8 = vld [vmem:[%s5713_s0 + $0x3f8] sm:$0xff] }
  0x29   :  { %v220_v9 = vpack.c.bf16 %v156_v8, %v155_v7  ;;  %v4482_v10 = vld [vmem:[%s5715_s2] ss:$0 sm:$0xff] }
  0x2a   :  { %3095 = vmatmul.mubr.msk.bf16.gmra.mrb[16].mxu1 %vm229_vm1, %v198_v21  ;;  %v81_v21 = vld [vmem:[%s5713_s0 + $0x1a0] sm:$0xff] }
  0x2b   :  { %3098 = vmatprep.mubr.msk.bf16.mxu1 %vm229_vm1, %v199_v22  ;;  %v3441_v22 = vld [vmem:[%s5714_s3 + $0x38] sm:$0xff]   ;;  %v183_v29 = vpack.c.bf16 %v82_v23, %v81_v21  ;;  %v3442_v11 = vld [vmem:[%s5716_s5] sm:$0xff]  }
  0x2c   :  { %3156 = vmatprep.subr.bf16.mxu1 %v3441_v22  ;;  %3286 = vmatprep.subr.bf16.mxu0 %v3442_v11 }
  0x2d   :  { %3157 = vmatpush3.bf16.msra.mxu1 %v3441_v22  ;;  %3287 = vmatpush3.bf16.msra.mxu0 %v3442_v11 }
  0x2e   :  { %3035 = vmatmul.mubr.msk.bf16.gmra.mrb[20].mxu0 %vm229_vm1, %v168_v5  ;;  %v206_v5 = vpack.c.bf16 %v128_v0, %v127_v63  ;;  %v217_v0 = vpack.c.bf16 %v150_v61, %v149_v60 }
  0x2f   :  { %3038 = vmatprep.mubr.msk.bf16.mxu0 %vm229_vm1, %v169_v6  ;;  %v207_v6 = vpack.c.bf16 %v130_v2, %v129_v1  ;;  %v151_v1 = vld [vmem:[%s5713_s0 + $0x3d0] sm:$0xff]  ;;  %v152_v2 = vld [vmem:[%s5713_s0 + $0x3d8] sm:$0xff] }
  0x32   :  { %3099 = vmatmul.mubr.msk.bf16.gmra.mrb[20].mxu1 %vm229_vm1, %v200_v33  ;;  %v84_v33 = vld [vmem:[%s5713_s0 + $0x1b8] sm:$0xff] }
  0x33   :  { %3102 = vmatprep.mubr.msk.bf16.mxu1 %vm229_vm1, %v201_v34  ;;  %v85_v34 = vld [vmem:[%s5713_s0 + $0x1c0] sm:$0xff] }
  0x34   :  { %v185_v41 = vpack.c.bf16 %v86_v35, %v85_v34 }
  0x36   :  { %3039 = vmatmul.mubr.msk.bf16.gmra.mrb[24].mxu0 %vm229_vm1, %v170_v19  ;;  %v79_v19 = vld [vmem:[%s5713_s0 + $0x190] sm:$0xff] }
  0x37   :  { %3042 = vmatprep.mubr.msk.bf16.mxu0 %vm229_vm1, %v171_v20  ;;  %v80_v20 = vld [vmem:[%s5713_s0 + $0x198] sm:$0xff] }
  0x38   :  { %v182_v28 = vpack.c.bf16 %v80_v20, %v79_v19  ;;  %v3443_v20 = vld [vmem:[%s5716_s5 + $0x8] sm:$0xff]  }
  0x39   :  { %3288 = vmatprep.subr.bf16.mxu0 %v3443_v20 }
  0x3a   :  { %3103 = vmatmul.mubr.msk.bf16.gmra.mrb[24].mxu1 %vm229_vm1, %v202_v45  ;;  %v88_v45 = vld [vmem:[%s5713_s0 + $0x1d8] sm:$0xff]  ;;  %3289 = vmatpush3.bf16.msra.mxu0 %v3443_v20 }
  0x3b   :  { %3106 = vmatprep.mubr.msk.bf16.mxu1 %vm229_vm1, %v203_v46  ;;  %v89_v46 = vld [vmem:[%s5713_s0 + $0x1e0] sm:$0xff] }
  0x3c   :  { %v187_v53 = vpack.c.bf16 %v90_v47, %v89_v46 }
  0x3e   :  { %3043 = vmatmul.mubr.msk.bf16.gmra.mrb[28].mxu0 %vm229_vm1, %v172_v31  ;;  %v211_v31 = vpack.c.bf16 %v138_v27, %v137_v26 }
  0x3f   :  { %3046 = vmatprep.mubr.msk.bf16.mxu0 %vm229_vm1, %v173_v32  ;;  %v83_v32 = vld [vmem:[%s5713_s0 + $0x1b0] sm:$0xff] }
  0x40   :  { %v184_v40 = vpack.c.bf16 %v84_v33, %v83_v32 }
  0x42   :  { %3107 = vmatmul.mubr.msk.bf16.gmra.mrb[28].mxu1 %vm229_vm1, %v204_v57  ;;  %v92_v57 = vld [vmem:[%s5713_s0 + $0x1f8] sm:$0xff] }
  0x43   :  { %3110 = vmatprep.mubr.msk.bf16.mxu1 %vm229_vm1, %v205_v58  ;;  %v147_v58 = vld [vmem:[%s5713_s0 + $0x3b0] sm:$0xff] }
  0x44   :  { %v216_v63 = vpack.c.bf16 %v148_v59, %v147_v58 }
  0x46   :  { %3047 = vmatmul.mubr.msk.bf16.gmra.mrb[32].mxu0 %vm229_vm1, %v174_v43  ;;  %v213_v43 = vpack.c.bf16 %v142_v39, %v141_v38 }
  0x47   :  { %3050 = vmatprep.mubr.msk.bf16.mxu0 %vm229_vm1, %v175_v44  ;;  %v87_v44 = vld [vmem:[%s5713_s0 + $0x1d0] sm:$0xff] }
  0x48   :  { %v186_v52 = vpack.c.bf16 %v88_v45, %v87_v44 }
  0x4a   :  { %3111 = vmatmul.mubr.msk.bf16.gmra.mrb[32].mxu1 %vm229_vm1, %v206_v5  ;;  %v218_v5 = vpack.c.bf16 %v152_v2, %v151_v1 }
  0x4b   :  { %3114 = vmatprep.mubr.msk.bf16.mxu1 %vm229_vm1, %v207_v6 }
  0x4e   :  { %3051 = vmatmul.mubr.msk.bf16.gmra.mrb[36].mxu0 %vm229_vm1, %v176_v55  ;;  %v215_v55 = vpack.c.bf16 %v146_v51, %v145_v50  ;;  %v3444_v51 = vld [vmem:[%s5716_s5 + $0x10] sm:$0xff]  }
  0x4f   :  { %3054 = vmatprep.mubr.msk.bf16.mxu0 %vm229_vm1, %v177_v56  ;;  %v91_v56 = vld [vmem:[%s5713_s0 + $0x1f0] sm:$0xff]  ;;  %3290 = vmatprep.subr.bf16.mxu0 %v3444_v51 }
  0x50   :  { %v188_v62 = vpack.c.bf16 %v92_v57, %v91_v56  ;;  %3291 = vmatpush3.bf16.msra.mxu0 %v3444_v51 }
  0x52   :  { %3115 = vmatmul.mubr.msk.bf16.gmra.mrb[36].mxu1 %vm229_vm1, %v208_v17 }
  0x53   :  { %3118 = vmatprep.mubr.msk.bf16.mxu1 %vm229_vm1, %v209_v18 }
  0x56   :  { %3055 = vmatmul.mubr.msk.bf16.gmra.mrb[40].mxu0 %vm229_vm1, %v178_v3  ;;  %v153_v3 = vld [vmem:[%s5713_s0 + $0x3e0] sm:$0xff] }
  0x57   :  { %3058 = vmatprep.mubr.msk.bf16.mxu0 %vm229_vm1, %v179_v4  ;;  %v154_v4 = vld [vmem:[%s5713_s0 + $0x3e8] sm:$0xff] }
  0x58   :  { %v219_v6 = vpack.c.bf16 %v154_v4, %v153_v3 }
  0x5a   :  { %3119 = vmatmul.mubr.msk.bf16.gmra.mrb[40].mxu1 %vm229_vm1, %v210_v30 }
  0x5b   :  { %3122 = vmatprep.mubr.msk.bf16.mxu1 %vm229_vm1, %v211_v31 }
  0x5e   :  { %3059 = vmatmul.mubr.msk.bf16.gmra.mrb[44].mxu0 %vm229_vm1, %v180_v15 }
  0x5f   :  { %3062 = vmatprep.mubr.msk.bf16.mxu0 %vm229_vm1, %v181_v16 }
  0x62   :  { %3123 = vmatmul.mubr.msk.bf16.gmra.mrb[44].mxu1 %vm229_vm1, %v212_v42 }
  0x63   :  { %3126 = vmatprep.mubr.msk.bf16.mxu1 %vm229_vm1, %v213_v43 }
  0x66   :  { %3063 = vmatmul.mubr.msk.bf16.gmra.mrb[48].mxu0 %vm229_vm1, %v182_v28 }
  0x67   :  { %3066 = vmatprep.mubr.msk.bf16.mxu0 %vm229_vm1, %v183_v29 }
  0x6a   :  { %3127 = vmatmul.mubr.msk.bf16.gmra.mrb[48].mxu1 %vm229_vm1, %v214_v54 }
  0x6b   :  { %3130 = vmatprep.mubr.msk.bf16.mxu1 %vm229_vm1, %v215_v55 }
  0x6e   :  { %3067 = vmatmul.mubr.msk.bf16.gmra.mrb[52].mxu0 %vm229_vm1, %v184_v40 }
  0x6f   :  { %3070 = vmatprep.mubr.msk.bf16.mxu0 %vm229_vm1, %v185_v41 }
  0x72   :  { %3131 = vmatmul.mubr.msk.bf16.gmra.mrb[52].mxu1 %vm229_vm1, %v216_v63 }
  0x73   :  { %3134 = vmatprep.mubr.msk.bf16.mxu1 %vm229_vm1, %v217_v0 }
  0x76   :  { %3071 = vmatmul.mubr.msk.bf16.gmra.mrb[56].mxu0 %vm229_vm1, %v186_v52 }
  0x77   :  { %3074 = vmatprep.mubr.msk.bf16.mxu0 %vm229_vm1, %v187_v53 }
  0x7a   :  { %3135 = vmatmul.mubr.msk.bf16.gmra.mrb[56].mxu1 %vm229_vm1, %v218_v5 }
  0x7b   :  { %3138 = vmatprep.mubr.msk.bf16.mxu1 %vm229_vm1, %v219_v6 }
  0x7e   :  { %3075 = vmatmul.mubr.msk.bf16.gmra.mrb[60].mxu0 %vm229_vm1, %v188_v62 }
  0x82   :  { %3139 = vmatmul.mubr.msk.bf16.gmra.mrb[60].mxu1 %vm229_vm1, %v220_v9 }
  0xd9   :  { %v3016_v12 = vpop.f32.mrb[0].mxu0 }
  0xda   :  { %v469_v13 = vadd.f32 %v3016_v12, %v4482_v10  ;;  %v460_v14 = vpop.f32.mrb[1].mxu0 }
  0xdb   :  { %v461_v15 = vadd.f32 %v4482_v10, %v460_v14  ;;  %v3017_v16 = vpop.f32.mrb[2].mxu0 }
  0xdc   :  { %3450 = vtanh.f32 %v469_v13  ;;  %v472_v17 = vadd.f32 %v3017_v16, %v4482_v10  ;;  %v463_v18 = vpop.f32.mrb[3].mxu0 }
  0xdd   :  { %3452 = vtanh.f32 %v461_v15  ;;  %v464_v19 = vadd.f32 %v4482_v10, %v463_v18  ;;  %v3080_v38 = vpop.f32.mrb[0].mxu1 }
  0xde   :  { %3454 = vtanh.f32 %v472_v17  ;;  %v716_v41 = vpop.f32.mrb[1].mxu1  ;;  %v725_v44 = vadd.f32 %v3080_v38, %v4482_v10 }
  0xdf   :  { %3456 = vtanh.f32 %v464_v19  ;;  %v3081_v45 = vpop.f32.mrb[2].mxu1  ;;  %v717_v47 = vadd.f32 %v4482_v10, %v716_v41 }
  0xe0   :  { %v719_v48 = vpop.f32.mrb[3].mxu1  ;;  %v728_v50 = vadd.f32 %v3081_v45, %v4482_v10 }
  0xe1   :  { %v3020_v21 = vpop.f32.mrb[4].mxu0  ;;  %v720_v53 = vadd.f32 %v4482_v10, %v719_v48 }
  0xe2   :  { %v485_v22 = vadd.f32 %v3020_v21, %v4482_v10  ;;  %v476_v23 = vpop.f32.mrb[5].mxu0 }
  0xe3   :  { %v477_v24 = vadd.f32 %v4482_v10, %v476_v23  ;;  %v3021_v25 = vpop.f32.mrb[6].mxu0 }
  0xe4   :  { %3458 = vtanh.f32 %v485_v22  ;;  %v488_v26 = vadd.f32 %v3021_v25, %v4482_v10  ;;  %v479_v27 = vpop.f32.mrb[7].mxu0 }
  0xe5   :  { %3460 = vtanh.f32 %v477_v24  ;;  %v480_v28 = vadd.f32 %v4482_v10, %v479_v27  ;;  %v3084_v61 = vpop.f32.mrb[4].mxu1 }
  0xe6   :  { %v3451_v29 = vpop.eup %3450  ;;  %3462 = vtanh.f32 %v488_v26  ;;  %v732_v0 = vpop.f32.mrb[5].mxu1  ;;  %v741_v3 = vadd.f32 %v3084_v61, %v4482_v10 }
  0xe7   :  { %v3453_v30 = vpop.eup %3452  ;;  %3464 = vtanh.f32 %v480_v28  ;;  %v3085_v4 = vpop.f32.mrb[6].mxu1  ;;  %v733_v6 = vadd.f32 %v4482_v10, %v732_v0 }
  0xe8   :  { %v3455_v31 = vpop.eup %3454  ;;  %v735_v7 = vpop.f32.mrb[7].mxu1  ;;  %v744_v9 = vadd.f32 %v3085_v4, %v4482_v10 }
  0xe9   :  { %v3457_v32 = vpop.eup %3456  ;;  %v3024_v33 = vpop.f32.mrb[8].mxu0  ;;  %v1100_v34 = vpack.c.bf16 %v3455_v31, %v3451_v29  ;;  %v736_v12 = vadd.f32 %v4482_v10, %v735_v7 }
  0xea   :  { %v501_v35 = vadd.f32 %v3024_v33, %v4482_v10  ;;  %v492_v36 = vpop.f32.mrb[9].mxu0  ;;  %v1099_v37 = vpack.c.bf16 %v3457_v32, %v3453_v30 }
  0xeb   :  { %v493_v39 = vadd.f32 %v4482_v10, %v492_v36  ;;  %v3025_v40 = vpop.f32.mrb[10].mxu0 }
  0xec   :  { %3466 = vtanh.f32 %v501_v35  ;;  %v504_v42 = vadd.f32 %v3025_v40, %v4482_v10  ;;  %v495_v43 = vpop.f32.mrb[11].mxu0  ;;  %3158 = vmatprep.mubr.bf16.mxu1 %v1099_v37 }
  0xed   :  { %3468 = vtanh.f32 %v493_v39  ;;  %v496_v46 = vadd.f32 %v4482_v10, %v495_v43  ;;  %3159 = vmatmul.mubr.bf16.vlgmr.msra.gmra.mrb[64].mxu1 %v1100_v34  ;;  %v3088_v21 = vpop.f32.mrb[8].mxu1  ;;  %v3445_v39 = vld [vmem:[%s5716_s5 + $0x18] sm:$0xff]  }
  0xee   :  { %v3459_v49 = vpop.eup %3458  ;;  %3470 = vtanh.f32 %v504_v42  ;;  %v748_v25 = vpop.f32.mrb[9].mxu1  ;;  %v757_v29 = vadd.f32 %v3088_v21, %v4482_v10  ;;  %3292 = vmatprep.subr.bf16.mxu0 %v3445_v39 }
  0xef   :  { %v3461_v52 = vpop.eup %3460  ;;  %3472 = vtanh.f32 %v496_v46  ;;  %v3089_v30 = vpop.f32.mrb[10].mxu1  ;;  %v749_v33 = vadd.f32 %v4482_v10, %v748_v25  ;;  %3293 = vmatpush3.bf16.msra.mxu0 %v3445_v39  ;;  %v3446_v39 = vld [vmem:[%s5716_s5 + $0x20] sm:$0xff]  }
  0xf0   :  { %v3463_v54 = vpop.eup %3462  ;;  %3474 = vtanh.f32 %v725_v44  ;;  %v751_v34 = vpop.f32.mrb[11].mxu1  ;;  %v760_v37 = vadd.f32 %v3089_v30, %v4482_v10  ;;  %3294 = vmatprep.subr.bf16.mxu0 %v3446_v39 }
  0xf1   :  { %v3465_v55 = vpop.eup %3464  ;;  %v3028_v56 = vpop.f32.mrb[12].mxu0  ;;  %v1102_v57 = vpack.c.bf16 %v3463_v54, %v3459_v49  ;;  %3476 = vtanh.f32 %v717_v47  ;;  %v752_v41 = vadd.f32 %v4482_v10, %v751_v34 }
  0xf2   :  { %v517_v58 = vadd.f32 %v3028_v56, %v4482_v10  ;;  %v508_v59 = vpop.f32.mrb[13].mxu0  ;;  %v1101_v60 = vpack.c.bf16 %v3465_v55, %v3461_v52  ;;  %3478 = vtanh.f32 %v728_v50 }
  0xf3   :  { %v509_v62 = vadd.f32 %v4482_v10, %v508_v59  ;;  %v3029_v63 = vpop.f32.mrb[14].mxu0  ;;  %3480 = vtanh.f32 %v720_v53  ;;  %3295 = vmatpush3.bf16.msra.mxu0 %v3446_v39 }
  0xf4   :  { %3482 = vtanh.f32 %v517_v58  ;;  %v520_v1 = vadd.f32 %v3029_v63, %v4482_v10  ;;  %v511_v2 = vpop.f32.mrb[15].mxu0  ;;  %3162 = vmatprep.mubr.bf16.mxu1 %v1101_v60 }
  0xf5   :  { %3484 = vtanh.f32 %v509_v62  ;;  %v512_v5 = vadd.f32 %v4482_v10, %v511_v2  ;;  %3163 = vmatmul.mubr.bf16.gmra.mrb[68].mxu1 %v1102_v57  ;;  %v3092_v50 = vpop.f32.mrb[12].mxu1 }
  0xf6   :  { %v3467_v8 = vpop.eup %3466  ;;  %3486 = vtanh.f32 %v520_v1  ;;  %v764_v54 = vpop.f32.mrb[13].mxu1  ;;  %v773_v58 = vadd.f32 %v3092_v50, %v4482_v10 }
  0xf7   :  { %v3469_v11 = vpop.eup %3468  ;;  %3488 = vtanh.f32 %v512_v5  ;;  %v3093_v59 = vpop.f32.mrb[14].mxu1  ;;  %v765_v62 = vadd.f32 %v4482_v10, %v764_v54 }
  0xf8   :  { %v3471_v13 = vpop.eup %3470  ;;  %3490 = vtanh.f32 %v741_v3  ;;  %v767_v63 = vpop.f32.mrb[15].mxu1  ;;  %v776_v2 = vadd.f32 %v3093_v59, %v4482_v10 }
  0xf9   :  { %v3473_v14 = vpop.eup %3472  ;;  %v3032_v15 = vpop.f32.mrb[16].mxu0  ;;  %v1104_v16 = vpack.c.bf16 %v3471_v13, %v3467_v8  ;;  %3492 = vtanh.f32 %v733_v6  ;;  %v768_v5 = vadd.f32 %v4482_v10, %v767_v63 }
  0xfa   :  { %v4517_v17 = vpop.eup %3474  ;;  %v533_v18 = vadd.f32 %v3032_v15, %v4482_v10  ;;  %v524_v19 = vpop.f32.mrb[17].mxu0  ;;  %v1103_v20 = vpack.c.bf16 %v3473_v14, %v3469_v11  ;;  %3494 = vtanh.f32 %v744_v9 }
  0xfb   :  { %v4520_v22 = vpop.eup %3476  ;;  %v525_v23 = vadd.f32 %v4482_v10, %v524_v19  ;;  %v3033_v24 = vpop.f32.mrb[18].mxu0  ;;  %3496 = vtanh.f32 %v736_v12 }
  0xfc   :  { %v4523_v26 = vpop.eup %3478  ;;  %3498 = vtanh.f32 %v533_v18  ;;  %v536_v27 = vadd.f32 %v3033_v24, %v4482_v10  ;;  %v527_v28 = vpop.f32.mrb[19].mxu0  ;;  %3166 = vmatprep.mubr.bf16.mxu1 %v1103_v20 }
  0xfd   :  { %v4527_v31 = vpop.eup %3480  ;;  %3500 = vtanh.f32 %v525_v23  ;;  %v528_v32 = vadd.f32 %v4482_v10, %v527_v28  ;;  %3167 = vmatmul.mubr.bf16.gmra.mrb[72].mxu1 %v1104_v16  ;;  %v3096_v15 = vpop.f32.mrb[16].mxu1 }
  0xfe   :  { %v3483_v36 = vpop.eup %3482  ;;  %3502 = vtanh.f32 %v536_v27  ;;  %v780_v20 = vpop.f32.mrb[17].mxu1  ;;  %v789_v25 = vadd.f32 %v3096_v15, %v4482_v10 }
  0xff   :  { %v3485_v40 = vpop.eup %3484  ;;  %3504 = vtanh.f32 %v528_v32  ;;  %v3097_v27 = vpop.f32.mrb[18].mxu1  ;;  %v781_v30 = vadd.f32 %v4482_v10, %v780_v20 }
 0x100   :  { %v3487_v42 = vpop.eup %3486  ;;  %3506 = vtanh.f32 %v757_v29  ;;  %v783_v32 = vpop.f32.mrb[19].mxu1 }
 0x101   :  { %v3489_v43 = vpop.eup %3488  ;;  %v3036_v44 = vpop.f32.mrb[20].mxu0  ;;  %v1106_v45 = vpack.c.bf16 %v3487_v42, %v3483_v36  ;;  %3508 = vtanh.f32 %v749_v33  ;;  %v792_v36 = vadd.f32 %v3097_v27, %v4482_v10 }
 0x102   :  { %v4540_v46 = vpop.eup %3490  ;;  %v549_v47 = vadd.f32 %v3036_v44, %v4482_v10  ;;  %v540_v48 = vpop.f32.mrb[21].mxu0  ;;  %v1105_v49 = vpack.c.bf16 %v3489_v43, %v3485_v40  ;;  %3510 = vtanh.f32 %v760_v37 }
 0x103   :  { %v4543_v51 = vpop.eup %3492  ;;  %v541_v52 = vadd.f32 %v4482_v10, %v540_v48  ;;  %v3037_v53 = vpop.f32.mrb[22].mxu0  ;;  %3512 = vtanh.f32 %v752_v41  ;;  %v784_v41 = vadd.f32 %v4482_v10, %v783_v32 }
 0x104   :  { %v4546_v55 = vpop.eup %3494  ;;  %3514 = vtanh.f32 %v549_v47  ;;  %v552_v56 = vadd.f32 %v3037_v53, %v4482_v10  ;;  %v543_v57 = vpop.f32.mrb[23].mxu0  ;;  %3170 = vmatprep.mubr.bf16.mxu1 %v1105_v49 }
 0x105   :  { %v4550_v60 = vpop.eup %3496  ;;  %3516 = vtanh.f32 %v541_v52  ;;  %v544_v61 = vadd.f32 %v4482_v10, %v543_v57  ;;  %3171 = vmatmul.mubr.bf16.gmra.mrb[76].mxu1 %v1106_v45  ;;  %v3100_v52 = vpop.f32.mrb[20].mxu1 }
 0x106   :  { %v3499_v1 = vpop.eup %3498  ;;  %3518 = vtanh.f32 %v552_v56  ;;  %v796_v57 = vpop.f32.mrb[21].mxu1 }
 0x107   :  { %v3501_v4 = vpop.eup %3500  ;;  %3520 = vtanh.f32 %v544_v61  ;;  %v3101_v63 = vpop.f32.mrb[22].mxu1 }
 0x108   :  { %v3503_v6 = vpop.eup %3502  ;;  %3522 = vtanh.f32 %v773_v58 }
 0x109   :  { %v3505_v7 = vpop.eup %3504  ;;  %v3040_v8 = vpop.f32.mrb[24].mxu0  ;;  %v1108_v9 = vpack.c.bf16 %v3503_v6, %v3499_v1  ;;  %3524 = vtanh.f32 %v765_v62  ;;  %v805_v62 = vadd.f32 %v3100_v52, %v4482_v10 }
 0x10a   :  { %v4560_v11 = vpop.eup %3506  ;;  %v565_v12 = vadd.f32 %v3040_v8, %v4482_v10  ;;  %v556_v13 = vpop.f32.mrb[25].mxu0  ;;  %v1107_v14 = vpack.c.bf16 %v3505_v7, %v3501_v4  ;;  %3526 = vtanh.f32 %v776_v2  ;;  %v797_v4 = vadd.f32 %v4482_v10, %v796_v57 }
 0x10b   :  { %v4563_v16 = vpop.eup %3508  ;;  %v557_v18 = vadd.f32 %v4482_v10, %v556_v13  ;;  %v3041_v19 = vpop.f32.mrb[26].mxu0  ;;  %3528 = vtanh.f32 %v768_v5  ;;  %v808_v8 = vadd.f32 %v3101_v63, %v4482_v10 }
 0x10c   :  { %v4566_v21 = vpop.eup %3510  ;;  %3530 = vtanh.f32 %v565_v12  ;;  %v568_v23 = vadd.f32 %v3041_v19, %v4482_v10  ;;  %v559_v24 = vpop.f32.mrb[27].mxu0  ;;  %3174 = vmatprep.mubr.bf16.mxu1 %v1107_v14 }
 0x10d   :  { %v4570_v28 = vpop.eup %3512  ;;  %3532 = vtanh.f32 %v557_v18  ;;  %v560_v29 = vadd.f32 %v4482_v10, %v559_v24  ;;  %3175 = vmatmul.mubr.bf16.gmra.mrb[80].mxu1 %v1108_v9  ;;  %v799_v5 = vpop.f32.mrb[23].mxu1 }
 0x10e   :  { %v3515_v34 = vpop.eup %3514  ;;  %3534 = vtanh.f32 %v568_v23  ;;  %v800_v13 = vadd.f32 %v4482_v10, %v799_v5  ;;  %v3104_v27 = vpop.f32.mrb[24].mxu1 }
 0x10f   :  { %v3517_v40 = vpop.eup %3516  ;;  %3536 = vtanh.f32 %v560_v29 }
 0x110   :  { %v3519_v42 = vpop.eup %3518  ;;  %3538 = vtanh.f32 %v789_v25 }
 0x111   :  { %v3521_v43 = vpop.eup %3520  ;;  %v3044_v44 = vpop.f32.mrb[28].mxu0  ;;  %v1110_v45 = vpack.c.bf16 %v3519_v42, %v3515_v34  ;;  %3540 = vtanh.f32 %v781_v30 }
 0x112   :  { %v4583_v47 = vpop.eup %3522  ;;  %v581_v48 = vadd.f32 %v3044_v44, %v4482_v10  ;;  %v572_v49 = vpop.f32.mrb[29].mxu0  ;;  %v1109_v50 = vpack.c.bf16 %v3521_v43, %v3517_v40  ;;  %3542 = vtanh.f32 %v792_v36 }
 0x113   :  { %v4586_v53 = vpop.eup %3524  ;;  %v573_v54 = vadd.f32 %v4482_v10, %v572_v49  ;;  %v3045_v56 = vpop.f32.mrb[30].mxu0  ;;  %3544 = vtanh.f32 %v784_v41  ;;  %v821_v41 = vadd.f32 %v3104_v27, %v4482_v10 }
 0x114   :  { %v4589_v58 = vpop.eup %3526  ;;  %3546 = vtanh.f32 %v581_v48  ;;  %v584_v59 = vadd.f32 %v3045_v56, %v4482_v10  ;;  %v575_v61 = vpop.f32.mrb[31].mxu0  ;;  %3178 = vmatprep.mubr.bf16.mxu1 %v1109_v50  ;;  %v3447_v56 = vld [vmem:[%s5716_s5 + $0x28] sm:$0xff]  }
 0x115   :  { %v4593_v1 = vpop.eup %3528  ;;  %3548 = vtanh.f32 %v573_v54  ;;  %v576_v2 = vadd.f32 %v4482_v10, %v575_v61  ;;  %3179 = vmatmul.mubr.bf16.gmra.mrb[84].mxu1 %v1110_v45  ;;  %v812_v34 = vpop.f32.mrb[25].mxu1  ;;  %3296 = vmatprep.subr.bf16.mxu0 %v3447_v56 }
 0x116   :  { %v3531_v7 = vpop.eup %3530  ;;  %3550 = vtanh.f32 %v584_v59  ;;  %v3105_v42 = vpop.f32.mrb[26].mxu1  ;;  %v813_v45 = vadd.f32 %v4482_v10, %v812_v34  ;;  %3297 = vmatpush3.bf16.msra.mxu0 %v3447_v56 }
 0x117   :  { %v3533_v12 = vpop.eup %3532  ;;  %3552 = vtanh.f32 %v576_v2  ;;  %v815_v48 = vpop.f32.mrb[27].mxu1  ;;  %v824_v52 = vadd.f32 %v3105_v42, %v4482_v10 }
 0x118   :  { %v3535_v14 = vpop.eup %3534  ;;  %3554 = vtanh.f32 %v805_v62  ;;  %v816_v59 = vadd.f32 %v4482_v10, %v815_v48 }
 0x119   :  { %v3537_v15 = vpop.eup %3536  ;;  %v3048_v18 = vpop.f32.mrb[32].mxu0  ;;  %v1112_v19 = vpack.c.bf16 %v3535_v14, %v3531_v7  ;;  %3556 = vtanh.f32 %v797_v4 }
 0x11a   :  { %v4603_v20 = vpop.eup %3538  ;;  %v597_v23 = vadd.f32 %v3048_v18, %v4482_v10  ;;  %v588_v24 = vpop.f32.mrb[33].mxu0  ;;  %v1111_v25 = vpack.c.bf16 %v3537_v15, %v3533_v12  ;;  %3558 = vtanh.f32 %v808_v8 }
 0x11b   :  { %v4606_v29 = vpop.eup %3540  ;;  %v589_v30 = vadd.f32 %v4482_v10, %v588_v24  ;;  %v3049_v32 = vpop.f32.mrb[34].mxu0  ;;  %3560 = vtanh.f32 %v800_v13 }
 0x11c   :  { %v4609_v36 = vpop.eup %3542  ;;  %3562 = vtanh.f32 %v597_v23  ;;  %v600_v39 = vadd.f32 %v3049_v32, %v4482_v10  ;;  %v591_v40 = vpop.f32.mrb[35].mxu0  ;;  %3182 = vmatprep.mubr.bf16.mxu1 %v1111_v25 }
 0x11d   :  { %v4613_v43 = vpop.eup %3544  ;;  %3564 = vtanh.f32 %v589_v30  ;;  %v592_v44 = vadd.f32 %v4482_v10, %v591_v40  ;;  %3183 = vmatmul.mubr.bf16.gmra.mrb[88].mxu1 %v1112_v19  ;;  %v3108_v12 = vpop.f32.mrb[28].mxu1 }
 0x11e   :  { %v3547_v50 = vpop.eup %3546  ;;  %3566 = vtanh.f32 %v600_v39  ;;  %v828_v18 = vpop.f32.mrb[29].mxu1  ;;  %v837_v25 = vadd.f32 %v3108_v12, %v4482_v10 }
 0x11f   :  { %v3549_v57 = vpop.eup %3548  ;;  %3568 = vtanh.f32 %v592_v44  ;;  %v3109_v27 = vpop.f32.mrb[30].mxu1  ;;  %v829_v34 = vadd.f32 %v4482_v10, %v828_v18 }
 0x120   :  { %v3551_v61 = vpop.eup %3550  ;;  %3570 = vtanh.f32 %v821_v41  ;;  %v831_v39 = vpop.f32.mrb[31].mxu1  ;;  %v840_v42 = vadd.f32 %v3109_v27, %v4482_v10 }
 0x121   :  { %v3553_v62 = vpop.eup %3552  ;;  %v3052_v63 = vpop.f32.mrb[36].mxu0  ;;  %v1114_v2 = vpack.c.bf16 %v3551_v61, %v3547_v50  ;;  %3572 = vtanh.f32 %v813_v45  ;;  %v832_v48 = vadd.f32 %v4482_v10, %v831_v39 }
 0x122   :  { %v4626_v4 = vpop.eup %3554  ;;  %v613_v5 = vadd.f32 %v3052_v63, %v4482_v10  ;;  %v604_v7 = vpop.f32.mrb[37].mxu0  ;;  %v1113_v8 = vpack.c.bf16 %v3553_v62, %v3549_v57  ;;  %3574 = vtanh.f32 %v824_v52 }
 0x123   :  { %v4629_v13 = vpop.eup %3556  ;;  %v605_v14 = vadd.f32 %v4482_v10, %v604_v7  ;;  %v3053_v15 = vpop.f32.mrb[38].mxu0  ;;  %3576 = vtanh.f32 %v816_v59 }
 0x124   :  { %v4632_v19 = vpop.eup %3558  ;;  %3578 = vtanh.f32 %v613_v5  ;;  %v616_v23 = vadd.f32 %v3053_v15, %v4482_v10  ;;  %v607_v24 = vpop.f32.mrb[39].mxu0  ;;  %3186 = vmatprep.mubr.bf16.mxu1 %v1113_v8 }
 0x125   :  { %v4636_v30 = vpop.eup %3560  ;;  %3580 = vtanh.f32 %v605_v14  ;;  %v608_v32 = vadd.f32 %v4482_v10, %v607_v24  ;;  %3187 = vmatmul.mubr.bf16.gmra.mrb[92].mxu1 %v1114_v2  ;;  %v3112_v2 = vpop.f32.mrb[32].mxu1 }
 0x126   :  { %v3563_v41 = vpop.eup %3562  ;;  %3582 = vtanh.f32 %v616_v23  ;;  %v844_v12 = vpop.f32.mrb[33].mxu1  ;;  %v853_v23 = vadd.f32 %v3112_v2, %v4482_v10 }
 0x127   :  { %v3565_v45 = vpop.eup %3564  ;;  %3584 = vtanh.f32 %v608_v32  ;;  %v3113_v24 = vpop.f32.mrb[34].mxu1  ;;  %v845_v32 = vadd.f32 %v4482_v10, %v844_v12 }
 0x128   :  { %v3567_v50 = vpop.eup %3566  ;;  %3586 = vtanh.f32 %v837_v25 }
 0x129   :  { %v3569_v52 = vpop.eup %3568  ;;  %v3056_v56 = vpop.f32.mrb[40].mxu0  ;;  %v1116_v57 = vpack.c.bf16 %v3567_v50, %v3563_v41  ;;  %3588 = vtanh.f32 %v829_v34 }
 0x12a   :  { %v4646_v59 = vpop.eup %3570  ;;  %v629_v61 = vadd.f32 %v3056_v56, %v4482_v10  ;;  %v620_v62 = vpop.f32.mrb[41].mxu0  ;;  %v1115_v63 = vpack.c.bf16 %v3569_v52, %v3565_v45  ;;  %3590 = vtanh.f32 %v840_v42  ;;  %v856_v42 = vadd.f32 %v3113_v24, %v4482_v10 }
 0x12b   :  { %v4649_v5 = vpop.eup %3572  ;;  %v621_v7 = vadd.f32 %v4482_v10, %v620_v62  ;;  %v3057_v8 = vpop.f32.mrb[42].mxu0  ;;  %3592 = vtanh.f32 %v832_v48  ;;  %v3448_v48 = vld [vmem:[%s5716_s5 + $0x30] sm:$0xff]  }
 0x12c   :  { %v4652_v14 = vpop.eup %3574  ;;  %3594 = vtanh.f32 %v629_v61  ;;  %v632_v15 = vadd.f32 %v3057_v8, %v4482_v10  ;;  %v623_v18 = vpop.f32.mrb[43].mxu0  ;;  %3190 = vmatprep.mubr.bf16.mxu1 %v1115_v63  ;;  %3298 = vmatprep.subr.bf16.mxu0 %v3448_v48 }
 0x12d   :  { %v4656_v25 = vpop.eup %3576  ;;  %3596 = vtanh.f32 %v621_v7  ;;  %v624_v27 = vadd.f32 %v4482_v10, %v623_v18  ;;  %3191 = vmatmul.mubr.bf16.gmra.mrb[96].mxu1 %v1116_v57  ;;  %v847_v34 = vpop.f32.mrb[35].mxu1  ;;  %3299 = vmatpush3.bf16.msra.mxu0 %v3448_v48 }
 0x12e   :  { %v3579_v41 = vpop.eup %3578  ;;  %3598 = vtanh.f32 %v632_v15  ;;  %v848_v52 = vadd.f32 %v4482_v10, %v847_v34  ;;  %v3116_v12 = vpop.f32.mrb[36].mxu1 }
 0x12f   :  { %v3581_v50 = vpop.eup %3580  ;;  %3600 = vtanh.f32 %v624_v27 }
 0x130   :  { %v3583_v56 = vpop.eup %3582  ;;  %3602 = vtanh.f32 %v853_v23  ;;  %v860_v23 = vpop.f32.mrb[37].mxu1 }
 0x131   :  { %v3585_v57 = vpop.eup %3584  ;;  %v3060_v61 = vpop.f32.mrb[44].mxu0  ;;  %v1118_v62 = vpack.c.bf16 %v3583_v56, %v3579_v41  ;;  %3604 = vtanh.f32 %v845_v32  ;;  %v869_v41 = vadd.f32 %v3116_v12, %v4482_v10  ;;  %v861_v56 = vadd.f32 %v4482_v10, %v860_v23 }
 0x132   :  { %v4669_v63 = vpop.eup %3586  ;;  %v645_v2 = vadd.f32 %v3060_v61, %v4482_v10  ;;  %v636_v7 = vpop.f32.mrb[45].mxu0  ;;  %v1117_v8 = vpack.c.bf16 %v3585_v57, %v3581_v50  ;;  %3606 = vtanh.f32 %v856_v42 }
 0x133   :  { %v4672_v15 = vpop.eup %3588  ;;  %v637_v18 = vadd.f32 %v4482_v10, %v636_v7  ;;  %v3061_v24 = vpop.f32.mrb[46].mxu0  ;;  %3608 = vtanh.f32 %v848_v52 }
 0x134   :  { %v4675_v27 = vpop.eup %3590  ;;  %3610 = vtanh.f32 %v645_v2  ;;  %v648_v32 = vadd.f32 %v3061_v24, %v4482_v10  ;;  %v639_v34 = vpop.f32.mrb[47].mxu0  ;;  %3194 = vmatprep.mubr.bf16.mxu1 %v1117_v8 }
 0x135   :  { %v3117_v48 = vpop.f32.mrb[38].mxu1  ;;  %v4679_v50 = vpop.eup %3592  ;;  %3612 = vtanh.f32 %v637_v18  ;;  %v640_v42 = vadd.f32 %v4482_v10, %v639_v34  ;;  %3195 = vmatmul.mubr.bf16.gmra.mrb[100].mxu1 %v1118_v62 }
 0x136   :  { %v863_v52 = vpop.f32.mrb[39].mxu1  ;;  %v3595_v61 = vpop.eup %3594  ;;  %3614 = vtanh.f32 %v648_v32  ;;  %v872_v2 = vadd.f32 %v3117_v48, %v4482_v10 }
 0x137   :  { %v3597_v8 = vpop.eup %3596  ;;  %3616 = vtanh.f32 %v640_v42  ;;  %v864_v12 = vadd.f32 %v4482_v10, %v863_v52  ;;  %v3120_v48 = vpop.f32.mrb[40].mxu1 }
 0x138   :  { %v3599_v18 = vpop.eup %3598  ;;  %3618 = vtanh.f32 %v869_v41  ;;  %v876_v52 = vpop.f32.mrb[41].mxu1 }
 0x139   :  { %v3601_v62 = vpop.eup %3600  ;;  %v3064_v24 = vpop.f32.mrb[48].mxu0  ;;  %v1120_v23 = vpack.c.bf16 %v3599_v18, %v3595_v61  ;;  %3620 = vtanh.f32 %v861_v56  ;;  %v885_v18 = vadd.f32 %v3120_v48, %v4482_v10 }
 0x13a   :  { %v4689_v34 = vpop.eup %3602  ;;  %v661_v57 = vadd.f32 %v3064_v24, %v4482_v10  ;;  %v652_v32 = vpop.f32.mrb[49].mxu0  ;;  %v1119_v39 = vpack.c.bf16 %v3601_v62, %v3597_v8  ;;  %3622 = vtanh.f32 %v872_v2  ;;  %v877_v62 = vadd.f32 %v4482_v10, %v876_v52 }
 0x13b   :  { %v4692_v45 = vpop.eup %3604  ;;  %v653_v42 = vadd.f32 %v4482_v10, %v652_v32  ;;  %v3065_v7 = vpop.f32.mrb[50].mxu0  ;;  %3624 = vtanh.f32 %v864_v12 }
 0x13c   :  { %v4695_v41 = vpop.eup %3606  ;;  %3626 = vtanh.f32 %v661_v57  ;;  %v664_v56 = vadd.f32 %v3065_v7, %v4482_v10  ;;  %v655_v61 = vpop.f32.mrb[51].mxu0  ;;  %3198 = vmatprep.mubr.bf16.mxu1 %v1119_v39 }
 0x13d   :  { %v3121_v24 = vpop.f32.mrb[42].mxu1  ;;  %v4699_v8 = vpop.eup %3608  ;;  %3628 = vtanh.f32 %v653_v42  ;;  %v656_v2 = vadd.f32 %v4482_v10, %v655_v61  ;;  %3199 = vmatmul.mubr.bf16.gmra.mrb[104].mxu1 %v1120_v23 }
 0x13e   :  { %v879_v12 = vpop.f32.mrb[43].mxu1  ;;  %v3611_v57 = vpop.eup %3610  ;;  %3630 = vtanh.f32 %v664_v56  ;;  %v888_v7 = vadd.f32 %v3121_v24, %v4482_v10 }
 0x13f   :  { %v3613_v48 = vpop.eup %3612  ;;  %3632 = vtanh.f32 %v656_v2  ;;  %v880_v42 = vadd.f32 %v4482_v10, %v879_v12  ;;  %v3124_v24 = vpop.f32.mrb[44].mxu1 }
 0x140   :  { %v3615_v40 = vpop.eup %3614  ;;  %3634 = vtanh.f32 %v885_v18  ;;  %v892_v12 = vpop.f32.mrb[45].mxu1 }
 0x141   :  { %v3617_v23 = vpop.eup %3616  ;;  %v3068_v61 = vpop.f32.mrb[52].mxu0  ;;  %v1122_v52 = vpack.c.bf16 %v3615_v40, %v3611_v57  ;;  %3636 = vtanh.f32 %v877_v62  ;;  %v901_v57 = vadd.f32 %v3124_v24, %v4482_v10  ;;  %v3449_v24 = vld [vmem:[%s5716_s5 + $0x38] sm:$0xff]  }
 0x142   :  { %v4709_v44 = vpop.eup %3618  ;;  %v677_v32 = vadd.f32 %v3068_v61, %v4482_v10  ;;  %v668_v56 = vpop.f32.mrb[53].mxu0  ;;  %v1121_v49 = vpack.c.bf16 %v3617_v23, %v3613_v48  ;;  %3638 = vtanh.f32 %v888_v7  ;;  %v893_v23 = vadd.f32 %v4482_v10, %v892_v12  ;;  %3300 = vmatprep.subr.bf16.mxu0 %v3449_v24 }
 0x143   :  { %v4712_v54 = vpop.eup %3620  ;;  %v669_v2 = vadd.f32 %v4482_v10, %v668_v56  ;;  %v3069_v39 = vpop.f32.mrb[54].mxu0  ;;  %3640 = vtanh.f32 %v880_v42  ;;  %3301 = vmatpush3.bf16.msra.mxu0 %v3449_v24 }
 0x144   :  { %v4715_v18 = vpop.eup %3622  ;;  %3642 = vtanh.f32 %v677_v32  ;;  %v680_v40 = vadd.f32 %v3069_v39, %v4482_v10  ;;  %v671_v62 = vpop.f32.mrb[55].mxu0  ;;  %3202 = vmatprep.mubr.bf16.mxu1 %v1121_v49 }
 0x145   :  { %v3125_v61 = vpop.f32.mrb[46].mxu1  ;;  %v4719_v48 = vpop.eup %3624  ;;  %3644 = vtanh.f32 %v669_v2  ;;  %v672_v7 = vadd.f32 %v4482_v10, %v671_v62  ;;  %3203 = vmatmul.mubr.bf16.gmra.mrb[108].mxu1 %v1122_v52 }
 0x146   :  { %v895_v42 = vpop.f32.mrb[47].mxu1  ;;  %v3627_v32 = vpop.eup %3626  ;;  %3646 = vtanh.f32 %v680_v40  ;;  %v904_v39 = vadd.f32 %v3125_v61, %v4482_v10  ;;  %v4737_v61 = vld [vmem:[%s5715_s2] ss:$0 sm:$0xff] }
 0x147   :  { %v3629_v2 = vpop.eup %3628  ;;  %3648 = vtanh.f32 %v672_v7  ;;  %v896_v52 = vadd.f32 %v4482_v10, %v895_v42  ;;  %v3128_v10 = vpop.f32.mrb[48].mxu1 }
 0x148   :  { %v3631_v12 = vpop.eup %3630  ;;  %3650 = vtanh.f32 %v901_v57 }
 0x149   :  { %v3633_v62 = vpop.eup %3632  ;;  %v3072_v56 = vpop.f32.mrb[56].mxu0  ;;  %v1124_v6 = vpack.c.bf16 %v3631_v12, %v3627_v32  ;;  %3652 = vtanh.f32 %v893_v23 }
 0x14a   :  { %v4732_v40 = vpop.eup %3634  ;;  %v693_v49 = vadd.f32 %v4737_v61, %v3072_v56  ;;  %v684_v7 = vpop.f32.mrb[57].mxu0  ;;  %v1123_v9 = vpack.c.bf16 %v3633_v62, %v3629_v2  ;;  %3654 = vtanh.f32 %v904_v39  ;;  %v917_v56 = vadd.f32 %v4737_v61, %v3128_v10 }
 0x14b   :  { %5725 = vst [vmem:[#allocation3_spill] sm:$0xff] %v4732_v40  ;;  %v4740_v57 = vpop.eup %3636  ;;  %v685_v42 = vadd.f32 %v4737_v61, %v684_v7  ;;  %v3073_v32 = vpop.f32.mrb[58].mxu0  ;;  %3656 = vtanh.f32 %v896_v52 }
 0x14c   :  { %v908_v23 = vpop.f32.mrb[49].mxu1  ;;  %v4743_v24 = vpop.eup %3638  ;;  %3658 = vtanh.f32 %v693_v49  ;;  %v696_v12 = vadd.f32 %v4737_v61, %v3073_v32  ;;  %3206 = vmatprep.mubr.bf16.mxu1 %v1123_v9 }
 0x14d   :  { %5726 = vst [vmem:[#allocation4_spill] sm:$0xff] %v4743_v24  ;;  %v687_v33 = vpop.f32.mrb[59].mxu0  ;;  %v3129_v37 = vpop.f32.mrb[50].mxu1  ;;  %3660 = vtanh.f32 %v685_v42  ;;  %3207 = vmatmul.mubr.bf16.gmra.mrb[112].mxu1 %v1124_v6  ;;  %v909_v62 = vadd.f32 %v4737_v61, %v908_v23 }
 0x14e   :  { %v4747_v2 = vpop.eup %3640  ;;  %v688_v39 = vadd.f32 %v4737_v61, %v687_v33  ;;  %v911_v52 = vpop.f32.mrb[51].mxu1  ;;  %3662 = vtanh.f32 %v696_v12  ;;  %v920_v32 = vadd.f32 %v4737_v61, %v3129_v37 }
 0x14f   :  { %v3643_v49 = vpop.eup %3642  ;;  %v912_v42 = vadd.f32 %v4737_v61, %v911_v52  ;;  %v3132_v37 = vpop.f32.mrb[52].mxu1 }
 0x150   :  { %v3645_v10 = vpop.eup %3644  ;;  %3664 = vtanh.f32 %v688_v39  ;;  %v924_v52 = vpop.f32.mrb[53].mxu1 }
 0x151   :  { %v3647_v0 = vpop.eup %3646  ;;  %3666 = vtanh.f32 %v917_v56  ;;  %v3076_v6 = vpop.f32.mrb[60].mxu0 }
 0x152   :  { %v3649_v33 = vpop.eup %3648  ;;  %v1126_v23 = vpack.c.bf16 %v3647_v0, %v3643_v49  ;;  %3668 = vtanh.f32 %v909_v62  ;;  %v709_v7 = vadd.f32 %v4737_v61, %v3076_v6  ;;  %v700_v12 = vpop.f32.mrb[61].mxu0  ;;  %v933_v49 = vadd.f32 %v4737_v61, %v3132_v37 }
 0x153   :  { %v4757_v3 = vpop.eup %3650  ;;  %v1125_v35 = vpack.c.bf16 %v3649_v33, %v3645_v10  ;;  %3670 = vtanh.f32 %v920_v32  ;;  %v701_v39 = vadd.f32 %v4737_v61, %v700_v12  ;;  %v3077_v9 = vpop.f32.mrb[62].mxu0  ;;  %v925_v33 = vadd.f32 %v4737_v61, %v924_v52 }
 0x154   :  { %5727 = vst [vmem:[#allocation5_spill] sm:$0xff] %v4757_v3  ;;  %v4760_v38 = vpop.eup %3652  ;;  %3672 = vtanh.f32 %v912_v42  ;;  %v712_v0 = vadd.f32 %v4737_v61, %v3077_v9  ;;  %v703_v62 = vpop.f32.mrb[63].mxu0 }
 0x155   :  { %v4763_v56 = vpop.eup %3654  ;;  %3674 = vtanh.f32 %v709_v7  ;;  %3210 = vmatprep.mubr.bf16.mxu1 %v1125_v35  ;;  %v3133_v6 = vpop.f32.mrb[54].mxu1  ;;  %v704_v32 = vadd.f32 %v4737_v61, %v703_v62 }
 0x156   :  { %5728 = vst [vmem:[#allocation6_spill] sm:$0xff] %v4763_v56  ;;  %v4767_v10 = vpop.eup %3656  ;;  %3676 = vtanh.f32 %v701_v39  ;;  %3211 = vmatmul.mubr.bf16.gmra.mrb[116].mxu1 %v1126_v23  ;;  %v927_v42 = vpop.f32.mrb[55].mxu1  ;;  %v936_v9 = vadd.f32 %v4737_v61, %v3133_v6 }
 0x157   :  { %v3659_v7 = vpop.eup %3658  ;;  %3678 = vtanh.f32 %v712_v0  ;;  %v928_v39 = vadd.f32 %v4737_v61, %v927_v42  ;;  %v3136_v12 = vpop.f32.mrb[56].mxu1 }
 0x158   :  { %v3661_v37 = vpop.eup %3660  ;;  %3680 = vtanh.f32 %v704_v32  ;;  %v949_v6 = vadd.f32 %v4737_v61, %v3136_v12  ;;  %v940_v35 = vpop.f32.mrb[57].mxu1 }
 0x159   :  { %v3663_v40 = vpop.eup %3662  ;;  %3682 = vtanh.f32 %v933_v49  ;;  %v941_v32 = vadd.f32 %v4737_v61, %v940_v35  ;;  %v3137_v49 = vpop.f32.mrb[58].mxu1 }
 0x15a   :  { %v3665_v23 = vpop.eup %3664  ;;  %v1128_v62 = vpack.c.bf16 %v3663_v40, %v3659_v7  ;;  %3684 = vtanh.f32 %v925_v33  ;;  %v952_v40 = vadd.f32 %v4737_v61, %v3137_v49  ;;  %v943_v33 = vpop.f32.mrb[59].mxu1 }
 0x15b   :  { %v4777_v52 = vpop.eup %3666  ;;  %v1127_v24 = vpack.c.bf16 %v3665_v23, %v3661_v37  ;;  %3686 = vtanh.f32 %v936_v9  ;;  %v944_v12 = vadd.f32 %v4737_v61, %v943_v33  ;;  %v3140_v49 = vpop.f32.mrb[60].mxu1 }
 0x15c   :  { %5729 = vst [vmem:[#allocation7_spill] sm:$0xff] %v4777_v52  ;;  %v4779_v0 = vpop.eup %3668  ;;  %3688 = vtanh.f32 %v928_v39  ;;  %v965_v7 = vadd.f32 %v4737_v61, %v3140_v49 }
 0x15d   :  { %v4782_v3 = vpop.eup %3670  ;;  %3214 = vmatprep.mubr.bf16.mxu1 %v1127_v24  ;;  %3690 = vtanh.f32 %v949_v6 }
 0x15e   :  { %v4785_v42 = vpop.eup %3672  ;;  %3215 = vmatmul.mubr.bf16.gmra.mrb[120].mxu1 %v1128_v62  ;;  %3692 = vtanh.f32 %v941_v32  ;;  %v956_v32 = vpop.f32.mrb[61].mxu1 }
 0x15f   :  { %v3675_v9 = vpop.eup %3674  ;;  %3694 = vtanh.f32 %v952_v40  ;;  %v957_v33 = vadd.f32 %v4737_v61, %v956_v32  ;;  %v3141_v24 = vpop.f32.mrb[62].mxu1  ;;  %v5732_v32 = vpack.c.bf16 %v4550_v60, %v4543_v51  ;;  %v5735_v51 = vpack.c.bf16 %v4566_v21, %v4560_v11 }
 0x160   :  { %v3677_v37 = vpop.eup %3676  ;;  %3696 = vtanh.f32 %v944_v12  ;;  %v959_v12 = vpop.f32.mrb[63].mxu1  ;;  %v5736_v60 = vpack.c.bf16 %v4593_v1, %v4586_v53  ;;  %v5740_v11 = vpack.c.bf16 %v4636_v30, %v4629_v13  ;;  %v5742_v21 = vpack.c.bf16 %v4656_v25, %v4649_v5 }
 0x161   :  { %v3679_v35 = vpop.eup %3678  ;;  %3698 = vtanh.f32 %v965_v7  ;;  %v5745_v53 = vpack.c.bf16 %v4675_v27, %v4669_v63  ;;  %v5747_v1 = vpack.c.bf16 %v4695_v41, %v4689_v34  ;;  %v5755_v63 = vld [vmem:[#allocation6_spill] sm:$0xff] }
 0x162   :  { %v3681_v39 = vpop.eup %3680  ;;  %v1130_v23 = vpack.c.bf16 %v3679_v35, %v3675_v9  ;;  %v968_v9 = vadd.f32 %v4737_v61, %v3141_v24  ;;  %v5730_v35 = vpack.c.bf16 %v4527_v31, %v4520_v22  ;;  %3700 = vtanh.f32 %v957_v33 }
 0x163   :  { %v4793_v62 = vpop.eup %3682  ;;  %v1129_v6 = vpack.c.bf16 %v3681_v39, %v3677_v37  ;;  %v960_v39 = vadd.f32 %v4737_v61, %v959_v12  ;;  %v5731_v61 = vpack.c.bf16 %v4523_v26, %v4517_v17  ;;  %v5733_v17 = vpack.c.bf16 %v4546_v55, %v4540_v46 }
 0x164   :  { %v4795_v56 = vpop.eup %3684  ;;  %3702 = vtanh.f32 %v968_v9  ;;  %v5734_v26 = vpack.c.bf16 %v4570_v28, %v4563_v16  ;;  %v5738_v46 = vpack.c.bf16 %v4613_v43, %v4606_v29  ;;  %v5739_v55 = vpack.c.bf16 %v4609_v36, %v4603_v20  ;;  %v5751_v43 = vld [vmem:[#allocation4_spill] sm:$0xff] }
 0x165   :  { %v4798_v52 = vpop.eup %3686  ;;  %3218 = vmatprep.mubr.bf16.mxu1 %v1129_v6  ;;  %3704 = vtanh.f32 %v960_v39  ;;  %v5741_v16 = vpack.c.bf16 %v4632_v19, %v4626_v4  ;;  %v5743_v28 = vpack.c.bf16 %v4652_v14, %v4646_v59  ;;  %v5748_v20 = vpack.c.bf16 %v4719_v48, %v4712_v54  ;;  %v5752_v4 = vld [vmem:[#allocation3_spill] sm:$0xff]  ;;  %v4905_v54 = vld [vmem:[%s5717_s4] ss:$0 sm:$0xff] }
 0x166   :  { %v4801_v40 = vpop.eup %3688  ;;  %3219 = vmatmul.mubr.bf16.gmra.mrb[124].mxu1 %v1130_v23  ;;  %v1158_v37 = vpack.c.bf16 %v4798_v52, %v4793_v62  ;;  %v5749_v29 = vpack.c.bf16 %v4715_v18, %v4709_v44  ;;  %v5750_v36 = vpack.c.bf16 %v4747_v2, %v4740_v57  ;;  %v5753_v13 = vpack.c.bf16 %v5751_v43, %v5752_v4 }
 0x167   :  { %3222 = vmatprep.mubr.bf16.mxu1 %v5730_v35  ;;  %v1157_v6 = vpack.c.bf16 %v4801_v40, %v4795_v56  ;;  %v4812_v49 = vpop.eup %3690  ;;  %v5754_v19 = vpack.c.bf16 %v4767_v10, %v4760_v38 }
 0x168   :  { %v4814_v7 = vpop.eup %3692 }
 0x169   :  { %v4816_v24 = vpop.eup %3694 }
 0x16a   :  { %v4818_v23 = vpop.eup %3696 }
 0x16b   :  { %v1159_v31 = vpack.c.bf16 %v4818_v23, %v4814_v7  ;;  %v4830_v33 = vpop.eup %3698  ;;  %v5761_v23 = vpack.c.bf16 %v4816_v24, %v4812_v49 }
 0x16c   :  { %v4832_v9 = vpop.eup %3700 }
 0x16e   :  { %3223 = vmatmul.mubr.bf16.gmra.mrb[128].mxu1 %v5731_v61  ;;  %v4834_v12 = vpop.eup %3702  ;;  %v5737_v61 = vpack.c.bf16 %v4589_v58, %v4583_v47  ;;  %v5744_v47 = vpack.c.bf16 %v4679_v50, %v4672_v15  ;;  %v5746_v58 = vpack.c.bf16 %v4699_v8, %v4692_v45  ;;  %v5756_v15 = vld [vmem:[#allocation5_spill] sm:$0xff]  ;;  %v5758_v50 = vpack.c.bf16 %v4785_v42, %v4779_v0 }
 0x16f   :  { %3226 = vmatprep.mubr.bf16.mxu1 %v5732_v32  ;;  %v4836_v35 = vpop.eup %3704  ;;  %v1162_v39 = vpack.c.bf16 %v4834_v12, %v4830_v33  ;;  %v5757_v27 = vpack.c.bf16 %v5755_v63, %v5756_v15 }
 0x170   :  { %v1161_v22 = vpack.c.bf16 %v4836_v35, %v4832_v9 }
 0x176   :  { %3227 = vmatmul.mubr.bf16.gmra.mrb[132].mxu1 %v5733_v17  ;;  %v5759_v17 = vld [vmem:[#allocation7_spill] sm:$0xff] }
 0x177   :  { %3230 = vmatprep.mubr.bf16.mxu1 %v5734_v26  ;;  %v5760_v0 = vpack.c.bf16 %v4782_v3, %v5759_v17 }
 0x17e   :  { %3231 = vmatmul.mubr.bf16.gmra.mrb[136].mxu1 %v5735_v51 }
 0x17f   :  { %3234 = vmatprep.mubr.bf16.mxu1 %v5736_v60 }
 0x186   :  { %3235 = vmatmul.mubr.bf16.gmra.mrb[140].mxu1 %v5737_v61 }
 0x187   :  { %3238 = vmatprep.mubr.bf16.mxu1 %v5738_v46 }
 0x18e   :  { %3239 = vmatmul.mubr.bf16.gmra.mrb[144].mxu1 %v5739_v55 }
 0x18f   :  { %3242 = vmatprep.mubr.bf16.mxu1 %v5740_v11 }
 0x196   :  { %3243 = vmatmul.mubr.bf16.gmra.mrb[148].mxu1 %v5741_v16 }
 0x197   :  { %3246 = vmatprep.mubr.bf16.mxu1 %v5742_v21 }
 0x19e   :  { %3247 = vmatmul.mubr.bf16.gmra.mrb[152].mxu1 %v5743_v28 }
 0x19f   :  { %3250 = vmatprep.mubr.bf16.mxu1 %v5744_v47 }
 0x1a6   :  { %3251 = vmatmul.mubr.bf16.gmra.mrb[156].mxu1 %v5745_v53 }
 0x1a7   :  { %3254 = vmatprep.mubr.bf16.mxu1 %v5746_v58 }
 0x1ae   :  { %3255 = vmatmul.mubr.bf16.gmra.mrb[160].mxu1 %v5747_v1 }
 0x1af   :  { %3258 = vmatprep.mubr.bf16.mxu1 %v5748_v20 }
 0x1b6   :  { %3259 = vmatmul.mubr.bf16.gmra.mrb[164].mxu1 %v5749_v29 }
 0x1b7   :  { %3262 = vmatprep.mubr.bf16.mxu1 %v5750_v36 }
 0x1be   :  { %3263 = vmatmul.mubr.bf16.gmra.mrb[168].mxu1 %v5753_v13 }
 0x1bf   :  { %3266 = vmatprep.mubr.bf16.mxu1 %v5754_v19 }
 0x1c0   :  { %v3160_v30 = vpop.f32.mrb[64].mxu1 }
 0x1c1   :  { %v1277_v44 = vadd.f32 %v3160_v30, %v4905_v54  ;;  %v1268_v59 = vpop.f32.mrb[65].mxu1 }
 0x1c2   :  { %v1269_v5 = vadd.f32 %v4905_v54, %v1268_v59  ;;  %v3161_v14 = vpop.f32.mrb[66].mxu1 }
 0x1c3   :  { %3706 = vtanh.f32 %v1277_v44  ;;  %v1280_v25 = vadd.f32 %v3161_v14, %v4905_v54  ;;  %v1271_v45 = vpop.f32.mrb[67].mxu1 }
 0x1c4   :  { %3708 = vtanh.f32 %v1269_v5  ;;  %v1272_v38 = vadd.f32 %v4905_v54, %v1271_v45 }
 0x1c5   :  { %3710 = vtanh.f32 %v1280_v25 }
 0x1c6   :  { %3267 = vmatmul.mubr.bf16.gmra.mrb[172].mxu1 %v5757_v27  ;;  %3712 = vtanh.f32 %v1272_v38 }
 0x1c7   :  { %3270 = vmatprep.mubr.bf16.mxu1 %v5758_v50 }
 0x1c8   :  { %v3164_v34 = vpop.f32.mrb[68].mxu1 }
 0x1c9   :  { %v1293_v41 = vadd.f32 %v3164_v34, %v4905_v54  ;;  %v1284_v8 = vpop.f32.mrb[69].mxu1 }
 0x1ca   :  { %v1285_v18 = vadd.f32 %v4905_v54, %v1284_v8  ;;  %v3165_v48 = vpop.f32.mrb[70].mxu1 }
 0x1cb   :  { %3714 = vtanh.f32 %v1293_v41  ;;  %v1296_v57 = vadd.f32 %v3165_v48, %v4905_v54  ;;  %v1287_v2 = vpop.f32.mrb[71].mxu1 }
 0x1cc   :  { %3716 = vtanh.f32 %v1285_v18  ;;  %v1288_v10 = vadd.f32 %v4905_v54, %v1287_v2 }
 0x1cd   :  { %v3707_v32 = vpop.eup %3706  ;;  %3718 = vtanh.f32 %v1296_v57 }
 0x1ce   :  { %3271 = vmatmul.mubr.bf16.gmra.mrb[176].mxu1 %v5760_v0  ;;  %v3709_v42 = vpop.eup %3708  ;;  %3720 = vtanh.f32 %v1288_v10 }
 0x1cf   :  { %3274 = vmatprep.mubr.bf16.mxu1 %v1157_v6  ;;  %v3711_v26 = vpop.eup %3710 }
 0x1d0   :  { %v3713_v51 = vpop.eup %3712  ;;  %v3168_v60 = vpop.f32.mrb[72].mxu1  ;;  %v1908_v61 = vpack.c.bf16 %v3711_v26, %v3707_v32 }
 0x1d1   :  { %v1309_v46 = vadd.f32 %v3168_v60, %v4905_v54  ;;  %v1300_v55 = vpop.f32.mrb[73].mxu1  ;;  %v1907_v11 = vpack.c.bf16 %v3713_v51, %v3709_v42 }
 0x1d2   :  { %v1301_v16 = vadd.f32 %v4905_v54, %v1300_v55  ;;  %v3169_v21 = vpop.f32.mrb[74].mxu1 }
 0x1d3   :  { %3722 = vtanh.f32 %v1309_v46  ;;  %v1312_v3 = vadd.f32 %v3169_v21, %v4905_v54  ;;  %v1303_v28 = vpop.f32.mrb[75].mxu1  ;;  %3302 = vmatprep.mubr.bf16.mxu0 %v1907_v11 }
 0x1d4   :  { %3724 = vtanh.f32 %v1301_v16  ;;  %v1304_v56 = vadd.f32 %v4905_v54, %v1303_v28  ;;  %3303 = vmatmul.mubr.bf16.vlgmr.msra.gmra.mrb[64].mxu0 %v1908_v61 }
 0x1d5   :  { %v3715_v40 = vpop.eup %3714  ;;  %3726 = vtanh.f32 %v1312_v3 }
 0x1d6   :  { %3275 = vmatmul.mubr.bf16.gmra.mrb[180].mxu1 %v1158_v37  ;;  %v3717_v6 = vpop.eup %3716  ;;  %3728 = vtanh.f32 %v1304_v56 }
 0x1d7   :  { %3278 = vmatprep.mubr.bf16.mxu1 %v1159_v31  ;;  %v3719_v47 = vpop.eup %3718 }
 0x1d8   :  { %v3721_v53 = vpop.eup %3720  ;;  %v3172_v58 = vpop.f32.mrb[76].mxu1  ;;  %v1910_v1 = vpack.c.bf16 %v3719_v47, %v3715_v40 }
 0x1d9   :  { %v1325_v20 = vadd.f32 %v3172_v58, %v4905_v54  ;;  %v1316_v29 = vpop.f32.mrb[77].mxu1  ;;  %v1909_v36 = vpack.c.bf16 %v3721_v53, %v3717_v6 }
 0x1da   :  { %v1317_v43 = vadd.f32 %v4905_v54, %v1316_v29  ;;  %v3173_v4 = vpop.f32.mrb[78].mxu1 }
 0x1db   :  { %3730 = vtanh.f32 %v1325_v20  ;;  %v1328_v52 = vadd.f32 %v3173_v4, %v4905_v54  ;;  %v1319_v62 = vpop.f32.mrb[79].mxu1  ;;  %3306 = vmatprep.mubr.bf16.mxu0 %v1909_v36 }
 0x1dc   :  { %3732 = vtanh.f32 %v1317_v43  ;;  %v1320_v37 = vadd.f32 %v4905_v54, %v1319_v62  ;;  %3307 = vmatmul.mubr.bf16.gmra.mrb[68].mxu0 %v1910_v1 }
 0x1dd   :  { %v3723_v7 = vpop.eup %3722  ;;  %3734 = vtanh.f32 %v1328_v52 }
 0x1de   :  { %3279 = vmatmul.mubr.bf16.gmra.mrb[184].mxu1 %v5761_v23  ;;  %v3725_v31 = vpop.eup %3724  ;;  %3736 = vtanh.f32 %v1320_v37 }
 0x1df   :  { %3282 = vmatprep.mubr.bf16.mxu1 %v1161_v22  ;;  %v3727_v13 = vpop.eup %3726 }
 0x1e0   :  { %v3729_v19 = vpop.eup %3728  ;;  %v3176_v30 = vpop.f32.mrb[80].mxu1  ;;  %v1912_v44 = vpack.c.bf16 %v3727_v13, %v3723_v7 }
 0x1e1   :  { %v1341_v59 = vadd.f32 %v3176_v30, %v4905_v54  ;;  %v1332_v5 = vpop.f32.mrb[81].mxu1  ;;  %v1911_v14 = vpack.c.bf16 %v3729_v19, %v3725_v31 }
 0x1e2   :  { %v1333_v25 = vadd.f32 %v4905_v54, %v1332_v5  ;;  %v3177_v45 = vpop.f32.mrb[82].mxu1 }
 0x1e3   :  { %3738 = vtanh.f32 %v1341_v59  ;;  %v1344_v49 = vadd.f32 %v3177_v45, %v4905_v54  ;;  %v1335_v24 = vpop.f32.mrb[83].mxu1  ;;  %3310 = vmatprep.mubr.bf16.mxu0 %v1911_v14 }
 0x1e4   :  { %3740 = vtanh.f32 %v1333_v25  ;;  %v1336_v9 = vadd.f32 %v4905_v54, %v1335_v24  ;;  %3311 = vmatmul.mubr.bf16.gmra.mrb[72].mxu0 %v1912_v44 }
 0x1e5   :  { %v3731_v22 = vpop.eup %3730  ;;  %3742 = vtanh.f32 %v1344_v49 }
 0x1e6   :  { %3283 = vmatmul.mubr.bf16.gmra.mrb[188].mxu1 %v1162_v39  ;;  %v3733_v35 = vpop.eup %3732  ;;  %3744 = vtanh.f32 %v1336_v9 }
 0x1e7   :  { %v3735_v38 = vpop.eup %3734 }
 0x1e8   :  { %v3737_v63 = vpop.eup %3736  ;;  %v3180_v15 = vpop.f32.mrb[84].mxu1  ;;  %v1914_v27 = vpack.c.bf16 %v3735_v38, %v3731_v22 }
 0x1e9   :  { %v1357_v50 = vadd.f32 %v3180_v15, %v4905_v54  ;;  %v1348_v34 = vpop.f32.mrb[85].mxu1  ;;  %v1913_v41 = vpack.c.bf16 %v3737_v63, %v3733_v35 }
 0x1ea   :  { %v1349_v8 = vadd.f32 %v4905_v54, %v1348_v34  ;;  %v3181_v18 = vpop.f32.mrb[86].mxu1 }
 0x1eb   :  { %3746 = vtanh.f32 %v1357_v50  ;;  %v1360_v48 = vadd.f32 %v3181_v18, %v4905_v54  ;;  %v1351_v57 = vpop.f32.mrb[87].mxu1  ;;  %3314 = vmatprep.mubr.bf16.mxu0 %v1913_v41 }
 0x1ec   :  { %3748 = vtanh.f32 %v1349_v8  ;;  %v1352_v33 = vadd.f32 %v4905_v54, %v1351_v57  ;;  %3315 = vmatmul.mubr.bf16.gmra.mrb[76].mxu0 %v1914_v27 }
 0x1ed   :  { %v3739_v12 = vpop.eup %3738  ;;  %3750 = vtanh.f32 %v1360_v48 }
 0x1ee   :  { %v3741_v39 = vpop.eup %3740  ;;  %3752 = vtanh.f32 %v1352_v33 }
 0x1ef   :  { %v3743_v2 = vpop.eup %3742 }
 0x1f0   :  { %v3745_v10 = vpop.eup %3744  ;;  %v3184_v32 = vpop.f32.mrb[88].mxu1  ;;  %v1916_v17 = vpack.c.bf16 %v3743_v2, %v3739_v12 }
 0x1f1   :  { %v1373_v0 = vadd.f32 %v3184_v32, %v4905_v54  ;;  %v1364_v42 = vpop.f32.mrb[89].mxu1  ;;  %v1915_v26 = vpack.c.bf16 %v3745_v10, %v3741_v39 }
 0x1f2   :  { %v1365_v51 = vadd.f32 %v4905_v54, %v1364_v42  ;;  %v3185_v60 = vpop.f32.mrb[90].mxu1 }
 0x1f3   :  { %3754 = vtanh.f32 %v1373_v0  ;;  %v1376_v61 = vadd.f32 %v3185_v60, %v4905_v54  ;;  %v1367_v46 = vpop.f32.mrb[91].mxu1  ;;  %3318 = vmatprep.mubr.bf16.mxu0 %v1915_v26 }
 0x1f4   :  { %3756 = vtanh.f32 %v1365_v51  ;;  %v1368_v55 = vadd.f32 %v4905_v54, %v1367_v46  ;;  %3319 = vmatmul.mubr.bf16.gmra.mrb[80].mxu0 %v1916_v17 }
 0x1f5   :  { %v3747_v11 = vpop.eup %3746  ;;  %3758 = vtanh.f32 %v1376_v61 }
 0x1f6   :  { %v3749_v16 = vpop.eup %3748  ;;  %3760 = vtanh.f32 %v1368_v55 }
 0x1f7   :  { %v3751_v21 = vpop.eup %3750 }
 0x1f8   :  { %v3753_v3 = vpop.eup %3752  ;;  %v3188_v28 = vpop.f32.mrb[92].mxu1  ;;  %v1918_v56 = vpack.c.bf16 %v3751_v21, %v3747_v11 }
 0x1f9   :  { %v1389_v40 = vadd.f32 %v3188_v28, %v4905_v54  ;;  %v1380_v6 = vpop.f32.mrb[93].mxu1  ;;  %v1917_v47 = vpack.c.bf16 %v3753_v3, %v3749_v16 }
 0x1fa   :  { %v1381_v53 = vadd.f32 %v4905_v54, %v1380_v6  ;;  %v3189_v58 = vpop.f32.mrb[94].mxu1 }
 0x1fb   :  { %3762 = vtanh.f32 %v1389_v40  ;;  %v1392_v1 = vadd.f32 %v3189_v58, %v4905_v54  ;;  %v1383_v20 = vpop.f32.mrb[95].mxu1  ;;  %3322 = vmatprep.mubr.bf16.mxu0 %v1917_v47  ;;  %v12_v58 = vstv %s5718_s6 }
 0x1fc   :  { %3764 = vtanh.f32 %v1381_v53  ;;  %v1384_v29 = vadd.f32 %v4905_v54, %v1383_v20  ;;  %3323 = vmatmul.mubr.bf16.gmra.mrb[84].mxu0 %v1918_v56  ;;  %13 = vst [vmem:[#allocation2] sm:$0x1] %v12_v58 }
 0x1fd   :  { %v3755_v36 = vpop.eup %3754  ;;  %3766 = vtanh.f32 %v1392_v1 }
 0x1fe   :  { %v3757_v43 = vpop.eup %3756  ;;  %3768 = vtanh.f32 %v1384_v29 }
 0x1ff   :  { %v3759_v4 = vpop.eup %3758 }
 0x200   :  { %v3761_v52 = vpop.eup %3760  ;;  %v3192_v62 = vpop.f32.mrb[96].mxu1  ;;  %v1920_v37 = vpack.c.bf16 %v3759_v4, %v3755_v36 }
 0x201   :  { %v1405_v7 = vadd.f32 %v3192_v62, %v4905_v54  ;;  %v1396_v23 = vpop.f32.mrb[97].mxu1  ;;  %v1919_v31 = vpack.c.bf16 %v3761_v52, %v3757_v43 }
 0x202   :  { %v1397_v13 = vadd.f32 %v4905_v54, %v1396_v23  ;;  %v3193_v19 = vpop.f32.mrb[98].mxu1 }
 0x203   :  { %3770 = vtanh.f32 %v1405_v7  ;;  %v1408_v30 = vadd.f32 %v3193_v19, %v4905_v54  ;;  %v1399_v44 = vpop.f32.mrb[99].mxu1  ;;  %3326 = vmatprep.mubr.bf16.mxu0 %v1919_v31 }
 0x204   :  { %3772 = vtanh.f32 %v1397_v13  ;;  %v1400_v59 = vadd.f32 %v4905_v54, %v1399_v44  ;;  %3327 = vmatmul.mubr.bf16.gmra.mrb[88].mxu0 %v1920_v37 }
 0x205   :  { %v3763_v5 = vpop.eup %3762  ;;  %3774 = vtanh.f32 %v1408_v30 }
 0x206   :  { %v3765_v14 = vpop.eup %3764  ;;  %3776 = vtanh.f32 %v1400_v59 }
 0x207   :  { %v3767_v25 = vpop.eup %3766 }
 0x208   :  { %v3769_v45 = vpop.eup %3768  ;;  %v3196_v49 = vpop.f32.mrb[100].mxu1  ;;  %v1922_v24 = vpack.c.bf16 %v3767_v25, %v3763_v5 }
 0x209   :  { %v1421_v9 = vadd.f32 %v3196_v49, %v4905_v54  ;;  %v1412_v22 = vpop.f32.mrb[101].mxu1  ;;  %v1921_v35 = vpack.c.bf16 %v3769_v45, %v3765_v14 }
 0x20a   :  { %v1413_v38 = vadd.f32 %v4905_v54, %v1412_v22  ;;  %v3197_v63 = vpop.f32.mrb[102].mxu1 }
 0x20b   :  { %3778 = vtanh.f32 %v1421_v9  ;;  %v1424_v15 = vadd.f32 %v3197_v63, %v4905_v54  ;;  %v1415_v27 = vpop.f32.mrb[103].mxu1  ;;  %3330 = vmatprep.mubr.bf16.mxu0 %v1921_v35 }
 0x20c   :  { %3780 = vtanh.f32 %v1413_v38  ;;  %v1416_v50 = vadd.f32 %v4905_v54, %v1415_v27  ;;  %3331 = vmatmul.mubr.bf16.gmra.mrb[92].mxu0 %v1922_v24 }
 0x20d   :  { %v3771_v34 = vpop.eup %3770  ;;  %3782 = vtanh.f32 %v1424_v15 }
 0x20e   :  { %v3773_v41 = vpop.eup %3772  ;;  %3784 = vtanh.f32 %v1416_v50 }
 0x20f   :  { %v3775_v8 = vpop.eup %3774 }
 0x210   :  { %v3777_v18 = vpop.eup %3776  ;;  %v3200_v48 = vpop.f32.mrb[104].mxu1  ;;  %v1924_v57 = vpack.c.bf16 %v3775_v8, %v3771_v34 }
 0x211   :  { %v1437_v33 = vadd.f32 %v3200_v48, %v4905_v54  ;;  %v1428_v12 = vpop.f32.mrb[105].mxu1  ;;  %v1923_v39 = vpack.c.bf16 %v3777_v18, %v3773_v41 }
 0x212   :  { %v1429_v2 = vadd.f32 %v4905_v54, %v1428_v12  ;;  %v3201_v10 = vpop.f32.mrb[106].mxu1 }
 0x213   :  { %3786 = vtanh.f32 %v1437_v33  ;;  %v1440_v32 = vadd.f32 %v3201_v10, %v4905_v54  ;;  %v1431_v17 = vpop.f32.mrb[107].mxu1  ;;  %3334 = vmatprep.mubr.bf16.mxu0 %v1923_v39 }
 0x214   :  { %3788 = vtanh.f32 %v1429_v2  ;;  %v1432_v0 = vadd.f32 %v4905_v54, %v1431_v17  ;;  %3335 = vmatmul.mubr.bf16.gmra.mrb[96].mxu0 %v1924_v57 }
 0x215   :  { %v3779_v42 = vpop.eup %3778  ;;  %3790 = vtanh.f32 %v1440_v32 }
 0x216   :  { %v3781_v26 = vpop.eup %3780  ;;  %3792 = vtanh.f32 %v1432_v0 }
 0x217   :  { %v3783_v51 = vpop.eup %3782 }
 0x218   :  { %v3785_v60 = vpop.eup %3784  ;;  %v3204_v61 = vpop.f32.mrb[108].mxu1  ;;  %v1926_v46 = vpack.c.bf16 %v3783_v51, %v3779_v42 }
 0x219   :  { %v1453_v55 = vadd.f32 %v3204_v61, %v4905_v54  ;;  %v1444_v11 = vpop.f32.mrb[109].mxu1  ;;  %v1925_v16 = vpack.c.bf16 %v3785_v60, %v3781_v26 }
 0x21a   :  { %v1445_v21 = vadd.f32 %v4905_v54, %v1444_v11  ;;  %v3205_v3 = vpop.f32.mrb[110].mxu1 }
 0x21b   :  { %3794 = vtanh.f32 %v1453_v55  ;;  %v1456_v28 = vadd.f32 %v3205_v3, %v4905_v54  ;;  %v1447_v56 = vpop.f32.mrb[111].mxu1  ;;  %3338 = vmatprep.mubr.bf16.mxu0 %v1925_v16 }
 0x21c   :  { %3796 = vtanh.f32 %v1445_v21  ;;  %v1448_v40 = vadd.f32 %v4905_v54, %v1447_v56  ;;  %3339 = vmatmul.mubr.bf16.gmra.mrb[100].mxu0 %v1926_v46 }
 0x21d   :  { %v3787_v6 = vpop.eup %3786  ;;  %3798 = vtanh.f32 %v1456_v28 }
 0x21e   :  { %v3789_v47 = vpop.eup %3788  ;;  %3800 = vtanh.f32 %v1448_v40 }
 0x21f   :  { %v3791_v53 = vpop.eup %3790 }
 0x220   :  { %v3793_v1 = vpop.eup %3792  ;;  %v3208_v20 = vpop.f32.mrb[112].mxu1  ;;  %v1928_v29 = vpack.c.bf16 %v3791_v53, %v3787_v6 }
 0x221   :  { %v1469_v36 = vadd.f32 %v3208_v20, %v4905_v54  ;;  %v1460_v43 = vpop.f32.mrb[113].mxu1  ;;  %v1927_v4 = vpack.c.bf16 %v3793_v1, %v3789_v47 }
 0x222   :  { %v1461_v52 = vadd.f32 %v4905_v54, %v1460_v43  ;;  %v3209_v62 = vpop.f32.mrb[114].mxu1 }
 0x223   :  { %3802 = vtanh.f32 %v1469_v36  ;;  %v1472_v37 = vadd.f32 %v3209_v62, %v4905_v54  ;;  %v1463_v7 = vpop.f32.mrb[115].mxu1  ;;  %3342 = vmatprep.mubr.bf16.mxu0 %v1927_v4 }
 0x224   :  { %3804 = vtanh.f32 %v1461_v52  ;;  %v1464_v23 = vadd.f32 %v4905_v54, %v1463_v7  ;;  %3343 = vmatmul.mubr.bf16.gmra.mrb[104].mxu0 %v1928_v29 }
 0x225   :  { %v3795_v31 = vpop.eup %3794  ;;  %3806 = vtanh.f32 %v1472_v37 }
 0x226   :  { %v3797_v13 = vpop.eup %3796  ;;  %3808 = vtanh.f32 %v1464_v23 }
 0x227   :  { %v3799_v19 = vpop.eup %3798 }
 0x228   :  { %v3801_v30 = vpop.eup %3800  ;;  %v1930_v59 = vpack.c.bf16 %v3799_v19, %v3795_v31 }
 0x229   :  { %v3212_v44 = vpop.f32.mrb[116].mxu1  ;;  %v1929_v25 = vpack.c.bf16 %v3801_v30, %v3797_v13 }
 0x22a   :  { %v1485_v5 = vadd.f32 %v3212_v44, %v4905_v54  ;;  %v1476_v14 = vpop.f32.mrb[117].mxu1 }
 0x22b   :  { %v1477_v45 = vadd.f32 %v4905_v54, %v1476_v14  ;;  %v3213_v49 = vpop.f32.mrb[118].mxu1  ;;  %3346 = vmatprep.mubr.bf16.mxu0 %v1929_v25 }
 0x22c   :  { %3810 = vtanh.f32 %v1485_v5  ;;  %v1488_v24 = vadd.f32 %v3213_v49, %v4905_v54  ;;  %v1479_v9 = vpop.f32.mrb[119].mxu1  ;;  %3347 = vmatmul.mubr.bf16.gmra.mrb[108].mxu0 %v1930_v59 }
 0x22d   :  { %3812 = vtanh.f32 %v1477_v45  ;;  %v1480_v22 = vadd.f32 %v4905_v54, %v1479_v9  ;;  %v3803_v35 = vpop.eup %3802 }
 0x22e   :  { %3814 = vtanh.f32 %v1488_v24  ;;  %v3805_v38 = vpop.eup %3804 }
 0x22f   :  { %3816 = vtanh.f32 %v1480_v22  ;;  %v3807_v63 = vpop.eup %3806 }
 0x230   :  { %v3809_v15 = vpop.eup %3808  ;;  %v1932_v50 = vpack.c.bf16 %v3807_v63, %v3803_v35 }
 0x231   :  { %v3216_v27 = vpop.f32.mrb[120].mxu1  ;;  %v1931_v8 = vpack.c.bf16 %v3809_v15, %v3805_v38 }
 0x232   :  { %v1501_v34 = vadd.f32 %v3216_v27, %v4905_v54  ;;  %v1492_v41 = vpop.f32.mrb[121].mxu1 }
 0x233   :  { %v1493_v18 = vadd.f32 %v4905_v54, %v1492_v41  ;;  %v3217_v48 = vpop.f32.mrb[122].mxu1  ;;  %3350 = vmatprep.mubr.bf16.mxu0 %v1931_v8 }
 0x234   :  { %3818 = vtanh.f32 %v1501_v34  ;;  %v1504_v57 = vadd.f32 %v3217_v48, %v4905_v54  ;;  %v1495_v33 = vpop.f32.mrb[123].mxu1  ;;  %3351 = vmatmul.mubr.bf16.gmra.mrb[112].mxu0 %v1932_v50 }
 0x235   :  { %3820 = vtanh.f32 %v1493_v18  ;;  %v1496_v12 = vadd.f32 %v4905_v54, %v1495_v33 }
 0x236   :  { %v3811_v39 = vpop.eup %3810  ;;  %3822 = vtanh.f32 %v1504_v57 }
 0x237   :  { %v3813_v2 = vpop.eup %3812  ;;  %3824 = vtanh.f32 %v1496_v12 }
 0x238   :  { %v3815_v10 = vpop.eup %3814 }
 0x239   :  { %v3817_v32 = vpop.eup %3816  ;;  %v3220_v17 = vpop.f32.mrb[124].mxu1  ;;  %v1934_v0 = vpack.c.bf16 %v3815_v10, %v3811_v39 }
 0x23a   :  { %v1517_v42 = vadd.f32 %v3220_v17, %v4905_v54  ;;  %v1508_v26 = vpop.f32.mrb[125].mxu1  ;;  %v1933_v51 = vpack.c.bf16 %v3817_v32, %v3813_v2 }
 0x23b   :  { %v1509_v60 = vadd.f32 %v4905_v54, %v1508_v26  ;;  %v3221_v61 = vpop.f32.mrb[126].mxu1 }
 0x23c   :  { %3826 = vtanh.f32 %v1517_v42  ;;  %v1520_v46 = vadd.f32 %v3221_v61, %v4905_v54  ;;  %v1511_v55 = vpop.f32.mrb[127].mxu1  ;;  %3354 = vmatprep.mubr.bf16.mxu0 %v1933_v51 }
 0x23d   :  { %3828 = vtanh.f32 %v1509_v60  ;;  %v1512_v11 = vadd.f32 %v4905_v54, %v1511_v55  ;;  %3355 = vmatmul.mubr.bf16.gmra.mrb[116].mxu0 %v1934_v0 }
 0x23e   :  { %v3819_v16 = vpop.eup %3818  ;;  %3830 = vtanh.f32 %v1520_v46 }
 0x23f   :  { %v3821_v21 = vpop.eup %3820  ;;  %3832 = vtanh.f32 %v1512_v11 }
 0x240   :  { %v3823_v3 = vpop.eup %3822 }
 0x241   :  { %v3825_v28 = vpop.eup %3824  ;;  %v3224_v56 = vpop.f32.mrb[128].mxu1  ;;  %v1936_v40 = vpack.c.bf16 %v3823_v3, %v3819_v16 }
 0x242   :  { %v1533_v6 = vadd.f32 %v3224_v56, %v4905_v54  ;;  %v1524_v47 = vpop.f32.mrb[129].mxu1  ;;  %v1935_v53 = vpack.c.bf16 %v3825_v28, %v3821_v21 }
 0x243   :  { %v1525_v58 = vadd.f32 %v4905_v54, %v1524_v47  ;;  %v3225_v1 = vpop.f32.mrb[130].mxu1 }
 0x244   :  { %3834 = vtanh.f32 %v1533_v6  ;;  %v1536_v20 = vadd.f32 %v3225_v1, %v4905_v54  ;;  %v1527_v29 = vpop.f32.mrb[131].mxu1  ;;  %3358 = vmatprep.mubr.bf16.mxu0 %v1935_v53 }
 0x245   :  { %3836 = vtanh.f32 %v1525_v58  ;;  %v1528_v36 = vadd.f32 %v4905_v54, %v1527_v29  ;;  %3359 = vmatmul.mubr.bf16.gmra.mrb[120].mxu0 %v1936_v40 }
 0x246   :  { %v3827_v43 = vpop.eup %3826  ;;  %3838 = vtanh.f32 %v1536_v20 }
 0x247   :  { %v3829_v4 = vpop.eup %3828  ;;  %3840 = vtanh.f32 %v1528_v36 }
 0x248   :  { %v3831_v52 = vpop.eup %3830 }
 0x249   :  { %v3833_v62 = vpop.eup %3832  ;;  %v3228_v37 = vpop.f32.mrb[132].mxu1  ;;  %v1938_v7 = vpack.c.bf16 %v3831_v52, %v3827_v43 }
 0x24a   :  { %v1549_v23 = vadd.f32 %v3228_v37, %v4905_v54  ;;  %v1540_v31 = vpop.f32.mrb[133].mxu1  ;;  %v1937_v13 = vpack.c.bf16 %v3833_v62, %v3829_v4 }
 0x24b   :  { %v1541_v19 = vadd.f32 %v4905_v54, %v1540_v31  ;;  %v3229_v30 = vpop.f32.mrb[134].mxu1 }
 0x24c   :  { %3842 = vtanh.f32 %v1549_v23  ;;  %v1552_v44 = vadd.f32 %v3229_v30, %v4905_v54  ;;  %v1543_v59 = vpop.f32.mrb[135].mxu1  ;;  %3362 = vmatprep.mubr.bf16.mxu0 %v1937_v13 }
 0x24d   :  { %3844 = vtanh.f32 %v1541_v19  ;;  %v1544_v5 = vadd.f32 %v4905_v54, %v1543_v59  ;;  %3363 = vmatmul.mubr.bf16.gmra.mrb[124].mxu0 %v1938_v7 }
 0x24e   :  { %v3835_v14 = vpop.eup %3834  ;;  %3846 = vtanh.f32 %v1552_v44 }
 0x24f   :  { %v3837_v25 = vpop.eup %3836  ;;  %3848 = vtanh.f32 %v1544_v5 }
 0x250   :  { %v3839_v45 = vpop.eup %3838 }
 0x251   :  { %v3841_v49 = vpop.eup %3840  ;;  %v3232_v24 = vpop.f32.mrb[136].mxu1  ;;  %v1940_v9 = vpack.c.bf16 %v3839_v45, %v3835_v14 }
 0x252   :  { %v1565_v22 = vadd.f32 %v3232_v24, %v4905_v54  ;;  %v1556_v35 = vpop.f32.mrb[137].mxu1  ;;  %v1939_v38 = vpack.c.bf16 %v3841_v49, %v3837_v25 }
 0x253   :  { %v1557_v63 = vadd.f32 %v4905_v54, %v1556_v35  ;;  %v3233_v15 = vpop.f32.mrb[138].mxu1 }
 0x254   :  { %3850 = vtanh.f32 %v1565_v22  ;;  %v1568_v27 = vadd.f32 %v3233_v15, %v4905_v54  ;;  %v1559_v50 = vpop.f32.mrb[139].mxu1  ;;  %3366 = vmatprep.mubr.bf16.mxu0 %v1939_v38 }
 0x255   :  { %3852 = vtanh.f32 %v1557_v63  ;;  %v1560_v34 = vadd.f32 %v4905_v54, %v1559_v50  ;;  %3367 = vmatmul.mubr.bf16.gmra.mrb[128].mxu0 %v1940_v9 }
 0x256   :  { %v3843_v41 = vpop.eup %3842  ;;  %3854 = vtanh.f32 %v1568_v27 }
 0x257   :  { %v3845_v8 = vpop.eup %3844  ;;  %3856 = vtanh.f32 %v1560_v34 }
 0x258   :  { %v3847_v18 = vpop.eup %3846 }
 0x259   :  { %v3849_v48 = vpop.eup %3848  ;;  %v3236_v57 = vpop.f32.mrb[140].mxu1  ;;  %v1942_v33 = vpack.c.bf16 %v3847_v18, %v3843_v41 }
 0x25a   :  { %v1581_v12 = vadd.f32 %v3236_v57, %v4905_v54  ;;  %v1572_v39 = vpop.f32.mrb[141].mxu1  ;;  %v1941_v2 = vpack.c.bf16 %v3849_v48, %v3845_v8 }
 0x25b   :  { %v1573_v10 = vadd.f32 %v4905_v54, %v1572_v39  ;;  %v3237_v32 = vpop.f32.mrb[142].mxu1 }
 0x25c   :  { %3858 = vtanh.f32 %v1581_v12  ;;  %v1584_v17 = vadd.f32 %v3237_v32, %v4905_v54  ;;  %v1575_v0 = vpop.f32.mrb[143].mxu1  ;;  %3370 = vmatprep.mubr.bf16.mxu0 %v1941_v2 }
 0x25d   :  { %3860 = vtanh.f32 %v1573_v10  ;;  %v1576_v42 = vadd.f32 %v4905_v54, %v1575_v0  ;;  %3371 = vmatmul.mubr.bf16.gmra.mrb[132].mxu0 %v1942_v33 }
 0x25e   :  { %v3851_v26 = vpop.eup %3850  ;;  %3862 = vtanh.f32 %v1584_v17 }
 0x25f   :  { %v3853_v51 = vpop.eup %3852  ;;  %3864 = vtanh.f32 %v1576_v42 }
 0x260   :  { %v3855_v60 = vpop.eup %3854 }
 0x261   :  { %v3857_v61 = vpop.eup %3856  ;;  %v3240_v46 = vpop.f32.mrb[144].mxu1  ;;  %v1944_v55 = vpack.c.bf16 %v3855_v60, %v3851_v26 }
 0x262   :  { %v1597_v11 = vadd.f32 %v3240_v46, %v4905_v54  ;;  %v1588_v16 = vpop.f32.mrb[145].mxu1  ;;  %v1943_v21 = vpack.c.bf16 %v3857_v61, %v3853_v51 }
 0x263   :  { %v1589_v3 = vadd.f32 %v4905_v54, %v1588_v16  ;;  %v3241_v28 = vpop.f32.mrb[146].mxu1 }
 0x264   :  { %3866 = vtanh.f32 %v1597_v11  ;;  %v1600_v56 = vadd.f32 %v3241_v28, %v4905_v54  ;;  %v1591_v40 = vpop.f32.mrb[147].mxu1  ;;  %3374 = vmatprep.mubr.bf16.mxu0 %v1943_v21 }
 0x265   :  { %3868 = vtanh.f32 %v1589_v3  ;;  %v1592_v6 = vadd.f32 %v4905_v54, %v1591_v40  ;;  %3375 = vmatmul.mubr.bf16.gmra.mrb[136].mxu0 %v1944_v55 }
 0x266   :  { %v3859_v47 = vpop.eup %3858  ;;  %3870 = vtanh.f32 %v1600_v56 }
 0x267   :  { %v3861_v53 = vpop.eup %3860  ;;  %3872 = vtanh.f32 %v1592_v6 }
 0x268   :  { %v3863_v58 = vpop.eup %3862 }
 0x269   :  { %v3865_v1 = vpop.eup %3864  ;;  %v3244_v20 = vpop.f32.mrb[148].mxu1  ;;  %v1946_v29 = vpack.c.bf16 %v3863_v58, %v3859_v47 }
 0x26a   :  { %v1613_v36 = vadd.f32 %v3244_v20, %v4905_v54  ;;  %v1604_v43 = vpop.f32.mrb[149].mxu1  ;;  %v1945_v4 = vpack.c.bf16 %v3865_v1, %v3861_v53 }
 0x26b   :  { %v1605_v52 = vadd.f32 %v4905_v54, %v1604_v43  ;;  %v3245_v62 = vpop.f32.mrb[150].mxu1 }
 0x26c   :  { %3874 = vtanh.f32 %v1613_v36  ;;  %v1616_v37 = vadd.f32 %v3245_v62, %v4905_v54  ;;  %v1607_v7 = vpop.f32.mrb[151].mxu1  ;;  %3378 = vmatprep.mubr.bf16.mxu0 %v1945_v4  ;;  %v5043_v36 = vld [vmem:[%s5717_s4] ss:$0 sm:$0xff] }
 0x26d   :  { %3876 = vtanh.f32 %v1605_v52  ;;  %v1608_v23 = vadd.f32 %v4905_v54, %v1607_v7  ;;  %3379 = vmatmul.mubr.bf16.gmra.mrb[140].mxu0 %v1946_v29 }
 0x26e   :  { %v3867_v31 = vpop.eup %3866  ;;  %3878 = vtanh.f32 %v1616_v37 }
 0x26f   :  { %v3869_v13 = vpop.eup %3868  ;;  %3880 = vtanh.f32 %v1608_v23 }
 0x270   :  { %v3871_v19 = vpop.eup %3870 }
 0x271   :  { %v3873_v30 = vpop.eup %3872  ;;  %v3248_v44 = vpop.f32.mrb[152].mxu1  ;;  %v1948_v59 = vpack.c.bf16 %v3871_v19, %v3867_v31 }
 0x272   :  { %v1629_v5 = vadd.f32 %v3248_v44, %v4905_v54  ;;  %v1620_v14 = vpop.f32.mrb[153].mxu1  ;;  %v1947_v25 = vpack.c.bf16 %v3873_v30, %v3869_v13 }
 0x273   :  { %v1621_v45 = vadd.f32 %v4905_v54, %v1620_v14  ;;  %v3249_v49 = vpop.f32.mrb[154].mxu1 }
 0x274   :  { %3882 = vtanh.f32 %v1629_v5  ;;  %v1632_v24 = vadd.f32 %v3249_v49, %v4905_v54  ;;  %v1623_v9 = vpop.f32.mrb[155].mxu1  ;;  %3382 = vmatprep.mubr.bf16.mxu0 %v1947_v25 }
 0x275   :  { %3884 = vtanh.f32 %v1621_v45  ;;  %v1624_v22 = vadd.f32 %v4905_v54, %v1623_v9  ;;  %3383 = vmatmul.mubr.bf16.gmra.mrb[144].mxu0 %v1948_v59 }
 0x276   :  { %v3875_v35 = vpop.eup %3874  ;;  %3886 = vtanh.f32 %v1632_v24 }
 0x277   :  { %v3877_v38 = vpop.eup %3876  ;;  %3888 = vtanh.f32 %v1624_v22 }
 0x278   :  { %v3879_v63 = vpop.eup %3878 }
 0x279   :  { %v3881_v15 = vpop.eup %3880  ;;  %v3252_v27 = vpop.f32.mrb[156].mxu1  ;;  %v1950_v50 = vpack.c.bf16 %v3879_v63, %v3875_v35 }
 0x27a   :  { %v1645_v34 = vadd.f32 %v3252_v27, %v4905_v54  ;;  %v1636_v41 = vpop.f32.mrb[157].mxu1  ;;  %v1949_v8 = vpack.c.bf16 %v3881_v15, %v3877_v38 }
 0x27b   :  { %v1637_v18 = vadd.f32 %v4905_v54, %v1636_v41  ;;  %v3253_v48 = vpop.f32.mrb[158].mxu1 }
 0x27c   :  { %3890 = vtanh.f32 %v1645_v34  ;;  %v1648_v57 = vadd.f32 %v3253_v48, %v4905_v54  ;;  %v1639_v33 = vpop.f32.mrb[159].mxu1  ;;  %3386 = vmatprep.mubr.bf16.mxu0 %v1949_v8 }
 0x27d   :  { %3892 = vtanh.f32 %v1637_v18  ;;  %v1640_v12 = vadd.f32 %v4905_v54, %v1639_v33  ;;  %3387 = vmatmul.mubr.bf16.gmra.mrb[148].mxu0 %v1950_v50 }
 0x27e   :  { %v3883_v39 = vpop.eup %3882  ;;  %3894 = vtanh.f32 %v1648_v57 }
 0x27f   :  { %v3885_v2 = vpop.eup %3884  ;;  %3896 = vtanh.f32 %v1640_v12 }
 0x280   :  { %v3887_v10 = vpop.eup %3886 }
 0x281   :  { %v3889_v32 = vpop.eup %3888  ;;  %v3256_v17 = vpop.f32.mrb[160].mxu1  ;;  %v1952_v0 = vpack.c.bf16 %v3887_v10, %v3883_v39 }
 0x282   :  { %v1661_v42 = vadd.f32 %v3256_v17, %v4905_v54  ;;  %v1652_v26 = vpop.f32.mrb[161].mxu1  ;;  %v1951_v51 = vpack.c.bf16 %v3889_v32, %v3885_v2 }
 0x283   :  { %v1653_v60 = vadd.f32 %v4905_v54, %v1652_v26  ;;  %v3257_v61 = vpop.f32.mrb[162].mxu1 }
 0x284   :  { %3898 = vtanh.f32 %v1661_v42  ;;  %v1664_v46 = vadd.f32 %v3257_v61, %v4905_v54  ;;  %v1655_v55 = vpop.f32.mrb[163].mxu1  ;;  %3390 = vmatprep.mubr.bf16.mxu0 %v1951_v51  ;;  %v5058_v51 = vld [vmem:[#allocation2] ss:$0 sm:$0xff] }
 0x285   :  { %3900 = vtanh.f32 %v1653_v60  ;;  %v1656_v11 = vadd.f32 %v4905_v54, %v1655_v55  ;;  %3391 = vmatmul.mubr.bf16.gmra.mrb[152].mxu0 %v1952_v0 }
 0x286   :  { %v3891_v16 = vpop.eup %3890  ;;  %3902 = vtanh.f32 %v1664_v46 }
 0x287   :  { %v3893_v21 = vpop.eup %3892  ;;  %3904 = vtanh.f32 %v1656_v11 }
 0x288   :  { %v3895_v3 = vpop.eup %3894 }
 0x289   :  { %v3897_v28 = vpop.eup %3896  ;;  %v3260_v56 = vpop.f32.mrb[164].mxu1  ;;  %v1954_v40 = vpack.c.bf16 %v3895_v3, %v3891_v16 }
 0x28a   :  { %v1677_v6 = vadd.f32 %v3260_v56, %v4905_v54  ;;  %v1668_v47 = vpop.f32.mrb[165].mxu1  ;;  %v1953_v53 = vpack.c.bf16 %v3897_v28, %v3893_v21 }
 0x28b   :  { %v1669_v58 = vadd.f32 %v4905_v54, %v1668_v47  ;;  %v3261_v1 = vpop.f32.mrb[166].mxu1 }
 0x28c   :  { %3906 = vtanh.f32 %v1677_v6  ;;  %v1680_v20 = vadd.f32 %v3261_v1, %v4905_v54  ;;  %v1671_v29 = vpop.f32.mrb[167].mxu1  ;;  %3394 = vmatprep.mubr.bf16.mxu0 %v1953_v53 }
 0x28d   :  { %3908 = vtanh.f32 %v1669_v58  ;;  %v1672_v43 = vadd.f32 %v5043_v36, %v1671_v29  ;;  %3395 = vmatmul.mubr.bf16.gmra.mrb[156].mxu0 %v1954_v40 }
 0x28e   :  { %v3899_v4 = vpop.eup %3898  ;;  %3910 = vtanh.f32 %v1680_v20 }
 0x28f   :  { %v3901_v52 = vpop.eup %3900  ;;  %3912 = vtanh.f32 %v1672_v43 }
 0x290   :  { %v3903_v62 = vpop.eup %3902 }
 0x291   :  { %v3905_v37 = vpop.eup %3904  ;;  %v3264_v7 = vpop.f32.mrb[168].mxu1  ;;  %v1956_v23 = vpack.c.bf16 %v3903_v62, %v3899_v4 }
 0x292   :  { %v1693_v54 = vadd.f32 %v5043_v36, %v3264_v7  ;;  %v1684_v31 = vpop.f32.mrb[169].mxu1  ;;  %v1955_v13 = vpack.c.bf16 %v3905_v37, %v3901_v52 }
 0x293   :  { %v1685_v19 = vadd.f32 %v5043_v36, %v1684_v31  ;;  %v3265_v30 = vpop.f32.mrb[170].mxu1 }
 0x294   :  { %3914 = vtanh.f32 %v1693_v54  ;;  %v1696_v44 = vadd.f32 %v5043_v36, %v3265_v30  ;;  %v1687_v59 = vpop.f32.mrb[171].mxu1  ;;  %3398 = vmatprep.mubr.bf16.mxu0 %v1955_v13 }
 0x295   :  { %3916 = vtanh.f32 %v1685_v19  ;;  %v1688_v5 = vadd.f32 %v5043_v36, %v1687_v59  ;;  %3399 = vmatmul.mubr.bf16.gmra.mrb[160].mxu0 %v1956_v23 }
 0x296   :  { %v3907_v14 = vpop.eup %3906  ;;  %3918 = vtanh.f32 %v1696_v44 }
 0x297   :  { %v3909_v25 = vpop.eup %3908  ;;  %3920 = vtanh.f32 %v1688_v5 }
 0x298   :  { %v3911_v45 = vpop.eup %3910 }
 0x299   :  { %v3913_v49 = vpop.eup %3912  ;;  %v3268_v24 = vpop.f32.mrb[172].mxu1  ;;  %v1958_v9 = vpack.c.bf16 %v3911_v45, %v3907_v14 }
 0x29a   :  { %v1709_v22 = vadd.f32 %v5043_v36, %v3268_v24  ;;  %v1700_v35 = vpop.f32.mrb[173].mxu1  ;;  %v1957_v38 = vpack.c.bf16 %v3913_v49, %v3909_v25 }
 0x29b   :  { %v1701_v63 = vadd.f32 %v5043_v36, %v1700_v35  ;;  %v3269_v15 = vpop.f32.mrb[174].mxu1 }
 0x29c   :  { %3922 = vtanh.f32 %v1709_v22  ;;  %v1712_v27 = vadd.f32 %v5043_v36, %v3269_v15  ;;  %v1703_v50 = vpop.f32.mrb[175].mxu1  ;;  %3402 = vmatprep.mubr.bf16.mxu0 %v1957_v38 }
 0x29d   :  { %3924 = vtanh.f32 %v1701_v63  ;;  %v1704_v34 = vadd.f32 %v5043_v36, %v1703_v50  ;;  %3403 = vmatmul.mubr.bf16.gmra.mrb[164].mxu0 %v1958_v9 }
 0x29e   :  { %v3915_v41 = vpop.eup %3914  ;;  %3926 = vtanh.f32 %v1712_v27 }
 0x29f   :  { %v3917_v8 = vpop.eup %3916  ;;  %3928 = vtanh.f32 %v1704_v34 }
 0x2a0   :  { %v3919_v18 = vpop.eup %3918 }
 0x2a1   :  { %v3921_v48 = vpop.eup %3920  ;;  %v3272_v57 = vpop.f32.mrb[176].mxu1  ;;  %v1960_v33 = vpack.c.bf16 %v3919_v18, %v3915_v41 }
 0x2a2   :  { %v1725_v12 = vadd.f32 %v5043_v36, %v3272_v57  ;;  %v1716_v39 = vpop.f32.mrb[177].mxu1  ;;  %v1959_v2 = vpack.c.bf16 %v3921_v48, %v3917_v8 }
 0x2a3   :  { %v1717_v10 = vadd.f32 %v5043_v36, %v1716_v39  ;;  %v3273_v32 = vpop.f32.mrb[178].mxu1 }
 0x2a4   :  { %3930 = vtanh.f32 %v1725_v12  ;;  %v1728_v17 = vadd.f32 %v5043_v36, %v3273_v32  ;;  %v1719_v0 = vpop.f32.mrb[179].mxu1  ;;  %3406 = vmatprep.mubr.bf16.mxu0 %v1959_v2 }
 0x2a5   :  { %3932 = vtanh.f32 %v1717_v10  ;;  %v1720_v42 = vadd.f32 %v5043_v36, %v1719_v0  ;;  %3407 = vmatmul.mubr.bf16.gmra.mrb[168].mxu0 %v1960_v33 }
 0x2a6   :  { %v3923_v26 = vpop.eup %3922  ;;  %3934 = vtanh.f32 %v1728_v17 }
 0x2a7   :  { %v3925_v60 = vpop.eup %3924  ;;  %3936 = vtanh.f32 %v1720_v42  ;;  %v3304_v46 = vpop.f32.mrb[64].mxu0 }
 0x2a8   :  { %v3927_v61 = vpop.eup %3926  ;;  %v2085_v11 = vadd.f32 %v3304_v46, %v5058_v51  ;;  %v2076_v21 = vpop.f32.mrb[65].mxu0 }
 0x2a9   :  { %v3929_v55 = vpop.eup %3928  ;;  %v3276_v16 = vpop.f32.mrb[180].mxu1  ;;  %v1962_v3 = vpack.c.bf16 %v3927_v61, %v3923_v26  ;;  %v2077_v56 = vadd.f32 %v5058_v51, %v2076_v21 }
 0x2aa   :  { %v1741_v28 = vadd.f32 %v5043_v36, %v3276_v16  ;;  %v1732_v40 = vpop.f32.mrb[181].mxu1  ;;  %v3305_v6 = vpop.f32.mrb[66].mxu0  ;;  %v1961_v47 = vpack.c.bf16 %v3929_v55, %v3925_v60  ;;  %2590 = vst.msk [vmem:[%s5719_s7 + $0x10] sm:$0xff] %vm2587_vm2, %v2085_v11 }
 0x2ab   :  { %v1733_v53 = vadd.f32 %v5043_v36, %v1732_v40  ;;  %v2088_v58 = vadd.f32 %v3305_v6, %v5058_v51  ;;  %v3277_v1 = vpop.f32.mrb[182].mxu1  ;;  %v2079_v20 = vpop.f32.mrb[67].mxu0  ;;  %2588 = vst.msk [vmem:[%s5719_s7] sm:$0xff] %vm2587_vm2, %v2077_v56 }
 0x2ac   :  { %3938 = vtanh.f32 %v1741_v28  ;;  %v1744_v29 = vadd.f32 %v5043_v36, %v3277_v1  ;;  %v2080_v43 = vadd.f32 %v5058_v51, %v2079_v20  ;;  %v1735_v4 = vpop.f32.mrb[183].mxu1  ;;  %3410 = vmatprep.mubr.bf16.mxu0 %v1961_v47 }
 0x2ad   :  { %3940 = vtanh.f32 %v1733_v53  ;;  %2591 = vst.msk [vmem:[%s5719_s7 + $0x18] sm:$0xff] %vm2587_vm2, %v2088_v58  ;;  %v1736_v52 = vadd.f32 %v5043_v36, %v1735_v4  ;;  %3411 = vmatmul.mubr.bf16.gmra.mrb[172].mxu0 %v1962_v3 }
 0x2ae   :  { %v3931_v62 = vpop.eup %3930  ;;  %3942 = vtanh.f32 %v1744_v29  ;;  %2589 = vst.msk [vmem:[%s5719_s7 + $0x8] sm:$0xff] %vm2587_vm2, %v2080_v43 }
 0x2af   :  { %v3933_v37 = vpop.eup %3932  ;;  %3944 = vtanh.f32 %v1736_v52  ;;  %v3308_v23 = vpop.f32.mrb[68].mxu0 }
 0x2b0   :  { %v3935_v7 = vpop.eup %3934  ;;  %v2101_v31 = vadd.f32 %v3308_v23, %v5058_v51  ;;  %v2092_v19 = vpop.f32.mrb[69].mxu0 }
 0x2b1   :  { %v3937_v54 = vpop.eup %3936  ;;  %v3280_v13 = vpop.f32.mrb[184].mxu1  ;;  %v1964_v30 = vpack.c.bf16 %v3935_v7, %v3931_v62  ;;  %v2093_v59 = vadd.f32 %v5058_v51, %v2092_v19 }
 0x2b2   :  { %v1757_v44 = vadd.f32 %v5043_v36, %v3280_v13  ;;  %v1748_v5 = vpop.f32.mrb[185].mxu1  ;;  %v3309_v14 = vpop.f32.mrb[70].mxu0  ;;  %v1963_v25 = vpack.c.bf16 %v3937_v54, %v3933_v37  ;;  %2594 = vst.msk [vmem:[%s5719_s7 + $0x30] sm:$0xff] %vm2587_vm2, %v2101_v31 }
 0x2b3   :  { %v1749_v45 = vadd.f32 %v5043_v36, %v1748_v5  ;;  %v2104_v49 = vadd.f32 %v3309_v14, %v5058_v51  ;;  %v3281_v24 = vpop.f32.mrb[186].mxu1  ;;  %v2095_v9 = vpop.f32.mrb[71].mxu0  ;;  %2592 = vst.msk [vmem:[%s5719_s7 + $0x20] sm:$0xff] %vm2587_vm2, %v2093_v59 }
 0x2b4   :  { %3946 = vtanh.f32 %v1757_v44  ;;  %v1760_v22 = vadd.f32 %v5043_v36, %v3281_v24  ;;  %v2096_v35 = vadd.f32 %v5058_v51, %v2095_v9  ;;  %v1751_v38 = vpop.f32.mrb[187].mxu1  ;;  %3414 = vmatprep.mubr.bf16.mxu0 %v1963_v25 }
 0x2b5   :  { %3948 = vtanh.f32 %v1749_v45  ;;  %2595 = vst.msk [vmem:[%s5719_s7 + $0x38] sm:$0xff] %vm2587_vm2, %v2104_v49  ;;  %v1752_v63 = vadd.f32 %v5043_v36, %v1751_v38  ;;  %3415 = vmatmul.mubr.bf16.gmra.mrb[176].mxu0 %v1964_v30 }
 0x2b6   :  { %v3939_v15 = vpop.eup %3938  ;;  %3950 = vtanh.f32 %v1760_v22  ;;  %2593 = vst.msk [vmem:[%s5719_s7 + $0x28] sm:$0xff] %vm2587_vm2, %v2096_v35 }
 0x2b7   :  { %v3941_v27 = vpop.eup %3940  ;;  %3952 = vtanh.f32 %v1752_v63  ;;  %v3312_v34 = vpop.f32.mrb[72].mxu0 }
 0x2b8   :  { %v3943_v50 = vpop.eup %3942  ;;  %v2117_v8 = vadd.f32 %v3312_v34, %v5058_v51  ;;  %v2108_v48 = vpop.f32.mrb[73].mxu0 }
 0x2b9   :  { %v3945_v41 = vpop.eup %3944  ;;  %v3284_v18 = vpop.f32.mrb[188].mxu1  ;;  %v1966_v57 = vpack.c.bf16 %v3943_v50, %v3939_v15  ;;  %v2109_v12 = vadd.f32 %v5058_v51, %v2108_v48 }
 0x2ba   :  { %v1773_v33 = vadd.f32 %v5043_v36, %v3284_v18  ;;  %v1764_v39 = vpop.f32.mrb[189].mxu1  ;;  %v3313_v2 = vpop.f32.mrb[74].mxu0  ;;  %v1965_v10 = vpack.c.bf16 %v3945_v41, %v3941_v27  ;;  %2598 = vst.msk [vmem:[%s5719_s7 + $0x50] sm:$0xff] %vm2587_vm2, %v2117_v8 }
 0x2bb   :  { %v1765_v32 = vadd.f32 %v5043_v36, %v1764_v39  ;;  %v2120_v17 = vadd.f32 %v3313_v2, %v5058_v51  ;;  %v3285_v0 = vpop.f32.mrb[190].mxu1  ;;  %v2111_v42 = vpop.f32.mrb[75].mxu0  ;;  %2596 = vst.msk [vmem:[%s5719_s7 + $0x40] sm:$0xff] %vm2587_vm2, %v2109_v12 }
 0x2bc   :  { %3954 = vtanh.f32 %v1773_v33  ;;  %v1776_v26 = vadd.f32 %v5043_v36, %v3285_v0  ;;  %v2112_v60 = vadd.f32 %v5058_v51, %v2111_v42  ;;  %v1767_v61 = vpop.f32.mrb[191].mxu1  ;;  %3418 = vmatprep.mubr.bf16.mxu0 %v1965_v10 }
 0x2bd   :  { %3956 = vtanh.f32 %v1765_v32  ;;  %2599 = vst.msk [vmem:[%s5719_s7 + $0x58] sm:$0xff] %vm2587_vm2, %v2120_v17  ;;  %v1768_v46 = vadd.f32 %v5043_v36, %v1767_v61  ;;  %3419 = vmatmul.mubr.bf16.gmra.mrb[180].mxu0 %v1966_v57 }
 0x2be   :  { %v3947_v55 = vpop.eup %3946  ;;  %3958 = vtanh.f32 %v1776_v26  ;;  %2597 = vst.msk [vmem:[%s5719_s7 + $0x48] sm:$0xff] %vm2587_vm2, %v2112_v60 }
 0x2bf   :  { %v3949_v11 = vpop.eup %3948  ;;  %3960 = vtanh.f32 %v1768_v46  ;;  %v3316_v21 = vpop.f32.mrb[76].mxu0 }
 0x2c0   :  { %v3951_v16 = vpop.eup %3950  ;;  %v2133_v28 = vadd.f32 %v3316_v21, %v5058_v51  ;;  %v2124_v56 = vpop.f32.mrb[77].mxu0 }
 0x2c1   :  { %v3953_v3 = vpop.eup %3952  ;;  %v1968_v40 = vpack.c.bf16 %v3951_v16, %v3947_v55  ;;  %v2125_v6 = vadd.f32 %v5058_v51, %v2124_v56  ;;  %v3317_v36 = vpop.f32.mrb[78].mxu0 }
 0x2c2   :  { %v1967_v47 = vpack.c.bf16 %v3953_v3, %v3949_v11  ;;  %2602 = vst.msk [vmem:[%s5719_s7 + $0x70] sm:$0xff] %vm2587_vm2, %v2133_v28  ;;  %v2136_v53 = vadd.f32 %v3317_v36, %v5058_v51  ;;  %v2127_v58 = vpop.f32.mrb[79].mxu0 }
 0x2c3   :  { %2600 = vst.msk [vmem:[%s5719_s7 + $0x60] sm:$0xff] %vm2587_vm2, %v2125_v6  ;;  %v2128_v1 = vadd.f32 %v5058_v51, %v2127_v58 }
 0x2c4   :  { %3422 = vmatprep.mubr.bf16.mxu0 %v1967_v47  ;;  %2603 = vst.msk [vmem:[%s5719_s7 + $0x78] sm:$0xff] %vm2587_vm2, %v2136_v53 }
 0x2c5   :  { %3423 = vmatmul.mubr.bf16.gmra.mrb[184].mxu0 %v1968_v40  ;;  %2601 = vst.msk [vmem:[%s5719_s7 + $0x68] sm:$0xff] %vm2587_vm2, %v2128_v1 }
 0x2c6   :  { %v3955_v20 = vpop.eup %3954 }
 0x2c7   :  { %v3957_v29 = vpop.eup %3956  ;;  %v3320_v4 = vpop.f32.mrb[80].mxu0 }
 0x2c8   :  { %v3959_v43 = vpop.eup %3958  ;;  %v2149_v62 = vadd.f32 %v3320_v4, %v5058_v51  ;;  %v2140_v37 = vpop.f32.mrb[81].mxu0 }
 0x2c9   :  { %v3961_v52 = vpop.eup %3960  ;;  %v1970_v7 = vpack.c.bf16 %v3959_v43, %v3955_v20  ;;  %v2141_v23 = vadd.f32 %v5058_v51, %v2140_v37  ;;  %v3321_v54 = vpop.f32.mrb[82].mxu0 }
 0x2ca   :  { %v1969_v31 = vpack.c.bf16 %v3961_v52, %v3957_v29  ;;  %2606 = vst.msk [vmem:[%s5719_s7 + $0x90] sm:$0xff] %vm2587_vm2, %v2149_v62  ;;  %v2152_v13 = vadd.f32 %v3321_v54, %v5058_v51  ;;  %v2143_v19 = vpop.f32.mrb[83].mxu0 }
 0x2cb   :  { %2604 = vst.msk [vmem:[%s5719_s7 + $0x80] sm:$0xff] %vm2587_vm2, %v2141_v23  ;;  %v2144_v30 = vadd.f32 %v5058_v51, %v2143_v19 }
 0x2cc   :  { %3426 = vmatprep.mubr.bf16.mxu0 %v1969_v31  ;;  %2607 = vst.msk [vmem:[%s5719_s7 + $0x98] sm:$0xff] %vm2587_vm2, %v2152_v13 }
 0x2cd   :  { %3427 = vmatmul.mubr.bf16.gmra.mrb[188].mxu0 %v1970_v7  ;;  %2605 = vst.msk [vmem:[%s5719_s7 + $0x88] sm:$0xff] %vm2587_vm2, %v2144_v30 }
 0x2cf   :  { %v3324_v44 = vpop.f32.mrb[84].mxu0 }
 0x2d0   :  { %v2165_v59 = vadd.f32 %v3324_v44, %v5058_v51  ;;  %v2156_v5 = vpop.f32.mrb[85].mxu0 }
 0x2d1   :  { %v2157_v14 = vadd.f32 %v5058_v51, %v2156_v5  ;;  %v3325_v25 = vpop.f32.mrb[86].mxu0 }
 0x2d2   :  { %2610 = vst.msk [vmem:[%s5719_s7 + $0xb0] sm:$0xff] %vm2587_vm2, %v2165_v59  ;;  %v2168_v45 = vadd.f32 %v3325_v25, %v5058_v51  ;;  %v2159_v49 = vpop.f32.mrb[87].mxu0 }
 0x2d3   :  { %2608 = vst.msk [vmem:[%s5719_s7 + $0xa0] sm:$0xff] %vm2587_vm2, %v2157_v14  ;;  %v2160_v24 = vadd.f32 %v5058_v51, %v2159_v49 }
 0x2d4   :  { %2611 = vst.msk [vmem:[%s5719_s7 + $0xb8] sm:$0xff] %vm2587_vm2, %v2168_v45 }
 0x2d5   :  { %2609 = vst.msk [vmem:[%s5719_s7 + $0xa8] sm:$0xff] %vm2587_vm2, %v2160_v24 }
 0x2d7   :  { %v3328_v9 = vpop.f32.mrb[88].mxu0 }
 0x2d8   :  { %v2181_v22 = vadd.f32 %v3328_v9, %v5058_v51  ;;  %v2172_v35 = vpop.f32.mrb[89].mxu0 }
 0x2d9   :  { %v2173_v38 = vadd.f32 %v5058_v51, %v2172_v35  ;;  %v3329_v63 = vpop.f32.mrb[90].mxu0 }
 0x2da   :  { %2614 = vst.msk [vmem:[%s5719_s7 + $0xd0] sm:$0xff] %vm2587_vm2, %v2181_v22  ;;  %v2184_v15 = vadd.f32 %v3329_v63, %v5058_v51  ;;  %v2175_v27 = vpop.f32.mrb[91].mxu0 }
 0x2db   :  { %2612 = vst.msk [vmem:[%s5719_s7 + $0xc0] sm:$0xff] %vm2587_vm2, %v2173_v38  ;;  %v2176_v50 = vadd.f32 %v5058_v51, %v2175_v27 }
 0x2dc   :  { %2615 = vst.msk [vmem:[%s5719_s7 + $0xd8] sm:$0xff] %vm2587_vm2, %v2184_v15 }
 0x2dd   :  { %2613 = vst.msk [vmem:[%s5719_s7 + $0xc8] sm:$0xff] %vm2587_vm2, %v2176_v50 }
 0x2df   :  { %v3332_v34 = vpop.f32.mrb[92].mxu0 }
 0x2e0   :  { %v2197_v41 = vadd.f32 %v3332_v34, %v5058_v51  ;;  %v2188_v8 = vpop.f32.mrb[93].mxu0 }
 0x2e1   :  { %v2189_v18 = vadd.f32 %v5058_v51, %v2188_v8  ;;  %v3333_v48 = vpop.f32.mrb[94].mxu0 }
 0x2e2   :  { %2618 = vst.msk [vmem:[%s5719_s7 + $0xf0] sm:$0xff] %vm2587_vm2, %v2197_v41  ;;  %v2200_v57 = vadd.f32 %v3333_v48, %v5058_v51  ;;  %v2191_v33 = vpop.f32.mrb[95].mxu0 }
 0x2e3   :  { %2616 = vst.msk [vmem:[%s5719_s7 + $0xe0] sm:$0xff] %vm2587_vm2, %v2189_v18  ;;  %v2192_v12 = vadd.f32 %v5058_v51, %v2191_v33 }
 0x2e4   :  { %2619 = vst.msk [vmem:[%s5719_s7 + $0xf8] sm:$0xff] %vm2587_vm2, %v2200_v57 }
 0x2e5   :  { %2617 = vst.msk [vmem:[%s5719_s7 + $0xe8] sm:$0xff] %vm2587_vm2, %v2192_v12 }
 0x2e7   :  { %v3336_v39 = vpop.f32.mrb[96].mxu0 }
 0x2e8   :  { %v2213_v2 = vadd.f32 %v3336_v39, %v5058_v51  ;;  %v2204_v10 = vpop.f32.mrb[97].mxu0 }
 0x2e9   :  { %v2205_v32 = vadd.f32 %v5058_v51, %v2204_v10  ;;  %v3337_v17 = vpop.f32.mrb[98].mxu0 }
 0x2ea   :  { %2622 = vst.msk [vmem:[%s5719_s7 + $0x110] sm:$0xff] %vm2587_vm2, %v2213_v2  ;;  %v2216_v0 = vadd.f32 %v3337_v17, %v5058_v51  ;;  %v2207_v42 = vpop.f32.mrb[99].mxu0 }
 0x2eb   :  { %2620 = vst.msk [vmem:[%s5719_s7 + $0x100] sm:$0xff] %vm2587_vm2, %v2205_v32  ;;  %v2208_v26 = vadd.f32 %v5058_v51, %v2207_v42 }
 0x2ec   :  { %2623 = vst.msk [vmem:[%s5719_s7 + $0x118] sm:$0xff] %vm2587_vm2, %v2216_v0 }
 0x2ed   :  { %2621 = vst.msk [vmem:[%s5719_s7 + $0x108] sm:$0xff] %vm2587_vm2, %v2208_v26 }
 0x2ef   :  { %v3340_v60 = vpop.f32.mrb[100].mxu0 }
 0x2f0   :  { %v2229_v61 = vadd.f32 %v3340_v60, %v5058_v51  ;;  %v2220_v46 = vpop.f32.mrb[101].mxu0 }
 0x2f1   :  { %v2221_v55 = vadd.f32 %v5058_v51, %v2220_v46  ;;  %v3341_v11 = vpop.f32.mrb[102].mxu0 }
 0x2f2   :  { %2626 = vst.msk [vmem:[%s5719_s7 + $0x130] sm:$0xff] %vm2587_vm2, %v2229_v61  ;;  %v2232_v16 = vadd.f32 %v3341_v11, %v5058_v51  ;;  %v2223_v21 = vpop.f32.mrb[103].mxu0 }
 0x2f3   :  { %2624 = vst.msk [vmem:[%s5719_s7 + $0x120] sm:$0xff] %vm2587_vm2, %v2221_v55  ;;  %v2224_v3 = vadd.f32 %v5058_v51, %v2223_v21 }
 0x2f4   :  { %2627 = vst.msk [vmem:[%s5719_s7 + $0x138] sm:$0xff] %vm2587_vm2, %v2232_v16 }
 0x2f5   :  { %2625 = vst.msk [vmem:[%s5719_s7 + $0x128] sm:$0xff] %vm2587_vm2, %v2224_v3 }
 0x2f7   :  { %v3344_v28 = vpop.f32.mrb[104].mxu0 }
 0x2f8   :  { %v2245_v56 = vadd.f32 %v3344_v28, %v5058_v51  ;;  %v2236_v40 = vpop.f32.mrb[105].mxu0 }
 0x2f9   :  { %v2237_v6 = vadd.f32 %v5058_v51, %v2236_v40  ;;  %v3345_v36 = vpop.f32.mrb[106].mxu0 }
 0x2fa   :  { %2630 = vst.msk [vmem:[%s5719_s7 + $0x150] sm:$0xff] %vm2587_vm2, %v2245_v56  ;;  %v2248_v47 = vadd.f32 %v3345_v36, %v5058_v51  ;;  %v2239_v53 = vpop.f32.mrb[107].mxu0 }
 0x2fb   :  { %2628 = vst.msk [vmem:[%s5719_s7 + $0x140] sm:$0xff] %vm2587_vm2, %v2237_v6  ;;  %v2240_v58 = vadd.f32 %v5058_v51, %v2239_v53 }
 0x2fc   :  { %2631 = vst.msk [vmem:[%s5719_s7 + $0x158] sm:$0xff] %vm2587_vm2, %v2248_v47 }
 0x2fd   :  { %2629 = vst.msk [vmem:[%s5719_s7 + $0x148] sm:$0xff] %vm2587_vm2, %v2240_v58 }
 0x2ff   :  { %v3348_v1 = vpop.f32.mrb[108].mxu0 }
 0x300   :  { %v2261_v20 = vadd.f32 %v3348_v1, %v5058_v51  ;;  %v2252_v29 = vpop.f32.mrb[109].mxu0 }
 0x301   :  { %v2253_v43 = vadd.f32 %v5058_v51, %v2252_v29  ;;  %v3349_v4 = vpop.f32.mrb[110].mxu0 }
 0x302   :  { %2634 = vst.msk [vmem:[%s5719_s7 + $0x170] sm:$0xff] %vm2587_vm2, %v2261_v20  ;;  %v2264_v52 = vadd.f32 %v3349_v4, %v5058_v51  ;;  %v2255_v62 = vpop.f32.mrb[111].mxu0 }
 0x303   :  { %2632 = vst.msk [vmem:[%s5719_s7 + $0x160] sm:$0xff] %vm2587_vm2, %v2253_v43  ;;  %v2256_v37 = vadd.f32 %v5058_v51, %v2255_v62 }
 0x304   :  { %2635 = vst.msk [vmem:[%s5719_s7 + $0x178] sm:$0xff] %vm2587_vm2, %v2264_v52 }
 0x305   :  { %2633 = vst.msk [vmem:[%s5719_s7 + $0x168] sm:$0xff] %vm2587_vm2, %v2256_v37 }
 0x307   :  { %v3352_v7 = vpop.f32.mrb[112].mxu0 }
 0x308   :  { %v2277_v23 = vadd.f32 %v3352_v7, %v5058_v51  ;;  %v2268_v54 = vpop.f32.mrb[113].mxu0 }
 0x309   :  { %v2269_v31 = vadd.f32 %v5058_v51, %v2268_v54  ;;  %v3353_v13 = vpop.f32.mrb[114].mxu0 }
 0x30a   :  { %2638 = vst.msk [vmem:[%s5719_s7 + $0x190] sm:$0xff] %vm2587_vm2, %v2277_v23  ;;  %v2280_v19 = vadd.f32 %v3353_v13, %v5058_v51  ;;  %v2271_v30 = vpop.f32.mrb[115].mxu0 }
 0x30b   :  { %2636 = vst.msk [vmem:[%s5719_s7 + $0x180] sm:$0xff] %vm2587_vm2, %v2269_v31  ;;  %v2272_v44 = vadd.f32 %v5058_v51, %v2271_v30 }
 0x30c   :  { %2639 = vst.msk [vmem:[%s5719_s7 + $0x198] sm:$0xff] %vm2587_vm2, %v2280_v19 }
 0x30d   :  { %2637 = vst.msk [vmem:[%s5719_s7 + $0x188] sm:$0xff] %vm2587_vm2, %v2272_v44 }
 0x310   :  { %v3356_v59 = vpop.f32.mrb[116].mxu0 }
 0x311   :  { %v2293_v5 = vadd.f32 %v3356_v59, %v5058_v51  ;;  %v2284_v14 = vpop.f32.mrb[117].mxu0 }
 0x312   :  { %v2285_v25 = vadd.f32 %v5058_v51, %v2284_v14  ;;  %v3357_v45 = vpop.f32.mrb[118].mxu0 }
 0x313   :  { %2642 = vst.msk [vmem:[%s5719_s7 + $0x1b0] sm:$0xff] %vm2587_vm2, %v2293_v5  ;;  %v2296_v49 = vadd.f32 %v3357_v45, %v5058_v51  ;;  %v2287_v24 = vpop.f32.mrb[119].mxu0 }
 0x314   :  { %2640 = vst.msk [vmem:[%s5719_s7 + $0x1a0] sm:$0xff] %vm2587_vm2, %v2285_v25  ;;  %v2288_v9 = vadd.f32 %v5058_v51, %v2287_v24 }
 0x315   :  { %2643 = vst.msk [vmem:[%s5719_s7 + $0x1b8] sm:$0xff] %vm2587_vm2, %v2296_v49 }
 0x316   :  { %2641 = vst.msk [vmem:[%s5719_s7 + $0x1a8] sm:$0xff] %vm2587_vm2, %v2288_v9 }
 0x318   :  { %v3360_v22 = vpop.f32.mrb[120].mxu0 }
 0x319   :  { %v2309_v35 = vadd.f32 %v3360_v22, %v5058_v51  ;;  %v2300_v38 = vpop.f32.mrb[121].mxu0 }
 0x31a   :  { %v2301_v63 = vadd.f32 %v5058_v51, %v2300_v38  ;;  %v3361_v15 = vpop.f32.mrb[122].mxu0 }
 0x31b   :  { %2646 = vst.msk [vmem:[%s5719_s7 + $0x1d0] sm:$0xff] %vm2587_vm2, %v2309_v35  ;;  %v2312_v27 = vadd.f32 %v3361_v15, %v5058_v51  ;;  %v2303_v50 = vpop.f32.mrb[123].mxu0 }
 0x31c   :  { %2644 = vst.msk [vmem:[%s5719_s7 + $0x1c0] sm:$0xff] %vm2587_vm2, %v2301_v63  ;;  %v2304_v34 = vadd.f32 %v5058_v51, %v2303_v50 }
 0x31d   :  { %2647 = vst.msk [vmem:[%s5719_s7 + $0x1d8] sm:$0xff] %vm2587_vm2, %v2312_v27 }
 0x31e   :  { %2645 = vst.msk [vmem:[%s5719_s7 + $0x1c8] sm:$0xff] %vm2587_vm2, %v2304_v34 }
 0x320   :  { %v3364_v41 = vpop.f32.mrb[124].mxu0 }
 0x321   :  { %v2325_v8 = vadd.f32 %v3364_v41, %v5058_v51  ;;  %v2316_v18 = vpop.f32.mrb[125].mxu0 }
 0x322   :  { %v2317_v48 = vadd.f32 %v5058_v51, %v2316_v18  ;;  %v3365_v57 = vpop.f32.mrb[126].mxu0 }
 0x323   :  { %2650 = vst.msk [vmem:[%s5719_s7 + $0x1f0] sm:$0xff] %vm2587_vm2, %v2325_v8  ;;  %v2328_v33 = vadd.f32 %v3365_v57, %v5058_v51  ;;  %v2319_v12 = vpop.f32.mrb[127].mxu0 }
 0x324   :  { %2648 = vst.msk [vmem:[%s5719_s7 + $0x1e0] sm:$0xff] %vm2587_vm2, %v2317_v48  ;;  %v2320_v39 = vadd.f32 %v5058_v51, %v2319_v12 }
 0x325   :  { %2651 = vst.msk [vmem:[%s5719_s7 + $0x1f8] sm:$0xff] %vm2587_vm2, %v2328_v33 }
 0x326   :  { %2649 = vst.msk [vmem:[%s5719_s7 + $0x1e8] sm:$0xff] %vm2587_vm2, %v2320_v39 }
 0x328   :  { %v3368_v2 = vpop.f32.mrb[128].mxu0 }
 0x329   :  { %v2341_v10 = vadd.f32 %v3368_v2, %v5058_v51  ;;  %v2332_v32 = vpop.f32.mrb[129].mxu0 }
 0x32a   :  { %v2333_v17 = vadd.f32 %v5058_v51, %v2332_v32  ;;  %v3369_v0 = vpop.f32.mrb[130].mxu0 }
 0x32b   :  { %2654 = vst.msk [vmem:[%s5719_s7 + $0x210] sm:$0xff] %vm2587_vm2, %v2341_v10  ;;  %v2344_v42 = vadd.f32 %v3369_v0, %v5058_v51  ;;  %v2335_v26 = vpop.f32.mrb[131].mxu0 }
 0x32c   :  { %2652 = vst.msk [vmem:[%s5719_s7 + $0x200] sm:$0xff] %vm2587_vm2, %v2333_v17  ;;  %v2336_v60 = vadd.f32 %v5058_v51, %v2335_v26 }
 0x32d   :  { %2655 = vst.msk [vmem:[%s5719_s7 + $0x218] sm:$0xff] %vm2587_vm2, %v2344_v42 }
 0x32e   :  { %2653 = vst.msk [vmem:[%s5719_s7 + $0x208] sm:$0xff] %vm2587_vm2, %v2336_v60 }
 0x330   :  { %v3372_v61 = vpop.f32.mrb[132].mxu0 }
 0x331   :  { %v2357_v46 = vadd.f32 %v3372_v61, %v5058_v51  ;;  %v2348_v55 = vpop.f32.mrb[133].mxu0 }
 0x332   :  { %v2349_v11 = vadd.f32 %v5058_v51, %v2348_v55  ;;  %v3373_v16 = vpop.f32.mrb[134].mxu0 }
 0x333   :  { %2658 = vst.msk [vmem:[%s5719_s7 + $0x230] sm:$0xff] %vm2587_vm2, %v2357_v46  ;;  %v2360_v21 = vadd.f32 %v3373_v16, %v5058_v51  ;;  %v2351_v3 = vpop.f32.mrb[135].mxu0 }
 0x334   :  { %2656 = vst.msk [vmem:[%s5719_s7 + $0x220] sm:$0xff] %vm2587_vm2, %v2349_v11  ;;  %v2352_v28 = vadd.f32 %v5058_v51, %v2351_v3 }
 0x335   :  { %2659 = vst.msk [vmem:[%s5719_s7 + $0x238] sm:$0xff] %vm2587_vm2, %v2360_v21 }
 0x336   :  { %2657 = vst.msk [vmem:[%s5719_s7 + $0x228] sm:$0xff] %vm2587_vm2, %v2352_v28 }
 0x338   :  { %v3376_v56 = vpop.f32.mrb[136].mxu0 }
 0x339   :  { %v2373_v40 = vadd.f32 %v3376_v56, %v5058_v51  ;;  %v2364_v6 = vpop.f32.mrb[137].mxu0 }
 0x33a   :  { %v2365_v36 = vadd.f32 %v5058_v51, %v2364_v6  ;;  %v3377_v47 = vpop.f32.mrb[138].mxu0 }
 0x33b   :  { %2662 = vst.msk [vmem:[%s5719_s7 + $0x250] sm:$0xff] %vm2587_vm2, %v2373_v40  ;;  %v2376_v53 = vadd.f32 %v3377_v47, %v5058_v51  ;;  %v2367_v58 = vpop.f32.mrb[139].mxu0 }
 0x33c   :  { %2660 = vst.msk [vmem:[%s5719_s7 + $0x240] sm:$0xff] %vm2587_vm2, %v2365_v36  ;;  %v2368_v1 = vadd.f32 %v5058_v51, %v2367_v58 }
 0x33d   :  { %2663 = vst.msk [vmem:[%s5719_s7 + $0x258] sm:$0xff] %vm2587_vm2, %v2376_v53 }
 0x33e   :  { %2661 = vst.msk [vmem:[%s5719_s7 + $0x248] sm:$0xff] %vm2587_vm2, %v2368_v1 }
 0x340   :  { %v3380_v20 = vpop.f32.mrb[140].mxu0 }
 0x341   :  { %v2389_v29 = vadd.f32 %v3380_v20, %v5058_v51  ;;  %v2380_v43 = vpop.f32.mrb[141].mxu0 }
 0x342   :  { %v2381_v4 = vadd.f32 %v5058_v51, %v2380_v43  ;;  %v3381_v52 = vpop.f32.mrb[142].mxu0 }
 0x343   :  { %2666 = vst.msk [vmem:[%s5719_s7 + $0x270] sm:$0xff] %vm2587_vm2, %v2389_v29  ;;  %v2392_v62 = vadd.f32 %v3381_v52, %v5058_v51  ;;  %v2383_v37 = vpop.f32.mrb[143].mxu0 }
 0x344   :  { %2664 = vst.msk [vmem:[%s5719_s7 + $0x260] sm:$0xff] %vm2587_vm2, %v2381_v4  ;;  %v2384_v7 = vadd.f32 %v5058_v51, %v2383_v37 }
 0x345   :  { %2667 = vst.msk [vmem:[%s5719_s7 + $0x278] sm:$0xff] %vm2587_vm2, %v2392_v62 }
 0x346   :  { %2665 = vst.msk [vmem:[%s5719_s7 + $0x268] sm:$0xff] %vm2587_vm2, %v2384_v7 }
 0x348   :  { %v3384_v23 = vpop.f32.mrb[144].mxu0 }
 0x349   :  { %v2405_v54 = vadd.f32 %v3384_v23, %v5058_v51  ;;  %v2396_v31 = vpop.f32.mrb[145].mxu0 }
 0x34a   :  { %v2397_v13 = vadd.f32 %v5058_v51, %v2396_v31  ;;  %v3385_v19 = vpop.f32.mrb[146].mxu0 }
 0x34b   :  { %2670 = vst.msk [vmem:[%s5719_s7 + $0x290] sm:$0xff] %vm2587_vm2, %v2405_v54  ;;  %v2408_v30 = vadd.f32 %v3385_v19, %v5058_v51  ;;  %v2399_v44 = vpop.f32.mrb[147].mxu0 }
 0x34c   :  { %2668 = vst.msk [vmem:[%s5719_s7 + $0x280] sm:$0xff] %vm2587_vm2, %v2397_v13  ;;  %v2400_v59 = vadd.f32 %v5058_v51, %v2399_v44 }
 0x34d   :  { %2671 = vst.msk [vmem:[%s5719_s7 + $0x298] sm:$0xff] %vm2587_vm2, %v2408_v30 }
 0x34e   :  { %2669 = vst.msk [vmem:[%s5719_s7 + $0x288] sm:$0xff] %vm2587_vm2, %v2400_v59 }
 0x350   :  { %v3388_v5 = vpop.f32.mrb[148].mxu0 }
 0x351   :  { %v2421_v14 = vadd.f32 %v3388_v5, %v5058_v51  ;;  %v2412_v25 = vpop.f32.mrb[149].mxu0 }
 0x352   :  { %v2413_v45 = vadd.f32 %v5058_v51, %v2412_v25  ;;  %v3389_v49 = vpop.f32.mrb[150].mxu0 }
 0x353   :  { %2674 = vst.msk [vmem:[%s5719_s7 + $0x2b0] sm:$0xff] %vm2587_vm2, %v2421_v14  ;;  %v2424_v24 = vadd.f32 %v3389_v49, %v5058_v51  ;;  %v2415_v9 = vpop.f32.mrb[151].mxu0 }
 0x354   :  { %2672 = vst.msk [vmem:[%s5719_s7 + $0x2a0] sm:$0xff] %vm2587_vm2, %v2413_v45  ;;  %v2416_v22 = vadd.f32 %v5058_v51, %v2415_v9 }
 0x355   :  { %2675 = vst.msk [vmem:[%s5719_s7 + $0x2b8] sm:$0xff] %vm2587_vm2, %v2424_v24 }
 0x356   :  { %2673 = vst.msk [vmem:[%s5719_s7 + $0x2a8] sm:$0xff] %vm2587_vm2, %v2416_v22 }
 0x358   :  { %v3392_v35 = vpop.f32.mrb[152].mxu0 }
 0x359   :  { %v2437_v38 = vadd.f32 %v3392_v35, %v5058_v51  ;;  %v2428_v63 = vpop.f32.mrb[153].mxu0 }
 0x35a   :  { %v2429_v15 = vadd.f32 %v5058_v51, %v2428_v63  ;;  %v3393_v27 = vpop.f32.mrb[154].mxu0 }
 0x35b   :  { %2678 = vst.msk [vmem:[%s5719_s7 + $0x2d0] sm:$0xff] %vm2587_vm2, %v2437_v38  ;;  %v2440_v50 = vadd.f32 %v3393_v27, %v5058_v51  ;;  %v2431_v34 = vpop.f32.mrb[155].mxu0 }
 0x35c   :  { %2676 = vst.msk [vmem:[%s5719_s7 + $0x2c0] sm:$0xff] %vm2587_vm2, %v2429_v15  ;;  %v2432_v41 = vadd.f32 %v5058_v51, %v2431_v34 }
 0x35d   :  { %2679 = vst.msk [vmem:[%s5719_s7 + $0x2d8] sm:$0xff] %vm2587_vm2, %v2440_v50 }
 0x35e   :  { %2677 = vst.msk [vmem:[%s5719_s7 + $0x2c8] sm:$0xff] %vm2587_vm2, %v2432_v41 }
 0x360   :  { %v3396_v8 = vpop.f32.mrb[156].mxu0 }
 0x361   :  { %v2453_v18 = vadd.f32 %v3396_v8, %v5058_v51  ;;  %v2444_v48 = vpop.f32.mrb[157].mxu0 }
 0x362   :  { %v2445_v57 = vadd.f32 %v5058_v51, %v2444_v48  ;;  %v3397_v33 = vpop.f32.mrb[158].mxu0 }
 0x363   :  { %2682 = vst.msk [vmem:[%s5719_s7 + $0x2f0] sm:$0xff] %vm2587_vm2, %v2453_v18  ;;  %v2456_v12 = vadd.f32 %v3397_v33, %v5058_v51  ;;  %v2447_v39 = vpop.f32.mrb[159].mxu0 }
 0x364   :  { %2680 = vst.msk [vmem:[%s5719_s7 + $0x2e0] sm:$0xff] %vm2587_vm2, %v2445_v57  ;;  %v2448_v2 = vadd.f32 %v5058_v51, %v2447_v39 }
 0x365   :  { %2683 = vst.msk [vmem:[%s5719_s7 + $0x2f8] sm:$0xff] %vm2587_vm2, %v2456_v12 }
 0x366   :  { %2681 = vst.msk [vmem:[%s5719_s7 + $0x2e8] sm:$0xff] %vm2587_vm2, %v2448_v2 }
 0x368   :  { %v3400_v10 = vpop.f32.mrb[160].mxu0 }
 0x369   :  { %v2469_v32 = vadd.f32 %v3400_v10, %v5058_v51  ;;  %v2460_v17 = vpop.f32.mrb[161].mxu0 }
 0x36a   :  { %v2461_v0 = vadd.f32 %v5058_v51, %v2460_v17  ;;  %v3401_v42 = vpop.f32.mrb[162].mxu0 }
 0x36b   :  { %2686 = vst.msk [vmem:[%s5719_s7 + $0x310] sm:$0xff] %vm2587_vm2, %v2469_v32  ;;  %v2472_v26 = vadd.f32 %v3401_v42, %v5058_v51  ;;  %v2463_v60 = vpop.f32.mrb[163].mxu0 }
 0x36c   :  { %2684 = vst.msk [vmem:[%s5719_s7 + $0x300] sm:$0xff] %vm2587_vm2, %v2461_v0  ;;  %v2464_v61 = vadd.f32 %v5058_v51, %v2463_v60 }
 0x36d   :  { %2687 = vst.msk [vmem:[%s5719_s7 + $0x318] sm:$0xff] %vm2587_vm2, %v2472_v26 }
 0x36e   :  { %2685 = vst.msk [vmem:[%s5719_s7 + $0x308] sm:$0xff] %vm2587_vm2, %v2464_v61 }
 0x370   :  { %v3404_v46 = vpop.f32.mrb[164].mxu0 }
 0x371   :  { %v2485_v55 = vadd.f32 %v3404_v46, %v5058_v51  ;;  %v2476_v11 = vpop.f32.mrb[165].mxu0 }
 0x372   :  { %v2477_v16 = vadd.f32 %v5058_v51, %v2476_v11  ;;  %v3405_v21 = vpop.f32.mrb[166].mxu0 }
 0x373   :  { %2690 = vst.msk [vmem:[%s5719_s7 + $0x330] sm:$0xff] %vm2587_vm2, %v2485_v55  ;;  %v2488_v3 = vadd.f32 %v3405_v21, %v5058_v51  ;;  %v2479_v28 = vpop.f32.mrb[167].mxu0 }
 0x374   :  { %2688 = vst.msk [vmem:[%s5719_s7 + $0x320] sm:$0xff] %vm2587_vm2, %v2477_v16  ;;  %v2480_v56 = vadd.f32 %v5058_v51, %v2479_v28 }
 0x375   :  { %2691 = vst.msk [vmem:[%s5719_s7 + $0x338] sm:$0xff] %vm2587_vm2, %v2488_v3 }
 0x376   :  { %2689 = vst.msk [vmem:[%s5719_s7 + $0x328] sm:$0xff] %vm2587_vm2, %v2480_v56 }
 0x378   :  { %v3408_v40 = vpop.f32.mrb[168].mxu0 }
 0x379   :  { %v2501_v6 = vadd.f32 %v3408_v40, %v5058_v51  ;;  %v2492_v36 = vpop.f32.mrb[169].mxu0 }
 0x37a   :  { %v2493_v47 = vadd.f32 %v5058_v51, %v2492_v36  ;;  %v3409_v53 = vpop.f32.mrb[170].mxu0 }
 0x37b   :  { %2694 = vst.msk [vmem:[%s5719_s7 + $0x350] sm:$0xff] %vm2587_vm2, %v2501_v6  ;;  %v2504_v58 = vadd.f32 %v3409_v53, %v5058_v51  ;;  %v2495_v1 = vpop.f32.mrb[171].mxu0 }
 0x37c   :  { %2692 = vst.msk [vmem:[%s5719_s7 + $0x340] sm:$0xff] %vm2587_vm2, %v2493_v47  ;;  %v2496_v20 = vadd.f32 %v5058_v51, %v2495_v1 }
 0x37d   :  { %2695 = vst.msk [vmem:[%s5719_s7 + $0x358] sm:$0xff] %vm2587_vm2, %v2504_v58 }
 0x37e   :  { %2693 = vst.msk [vmem:[%s5719_s7 + $0x348] sm:$0xff] %vm2587_vm2, %v2496_v20 }
 0x380   :  { %v3412_v29 = vpop.f32.mrb[172].mxu0 }
 0x381   :  { %v2517_v43 = vadd.f32 %v3412_v29, %v5058_v51  ;;  %v2508_v4 = vpop.f32.mrb[173].mxu0 }
 0x382   :  { %v2509_v52 = vadd.f32 %v5058_v51, %v2508_v4  ;;  %v3413_v62 = vpop.f32.mrb[174].mxu0 }
 0x383   :  { %2698 = vst.msk [vmem:[%s5719_s7 + $0x370] sm:$0xff] %vm2587_vm2, %v2517_v43  ;;  %v2520_v37 = vadd.f32 %v3413_v62, %v5058_v51  ;;  %v2511_v7 = vpop.f32.mrb[175].mxu0 }
 0x384   :  { %2696 = vst.msk [vmem:[%s5719_s7 + $0x360] sm:$0xff] %vm2587_vm2, %v2509_v52  ;;  %v2512_v23 = vadd.f32 %v5058_v51, %v2511_v7 }
 0x385   :  { %2699 = vst.msk [vmem:[%s5719_s7 + $0x378] sm:$0xff] %vm2587_vm2, %v2520_v37 }
 0x386   :  { %2697 = vst.msk [vmem:[%s5719_s7 + $0x368] sm:$0xff] %vm2587_vm2, %v2512_v23 }
 0x388   :  { %v3416_v54 = vpop.f32.mrb[176].mxu0 }
 0x389   :  { %v2533_v31 = vadd.f32 %v3416_v54, %v5058_v51  ;;  %v2524_v13 = vpop.f32.mrb[177].mxu0 }
 0x38a   :  { %v2525_v19 = vadd.f32 %v5058_v51, %v2524_v13  ;;  %v3417_v30 = vpop.f32.mrb[178].mxu0 }
 0x38b   :  { %2702 = vst.msk [vmem:[%s5719_s7 + $0x390] sm:$0xff] %vm2587_vm2, %v2533_v31  ;;  %v2536_v44 = vadd.f32 %v3417_v30, %v5058_v51  ;;  %v2527_v59 = vpop.f32.mrb[179].mxu0 }
 0x38c   :  { %2700 = vst.msk [vmem:[%s5719_s7 + $0x380] sm:$0xff] %vm2587_vm2, %v2525_v19  ;;  %v2528_v5 = vadd.f32 %v5058_v51, %v2527_v59 }
 0x38d   :  { %2703 = vst.msk [vmem:[%s5719_s7 + $0x398] sm:$0xff] %vm2587_vm2, %v2536_v44 }
 0x38e   :  { %2701 = vst.msk [vmem:[%s5719_s7 + $0x388] sm:$0xff] %vm2587_vm2, %v2528_v5 }
 0x390   :  { %v3420_v14 = vpop.f32.mrb[180].mxu0 }
 0x391   :  { %v2549_v25 = vadd.f32 %v3420_v14, %v5058_v51  ;;  %v2540_v45 = vpop.f32.mrb[181].mxu0 }
 0x392   :  { %v2541_v49 = vadd.f32 %v5058_v51, %v2540_v45  ;;  %v3421_v24 = vpop.f32.mrb[182].mxu0 }
 0x393   :  { %2706 = vst.msk [vmem:[%s5719_s7 + $0x3b0] sm:$0xff] %vm2587_vm2, %v2549_v25  ;;  %v2552_v9 = vadd.f32 %v3421_v24, %v5058_v51  ;;  %v2543_v22 = vpop.f32.mrb[183].mxu0 }
 0x394   :  { %2704 = vst.msk [vmem:[%s5719_s7 + $0x3a0] sm:$0xff] %vm2587_vm2, %v2541_v49  ;;  %v2544_v35 = vadd.f32 %v5058_v51, %v2543_v22 }
 0x395   :  { %2707 = vst.msk [vmem:[%s5719_s7 + $0x3b8] sm:$0xff] %vm2587_vm2, %v2552_v9 }
 0x396   :  { %2705 = vst.msk [vmem:[%s5719_s7 + $0x3a8] sm:$0xff] %vm2587_vm2, %v2544_v35 }
 0x398   :  { %v3424_v38 = vpop.f32.mrb[184].mxu0 }
 0x399   :  { %v2565_v63 = vadd.f32 %v3424_v38, %v5058_v51  ;;  %v2556_v15 = vpop.f32.mrb[185].mxu0 }
 0x39a   :  { %v2557_v27 = vadd.f32 %v5058_v51, %v2556_v15  ;;  %v3425_v50 = vpop.f32.mrb[186].mxu0 }
 0x39b   :  { %2710 = vst.msk [vmem:[%s5719_s7 + $0x3d0] sm:$0xff] %vm2587_vm2, %v2565_v63  ;;  %v2568_v34 = vadd.f32 %v3425_v50, %v5058_v51  ;;  %v2559_v41 = vpop.f32.mrb[187].mxu0 }
 0x39c   :  { %2708 = vst.msk [vmem:[%s5719_s7 + $0x3c0] sm:$0xff] %vm2587_vm2, %v2557_v27  ;;  %v2560_v8 = vadd.f32 %v5058_v51, %v2559_v41 }
 0x39d   :  { %2711 = vst.msk [vmem:[%s5719_s7 + $0x3d8] sm:$0xff] %vm2587_vm2, %v2568_v34 }
 0x39e   :  { %2709 = vst.msk [vmem:[%s5719_s7 + $0x3c8] sm:$0xff] %vm2587_vm2, %v2560_v8 }
 0x3a0   :  { %v3428_v18 = vpop.f32.mrb[188].mxu0 }
 0x3a1   :  { %v2581_v48 = vadd.f32 %v3428_v18, %v5058_v51  ;;  %v2572_v57 = vpop.f32.mrb[189].mxu0 }
 0x3a2   :  { %v2573_v33 = vadd.f32 %v5058_v51, %v2572_v57  ;;  %v3429_v12 = vpop.f32.mrb[190].mxu0 }
 0x3a3   :  { %2714 = vst.msk [vmem:[%s5719_s7 + $0x3f0] sm:$0xff] %vm2587_vm2, %v2581_v48  ;;  %v2584_v39 = vadd.f32 %v3429_v12, %v5058_v51  ;;  %v2575_v2 = vpop.f32.mrb[191].mxu0 }
 0x3a4   :  { %2712 = vst.msk [vmem:[%s5719_s7 + $0x3e0] sm:$0xff] %vm2587_vm2, %v2573_v33  ;;  %v2576_v10 = vadd.f32 %v5058_v51, %v2575_v2 }
 0x3a5   :  { %2715 = vst.msk [vmem:[%s5719_s7 + $0x3f8] sm:$0xff] %vm2587_vm2, %v2584_v39 }
 0x3a6   :  { %2713 = vst.msk [vmem:[%s5719_s7 + $0x3e8] sm:$0xff] %vm2587_vm2, %v2576_v10 }

// kernel: tpu_custom_call.1
= control target key start
LH: loop header
LB: loop body
LE: loop exit
PB: predicated region body
PF: predicated region fallthrough
CT: control target
= control target key end

     0   :  { %vm422_vm0 = vcmask 1041408   ;;  %vm229_vm1 = vcmask 31744   ;;  %vm2587_vm2 = vcmask 7168   ;;  %s5712_s1 = inlined_call_operand.vmem [shape: bf16[4,128], index: 1, kind: input, shape index: {}]   ;;  %s5713_s0 = inlined_call_operand.vmem [shape: f32[1024,4], index: 0, kind: input, shape index: {}]   ;;  %s5714_s3 = inlined_call_operand.vmem [shape: bf16[128,128], index: 3, kind: input, shape index: {}]   ;;  %s5715_s2 = inlined_call_operand.vmem [shape: f32[1,128], index: 2, kind: input, shape index: {}]   ;;  %s5716_s5 = inlined_call_operand.vmem [shape: bf16[128,1], index: 5, kind: input, shape index: {}]   ;;  %s5717_s4 = inlined_call_operand.vmem [shape: f32[1,128], index: 4, kind: input, shape index: {}]   ;;  %s5718_s6 = inlined_call_operand.<no memory space> [shape: f32[1,1], index: 6, kind: input, shape index: {}]   ;;  %s5719_s7 = inlined_call_operand.vmem [shape: f32[1024,1], index: 7, kind: output, shape index: {}]  }
   0x1   :  { %v221_v0 = vld [vmem:[%s5712_s1] sm:$0x3]  ;;  %v30_v2 = vld [vmem:[%s5713_s0 + $0x8] sm:$0xff]  ;;  %v31_v5 = vld [vmem:[%s5713_s0 + $0x10] sm:$0xff] }
   0x2   :  { %v29_v1 = vld [vmem:[%s5713_s0] sm:$0xff]  ;;  %3432 = vmatprep.subr.msk.bf16.mxu0 %vm422_vm0, %v221_v0  ;;  %v424_v3 = vsel %vm422_vm0, %v221_v0, 0  ;;  %v32_v6 = vld [vmem:[%s5713_s0 + $0x18] sm:$0xff]  ;;  %3433 = vmatprep.subr.msk.bf16.mxu1 %vm422_vm0, %v221_v0  ;;  %v34_v9 = vld [vmem:[%s5713_s0 + $0x28] sm:$0xff] }
   0x3   :  { %v157_v4 = vpack.c.bf16 %v30_v2, %v29_v1  ;;  %v33_v7 = vld [vmem:[%s5713_s0 + $0x20] sm:$0xff]  ;;  %3013 = vmatpush3.bf16.msra.mxu0 %v424_v3  ;;  %v158_v8 = vpack.c.bf16 %v32_v6, %v31_v5  ;;  %3431 = vmatpush3.bf16.msra.mxu1 %v424_v3  ;;  %v35_v11 = vld [vmem:[%s5713_s0 + $0x30] sm:$0xff]  ;;  %v36_v12 = vld [vmem:[%s5713_s0 + $0x38] sm:$0xff] }
   0x4   :  { %v159_v10 = vpack.c.bf16 %v34_v9, %v33_v7  ;;  %v37_v13 = vld [vmem:[%s5713_s0 + $0x40] sm:$0xff]  ;;  %v38_v14 = vld [vmem:[%s5713_s0 + $0x48] sm:$0xff]  ;;  %v160_v15 = vpack.c.bf16 %v36_v12, %v35_v11  ;;  %v39_v17 = vld [vmem:[%s5713_s0 + $0x50] sm:$0xff] }
   0x5   :  { %3014 = vmatprep.mubr.msk.bf16.mxu0 %vm229_vm1, %v157_v4  ;;  %v161_v16 = vpack.c.bf16 %v38_v14, %v37_v13  ;;  %v40_v18 = vld [vmem:[%s5713_s0 + $0x58] sm:$0xff]  ;;  %v41_v19 = vld [vmem:[%s5713_s0 + $0x60] sm:$0xff]  ;;  %v42_v20 = vld [vmem:[%s5713_s0 + $0x68] sm:$0xff] }
   0x6   :  { %3015 = vmatmul.mubr.msk.bf16.vlgmr.msra.gmra.mrb[0].mxu0 %vm229_vm1, %v158_v8  ;;  %v162_v21 = vpack.c.bf16 %v40_v18, %v39_v17  ;;  %v93_v22 = vld [vmem:[%s5713_s0 + $0x200] sm:$0xff]  ;;  %v163_v23 = vpack.c.bf16 %v42_v20, %v41_v19  ;;  %v94_v24 = vld [vmem:[%s5713_s0 + $0x208] sm:$0xff]  ;;  %v95_v25 = vld [vmem:[%s5713_s0 + $0x210] sm:$0xff] }
   0x7   :  { %3018 = vmatprep.mubr.msk.bf16.mxu0 %vm229_vm1, %v159_v10  ;;  %v96_v26 = vld [vmem:[%s5713_s0 + $0x218] sm:$0xff]  ;;  %v189_v27 = vpack.c.bf16 %v94_v24, %v93_v22  ;;  %v3434_v29 = vld [vmem:[%s5714_s3] sm:$0xff]   ;;  %v98_v31 = vld [vmem:[%s5713_s0 + $0x228] sm:$0xff] }
   0x8   :  { %v190_v28 = vpack.c.bf16 %v96_v26, %v95_v25  ;;  %v97_v30 = vld [vmem:[%s5713_s0 + $0x220] sm:$0xff]  ;;  %v43_v32 = vld [vmem:[%s5713_s0 + $0x70] sm:$0xff]  ;;  %v44_v33 = vld [vmem:[%s5713_s0 + $0x78] sm:$0xff]  ;;  %3142 = vmatprep.subr.bf16.mxu1 %v3434_v29 }
   0x9   :  { %3078 = vmatprep.mubr.msk.bf16.mxu1 %vm229_vm1, %v189_v27  ;;  %v45_v34 = vld [vmem:[%s5713_s0 + $0x80] sm:$0xff]  ;;  %v191_v35 = vpack.c.bf16 %v98_v31, %v97_v30  ;;  %v46_v36 = vld [vmem:[%s5713_s0 + $0x88] sm:$0xff]  ;;  %v99_v37 = vld [vmem:[%s5713_s0 + $0x230] sm:$0xff]  ;;  %v164_v41 = vpack.c.bf16 %v44_v33, %v43_v32 }
   0xa   :  { %3079 = vmatmul.mubr.msk.bf16.vlgmr.msra.gmra.mrb[0].mxu1 %vm229_vm1, %v190_v28  ;;  %v100_v38 = vld [vmem:[%s5713_s0 + $0x238] sm:$0xff]  ;;  %v101_v39 = vld [vmem:[%s5713_s0 + $0x240] sm:$0xff]  ;;  %v102_v40 = vld [vmem:[%s5713_s0 + $0x248] sm:$0xff]  ;;  %v165_v42 = vpack.c.bf16 %v46_v36, %v45_v34 }
   0xb   :  { %3143 = vmatpush3.bf16.msra.mxu1 %v3434_v29  ;;  %3082 = vmatprep.mubr.msk.bf16.mxu1 %vm229_vm1, %v191_v35  ;;  %v192_v43 = vpack.c.bf16 %v100_v38, %v99_v37  ;;  %v3435_v44 = vld [vmem:[%s5714_s3 + $0x8] sm:$0xff]   ;;  %v193_v45 = vpack.c.bf16 %v102_v40, %v101_v39  ;;  %v47_v46 = vld [vmem:[%s5713_s0 + $0x90] sm:$0xff]  ;;  %v48_v47 = vld [vmem:[%s5713_s0 + $0x98] sm:$0xff] }
   0xc   :  { %3144 = vmatprep.subr.bf16.mxu1 %v3435_v44  ;;  %v49_v48 = vld [vmem:[%s5713_s0 + $0xa0] sm:$0xff]  ;;  %v50_v49 = vld [vmem:[%s5713_s0 + $0xa8] sm:$0xff]  ;;  %v103_v50 = vld [vmem:[%s5713_s0 + $0x250] sm:$0xff]  ;;  %v166_v55 = vpack.c.bf16 %v48_v47, %v47_v46 }
   0xd   :  { %v104_v51 = vld [vmem:[%s5713_s0 + $0x258] sm:$0xff]  ;;  %v3436_v52 = vld [vmem:[%s5714_s3 + $0x10] sm:$0xff]   ;;  %v105_v53 = vld [vmem:[%s5713_s0 + $0x260] sm:$0xff]  ;;  %v167_v56 = vpack.c.bf16 %v50_v49, %v49_v48 }
   0xe   :  { %3019 = vmatmul.mubr.msk.bf16.gmra.mrb[4].mxu0 %vm229_vm1, %v160_v15  ;;  %v106_v54 = vld [vmem:[%s5713_s0 + $0x268] sm:$0xff]  ;;  %v194_v57 = vpack.c.bf16 %v104_v51, %v103_v50  ;;  %v3437_v58 = vld [vmem:[%s5714_s3 + $0x18] sm:$0xff]   ;;  %v51_v60 = vld [vmem:[%s5713_s0 + $0xb0] sm:$0xff] }
   0xf   :  { %3022 = vmatprep.mubr.msk.bf16.mxu0 %vm229_vm1, %v161_v16  ;;  %3145 = vmatpush3.bf16.msra.mxu1 %v3435_v44  ;;  %v195_v59 = vpack.c.bf16 %v106_v54, %v105_v53  ;;  %v52_v61 = vld [vmem:[%s5713_s0 + $0xb8] sm:$0xff]  ;;  %v53_v62 = vld [vmem:[%s5713_s0 + $0xc0] sm:$0xff]  ;;  %v54_v0 = vld [vmem:[%s5713_s0 + $0xc8] sm:$0xff] }
  0x10   :  { %3146 = vmatprep.subr.bf16.mxu1 %v3436_v52  ;;  %v3438_v63 = vld [vmem:[%s5714_s3 + $0x20] sm:$0xff]   ;;  %v107_v1 = vld [vmem:[%s5713_s0 + $0x270] sm:$0xff]  ;;  %v108_v2 = vld [vmem:[%s5713_s0 + $0x278] sm:$0xff]  ;;  %v168_v5 = vpack.c.bf16 %v52_v61, %v51_v60  ;;  %v169_v6 = vpack.c.bf16 %v54_v0, %v53_v62 }
  0x11   :  { %v109_v3 = vld [vmem:[%s5713_s0 + $0x280] sm:$0xff]  ;;  %v110_v4 = vld [vmem:[%s5713_s0 + $0x288] sm:$0xff]  ;;  %v196_v7 = vpack.c.bf16 %v108_v2, %v107_v1  ;;  %v55_v10 = vld [vmem:[%s5713_s0 + $0xd0] sm:$0xff] }
  0x12   :  { %3083 = vmatmul.mubr.msk.bf16.gmra.mrb[4].mxu1 %vm229_vm1, %v192_v43  ;;  %v3439_v8 = vld [vmem:[%s5714_s3 + $0x28] sm:$0xff]   ;;  %v197_v9 = vpack.c.bf16 %v110_v4, %v109_v3  ;;  %v56_v11 = vld [vmem:[%s5713_s0 + $0xd8] sm:$0xff]  ;;  %v3440_v12 = vld [vmem:[%s5714_s3 + $0x30] sm:$0xff]  }
  0x13   :  { %3086 = vmatprep.mubr.msk.bf16.mxu1 %vm229_vm1, %v193_v45  ;;  %3147 = vmatpush3.bf16.msra.mxu1 %v3436_v52  ;;  %v57_v13 = vld [vmem:[%s5713_s0 + $0xe0] sm:$0xff]  ;;  %v58_v14 = vld [vmem:[%s5713_s0 + $0xe8] sm:$0xff]  ;;  %v111_v15 = vld [vmem:[%s5713_s0 + $0x290] sm:$0xff]  ;;  %v170_v19 = vpack.c.bf16 %v56_v11, %v55_v10 }
  0x14   :  { %3148 = vmatprep.subr.bf16.mxu1 %v3437_v58  ;;  %v112_v16 = vld [vmem:[%s5713_s0 + $0x298] sm:$0xff]  ;;  %v113_v17 = vld [vmem:[%s5713_s0 + $0x2a0] sm:$0xff]  ;;  %v114_v18 = vld [vmem:[%s5713_s0 + $0x2a8] sm:$0xff]  ;;  %v171_v20 = vpack.c.bf16 %v58_v14, %v57_v13 }
  0x15   :  { %v199_v22 = vpack.c.bf16 %v114_v18, %v113_v17  ;;  %v60_v24 = vld [vmem:[%s5713_s0 + $0xf8] sm:$0xff]  ;;  %v61_v25 = vld [vmem:[%s5713_s0 + $0x100] sm:$0xff]  ;;  %v62_v26 = vld [vmem:[%s5713_s0 + $0x108] sm:$0xff] }
  0x16   :  { %3023 = vmatmul.mubr.msk.bf16.gmra.mrb[8].mxu0 %vm229_vm1, %v162_v21  ;;  %v198_v21 = vpack.c.bf16 %v112_v16, %v111_v15  ;;  %v115_v27 = vld [vmem:[%s5713_s0 + $0x2b0] sm:$0xff]  ;;  %v116_v28 = vld [vmem:[%s5713_s0 + $0x2b8] sm:$0xff]  ;;  %v117_v29 = vld [vmem:[%s5713_s0 + $0x2c0] sm:$0xff]  ;;  %v173_v32 = vpack.c.bf16 %v62_v26, %v61_v25 }
  0x17   :  { %3026 = vmatprep.mubr.msk.bf16.mxu0 %vm229_vm1, %v163_v23  ;;  %3149 = vmatpush3.bf16.msra.mxu1 %v3437_v58  ;;  %v59_v23 = vld [vmem:[%s5713_s0 + $0xf0] sm:$0xff]  ;;  %v118_v30 = vld [vmem:[%s5713_s0 + $0x2c8] sm:$0xff]  ;;  %v200_v33 = vpack.c.bf16 %v116_v28, %v115_v27  ;;  %v64_v36 = vld [vmem:[%s5713_s0 + $0x118] sm:$0xff] }
  0x18   :  { %3150 = vmatprep.subr.bf16.mxu1 %v3438_v63  ;;  %v172_v31 = vpack.c.bf16 %v60_v24, %v59_v23  ;;  %v201_v34 = vpack.c.bf16 %v118_v30, %v117_v29  ;;  %v63_v35 = vld [vmem:[%s5713_s0 + $0x110] sm:$0xff]  ;;  %v65_v37 = vld [vmem:[%s5713_s0 + $0x120] sm:$0xff]  ;;  %v66_v38 = vld [vmem:[%s5713_s0 + $0x128] sm:$0xff] }
  0x19   :  { %v119_v39 = vld [vmem:[%s5713_s0 + $0x2d0] sm:$0xff]  ;;  %v120_v40 = vld [vmem:[%s5713_s0 + $0x2d8] sm:$0xff]  ;;  %v174_v43 = vpack.c.bf16 %v64_v36, %v63_v35  ;;  %v175_v44 = vpack.c.bf16 %v66_v38, %v65_v37  ;;  %v69_v49 = vld [vmem:[%s5713_s0 + $0x140] sm:$0xff] }
  0x1a   :  { %3087 = vmatmul.mubr.msk.bf16.gmra.mrb[8].mxu1 %vm229_vm1, %v194_v57  ;;  %v202_v45 = vpack.c.bf16 %v120_v40, %v119_v39  ;;  %v67_v47 = vld [vmem:[%s5713_s0 + $0x130] sm:$0xff]  ;;  %v68_v48 = vld [vmem:[%s5713_s0 + $0x138] sm:$0xff]  ;;  %v70_v50 = vld [vmem:[%s5713_s0 + $0x148] sm:$0xff] }
  0x1b   :  { %3090 = vmatprep.mubr.msk.bf16.mxu1 %vm229_vm1, %v195_v59  ;;  %3151 = vmatpush3.bf16.msra.mxu1 %v3438_v63  ;;  %v123_v51 = vld [vmem:[%s5713_s0 + $0x2f0] sm:$0xff]  ;;  %v124_v52 = vld [vmem:[%s5713_s0 + $0x2f8] sm:$0xff]  ;;  %v125_v53 = vld [vmem:[%s5713_s0 + $0x300] sm:$0xff] }
  0x1c   :  { %3152 = vmatprep.subr.bf16.mxu1 %v3439_v8  ;;  %v126_v54 = vld [vmem:[%s5713_s0 + $0x308] sm:$0xff]  ;;  %v204_v57 = vpack.c.bf16 %v124_v52, %v123_v51  ;;  %v71_v59 = vld [vmem:[%s5713_s0 + $0x150] sm:$0xff]  ;;  %v72_v60 = vld [vmem:[%s5713_s0 + $0x158] sm:$0xff] }
  0x1d   :  { %v205_v58 = vpack.c.bf16 %v126_v54, %v125_v53  ;;  %v73_v61 = vld [vmem:[%s5713_s0 + $0x160] sm:$0xff]  ;;  %v74_v62 = vld [vmem:[%s5713_s0 + $0x168] sm:$0xff]  ;;  %v127_v63 = vld [vmem:[%s5713_s0 + $0x310] sm:$0xff]  ;;  %v178_v3 = vpack.c.bf16 %v72_v60, %v71_v59 }
  0x1e   :  { %3027 = vmatmul.mubr.msk.bf16.gmra.mrb[12].mxu0 %vm229_vm1, %v164_v41  ;;  %v121_v41 = vld [vmem:[%s5713_s0 + $0x2e0] sm:$0xff]  ;;  %v128_v0 = vld [vmem:[%s5713_s0 + $0x318] sm:$0xff]  ;;  %v130_v2 = vld [vmem:[%s5713_s0 + $0x328] sm:$0xff]  ;;  %v179_v4 = vpack.c.bf16 %v74_v62, %v73_v61 }
  0x1f   :  { %3030 = vmatprep.mubr.msk.bf16.mxu0 %vm229_vm1, %v165_v42  ;;  %3153 = vmatpush3.bf16.msra.mxu1 %v3439_v8  ;;  %v122_v42 = vld [vmem:[%s5713_s0 + $0x2e8] sm:$0xff]  ;;  %v129_v1 = vld [vmem:[%s5713_s0 + $0x320] sm:$0xff]  ;;  %v76_v8 = vld [vmem:[%s5713_s0 + $0x178] sm:$0xff] }
  0x20   :  { %3154 = vmatprep.subr.bf16.mxu1 %v3440_v12  ;;  %v203_v46 = vpack.c.bf16 %v122_v42, %v121_v41  ;;  %v78_v10 = vld [vmem:[%s5713_s0 + $0x188] sm:$0xff]  ;;  %v131_v11 = vld [vmem:[%s5713_s0 + $0x330] sm:$0xff]  ;;  %v133_v13 = vld [vmem:[%s5713_s0 + $0x340] sm:$0xff] }
  0x21   :  { %v134_v14 = vld [vmem:[%s5713_s0 + $0x348] sm:$0xff]  ;;  %v135_v24 = vld [vmem:[%s5713_s0 + $0x350] sm:$0xff]  ;;  %v136_v25 = vld [vmem:[%s5713_s0 + $0x358] sm:$0xff] }
  0x22   :  { %3091 = vmatmul.mubr.msk.bf16.gmra.mrb[12].mxu1 %vm229_vm1, %v196_v7  ;;  %v75_v7 = vld [vmem:[%s5713_s0 + $0x170] sm:$0xff]  ;;  %v209_v18 = vpack.c.bf16 %v134_v14, %v133_v13  ;;  %v82_v23 = vld [vmem:[%s5713_s0 + $0x1a8] sm:$0xff]  ;;  %v137_v26 = vld [vmem:[%s5713_s0 + $0x360] sm:$0xff]  ;;  %v210_v30 = vpack.c.bf16 %v136_v25, %v135_v24 }
  0x23   :  { %3094 = vmatprep.mubr.msk.bf16.mxu1 %vm229_vm1, %v197_v9  ;;  %3155 = vmatpush3.bf16.msra.mxu1 %v3440_v12  ;;  %v77_v9 = vld [vmem:[%s5713_s0 + $0x180] sm:$0xff]  ;;  %v132_v12 = vld [vmem:[%s5713_s0 + $0x338] sm:$0xff]  ;;  %v180_v15 = vpack.c.bf16 %v76_v8, %v75_v7  ;;  %v138_v27 = vld [vmem:[%s5713_s0 + $0x368] sm:$0xff] }
  0x24   :  { %v181_v16 = vpack.c.bf16 %v78_v10, %v77_v9  ;;  %v208_v17 = vpack.c.bf16 %v132_v12, %v131_v11  ;;  %v86_v35 = vld [vmem:[%s5713_s0 + $0x1c8] sm:$0xff]  ;;  %v139_v36 = vld [vmem:[%s5713_s0 + $0x370] sm:$0xff]  ;;  %v140_v37 = vld [vmem:[%s5713_s0 + $0x378] sm:$0xff] }
  0x25   :  { %v141_v38 = vld [vmem:[%s5713_s0 + $0x380] sm:$0xff]  ;;  %v142_v39 = vld [vmem:[%s5713_s0 + $0x388] sm:$0xff]  ;;  %v212_v42 = vpack.c.bf16 %v140_v37, %v139_v36  ;;  %v148_v59 = vld [vmem:[%s5713_s0 + $0x3b8] sm:$0xff] }
  0x26   :  { %3031 = vmatmul.mubr.msk.bf16.gmra.mrb[16].mxu0 %vm229_vm1, %v166_v55  ;;  %v176_v55 = vpack.c.bf16 %v68_v48, %v67_v47  ;;  %v90_v47 = vld [vmem:[%s5713_s0 + $0x1e8] sm:$0xff]  ;;  %v143_v48 = vld [vmem:[%s5713_s0 + $0x390] sm:$0xff]  ;;  %v149_v60 = vld [vmem:[%s5713_s0 + $0x3c0] sm:$0xff] }
  0x27   :  { %3034 = vmatprep.mubr.msk.bf16.mxu0 %vm229_vm1, %v167_v56  ;;  %v177_v56 = vpack.c.bf16 %v70_v50, %v69_v49  ;;  %v144_v49 = vld [vmem:[%s5713_s0 + $0x398] sm:$0xff]  ;;  %v145_v50 = vld [vmem:[%s5713_s0 + $0x3a0] sm:$0xff]  ;;  %v146_v51 = vld [vmem:[%s5713_s0 + $0x3a8] sm:$0xff] }
  0x28   :  { %v214_v54 = vpack.c.bf16 %v144_v49, %v143_v48  ;;  %v150_v61 = vld [vmem:[%s5713_s0 + $0x3c8] sm:$0xff]  ;;  %v155_v7 = vld [vmem:[%s5713_s0 + $0x3f0] sm:$0xff]  ;;  %v156_v8 = vld [vmem:[%s5713_s0 + $0x3f8] sm:$0xff] }
  0x29   :  { %v220_v9 = vpack.c.bf16 %v156_v8, %v155_v7  ;;  %v4482_v10 = vld [vmem:[%s5715_s2] ss:$0 sm:$0xff] }
  0x2a   :  { %3095 = vmatmul.mubr.msk.bf16.gmra.mrb[16].mxu1 %vm229_vm1, %v198_v21  ;;  %v81_v21 = vld [vmem:[%s5713_s0 + $0x1a0] sm:$0xff] }
  0x2b   :  { %3098 = vmatprep.mubr.msk.bf16.mxu1 %vm229_vm1, %v199_v22  ;;  %v3441_v22 = vld [vmem:[%s5714_s3 + $0x38] sm:$0xff]   ;;  %v183_v29 = vpack.c.bf16 %v82_v23, %v81_v21  ;;  %v3442_v11 = vld [vmem:[%s5716_s5] sm:$0xff]  }
  0x2c   :  { %3156 = vmatprep.subr.bf16.mxu1 %v3441_v22  ;;  %3286 = vmatprep.subr.bf16.mxu0 %v3442_v11 }
  0x2d   :  { %3157 = vmatpush3.bf16.msra.mxu1 %v3441_v22  ;;  %3287 = vmatpush3.bf16.msra.mxu0 %v3442_v11 }
  0x2e   :  { %3035 = vmatmul.mubr.msk.bf16.gmra.mrb[20].mxu0 %vm229_vm1, %v168_v5  ;;  %v206_v5 = vpack.c.bf16 %v128_v0, %v127_v63  ;;  %v217_v0 = vpack.c.bf16 %v150_v61, %v149_v60 }
  0x2f   :  { %3038 = vmatprep.mubr.msk.bf16.mxu0 %vm229_vm1, %v169_v6  ;;  %v207_v6 = vpack.c.bf16 %v130_v2, %v129_v1  ;;  %v151_v1 = vld [vmem:[%s5713_s0 + $0x3d0] sm:$0xff]  ;;  %v152_v2 = vld [vmem:[%s5713_s0 + $0x3d8] sm:$0xff] }
  0x32   :  { %3099 = vmatmul.mubr.msk.bf16.gmra.mrb[20].mxu1 %vm229_vm1, %v200_v33  ;;  %v84_v33 = vld [vmem:[%s5713_s0 + $0x1b8] sm:$0xff] }
  0x33   :  { %3102 = vmatprep.mubr.msk.bf16.mxu1 %vm229_vm1, %v201_v34  ;;  %v85_v34 = vld [vmem:[%s5713_s0 + $0x1c0] sm:$0xff] }
  0x34   :  { %v185_v41 = vpack.c.bf16 %v86_v35, %v85_v34 }
  0x36   :  { %3039 = vmatmul.mubr.msk.bf16.gmra.mrb[24].mxu0 %vm229_vm1, %v170_v19  ;;  %v79_v19 = vld [vmem:[%s5713_s0 + $0x190] sm:$0xff] }
  0x37   :  { %3042 = vmatprep.mubr.msk.bf16.mxu0 %vm229_vm1, %v171_v20  ;;  %v80_v20 = vld [vmem:[%s5713_s0 + $0x198] sm:$0xff] }
  0x38   :  { %v182_v28 = vpack.c.bf16 %v80_v20, %v79_v19  ;;  %v3443_v20 = vld [vmem:[%s5716_s5 + $0x8] sm:$0xff]  }
  0x39   :  { %3288 = vmatprep.subr.bf16.mxu0 %v3443_v20 }
  0x3a   :  { %3103 = vmatmul.mubr.msk.bf16.gmra.mrb[24].mxu1 %vm229_vm1, %v202_v45  ;;  %v88_v45 = vld [vmem:[%s5713_s0 + $0x1d8] sm:$0xff]  ;;  %3289 = vmatpush3.bf16.msra.mxu0 %v3443_v20 }
  0x3b   :  { %3106 = vmatprep.mubr.msk.bf16.mxu1 %vm229_vm1, %v203_v46  ;;  %v89_v46 = vld [vmem:[%s5713_s0 + $0x1e0] sm:$0xff] }
  0x3c   :  { %v187_v53 = vpack.c.bf16 %v90_v47, %v89_v46 }
  0x3e   :  { %3043 = vmatmul.mubr.msk.bf16.gmra.mrb[28].mxu0 %vm229_vm1, %v172_v31  ;;  %v211_v31 = vpack.c.bf16 %v138_v27, %v137_v26 }
  0x3f   :  { %3046 = vmatprep.mubr.msk.bf16.mxu0 %vm229_vm1, %v173_v32  ;;  %v83_v32 = vld [vmem:[%s5713_s0 + $0x1b0] sm:$0xff] }
  0x40   :  { %v184_v40 = vpack.c.bf16 %v84_v33, %v83_v32 }
  0x42   :  { %3107 = vmatmul.mubr.msk.bf16.gmra.mrb[28].mxu1 %vm229_vm1, %v204_v57  ;;  %v92_v57 = vld [vmem:[%s5713_s0 + $0x1f8] sm:$0xff] }
  0x43   :  { %3110 = vmatprep.mubr.msk.bf16.mxu1 %vm229_vm1, %v205_v58  ;;  %v147_v58 = vld [vmem:[%s5713_s0 + $0x3b0] sm:$0xff] }
  0x44   :  { %v216_v63 = vpack.c.bf16 %v148_v59, %v147_v58 }
  0x46   :  { %3047 = vmatmul.mubr.msk.bf16.gmra.mrb[32].mxu0 %vm229_vm1, %v174_v43  ;;  %v213_v43 = vpack.c.bf16 %v142_v39, %v141_v38 }
  0x47   :  { %3050 = vmatprep.mubr.msk.bf16.mxu0 %vm229_vm1, %v175_v44  ;;  %v87_v44 = vld [vmem:[%s5713_s0 + $0x1d0] sm:$0xff] }
  0x48   :  { %v186_v52 = vpack.c.bf16 %v88_v45, %v87_v44 }
  0x4a   :  { %3111 = vmatmul.mubr.msk.bf16.gmra.mrb[32].mxu1 %vm229_vm1, %v206_v5  ;;  %v218_v5 = vpack.c.bf16 %v152_v2, %v151_v1 }
  0x4b   :  { %3114 = vmatprep.mubr.msk.bf16.mxu1 %vm229_vm1, %v207_v6 }
  0x4e   :  { %3051 = vmatmul.mubr.msk.bf16.gmra.mrb[36].mxu0 %vm229_vm1, %v176_v55  ;;  %v215_v55 = vpack.c.bf16 %v146_v51, %v145_v50  ;;  %v3444_v51 = vld [vmem:[%s5716_s5 + $0x10] sm:$0xff]  }
  0x4f   :  { %3054 = vmatprep.mubr.msk.bf16.mxu0 %vm229_vm1, %v177_v56  ;;  %v91_v56 = vld [vmem:[%s5713_s0 + $0x1f0] sm:$0xff]  ;;  %3290 = vmatprep.subr.bf16.mxu0 %v3444_v51 }
  0x50   :  { %v188_v62 = vpack.c.bf16 %v92_v57, %v91_v56  ;;  %3291 = vmatpush3.bf16.msra.mxu0 %v3444_v51 }
  0x52   :  { %3115 = vmatmul.mubr.msk.bf16.gmra.mrb[36].mxu1 %vm229_vm1, %v208_v17 }
  0x53   :  { %3118 = vmatprep.mubr.msk.bf16.mxu1 %vm229_vm1, %v209_v18 }
  0x56   :  { %3055 = vmatmul.mubr.msk.bf16.gmra.mrb[40].mxu0 %vm229_vm1, %v178_v3  ;;  %v153_v3 = vld [vmem:[%s5713_s0 + $0x3e0] sm:$0xff] }
  0x57   :  { %3058 = vmatprep.mubr.msk.bf16.mxu0 %vm229_vm1, %v179_v4  ;;  %v154_v4 = vld [vmem:[%s5713_s0 + $0x3e8] sm:$0xff] }
  0x58   :  { %v219_v6 = vpack.c.bf16 %v154_v4, %v153_v3 }
  0x5a   :  { %3119 = vmatmul.mubr.msk.bf16.gmra.mrb[40].mxu1 %vm229_vm1, %v210_v30 }
  0x5b   :  { %3122 = vmatprep.mubr.msk.bf16.mxu1 %vm229_vm1, %v211_v31 }
  0x5e   :  { %3059 = vmatmul.mubr.msk.bf16.gmra.mrb[44].mxu0 %vm229_vm1, %v180_v15 }
  0x5f   :  { %3062 = vmatprep.mubr.msk.bf16.mxu0 %vm229_vm1, %v181_v16 }
  0x62   :  { %3123 = vmatmul.mubr.msk.bf16.gmra.mrb[44].mxu1 %vm229_vm1, %v212_v42 }
  0x63   :  { %3126 = vmatprep.mubr.msk.bf16.mxu1 %vm229_vm1, %v213_v43 }
  0x66   :  { %3063 = vmatmul.mubr.msk.bf16.gmra.mrb[48].mxu0 %vm229_vm1, %v182_v28 }
  0x67   :  { %3066 = vmatprep.mubr.msk.bf16.mxu0 %vm229_vm1, %v183_v29 }
  0x6a   :  { %3127 = vmatmul.mubr.msk.bf16.gmra.mrb[48].mxu1 %vm229_vm1, %v214_v54 }
  0x6b   :  { %3130 = vmatprep.mubr.msk.bf16.mxu1 %vm229_vm1, %v215_v55 }
  0x6e   :  { %3067 = vmatmul.mubr.msk.bf16.gmra.mrb[52].mxu0 %vm229_vm1, %v184_v40 }
  0x6f   :  { %3070 = vmatprep.mubr.msk.bf16.mxu0 %vm229_vm1, %v185_v41 }
  0x72   :  { %3131 = vmatmul.mubr.msk.bf16.gmra.mrb[52].mxu1 %vm229_vm1, %v216_v63 }
  0x73   :  { %3134 = vmatprep.mubr.msk.bf16.mxu1 %vm229_vm1, %v217_v0 }
  0x76   :  { %3071 = vmatmul.mubr.msk.bf16.gmra.mrb[56].mxu0 %vm229_vm1, %v186_v52 }
  0x77   :  { %3074 = vmatprep.mubr.msk.bf16.mxu0 %vm229_vm1, %v187_v53 }
  0x7a   :  { %3135 = vmatmul.mubr.msk.bf16.gmra.mrb[56].mxu1 %vm229_vm1, %v218_v5 }
  0x7b   :  { %3138 = vmatprep.mubr.msk.bf16.mxu1 %vm229_vm1, %v219_v6 }
  0x7e   :  { %3075 = vmatmul.mubr.msk.bf16.gmra.mrb[60].mxu0 %vm229_vm1, %v188_v62 }
  0x82   :  { %3139 = vmatmul.mubr.msk.bf16.gmra.mrb[60].mxu1 %vm229_vm1, %v220_v9 }
  0xd9   :  { %v3016_v12 = vpop.f32.mrb[0].mxu0 }
  0xda   :  { %v469_v13 = vadd.f32 %v3016_v12, %v4482_v10  ;;  %v460_v14 = vpop.f32.mrb[1].mxu0 }
  0xdb   :  { %v461_v15 = vadd.f32 %v4482_v10, %v460_v14  ;;  %v3017_v16 = vpop.f32.mrb[2].mxu0 }
  0xdc   :  { %3450 = vtanh.f32 %v469_v13  ;;  %v472_v17 = vadd.f32 %v3017_v16, %v4482_v10  ;;  %v463_v18 = vpop.f32.mrb[3].mxu0 }
  0xdd   :  { %3452 = vtanh.f32 %v461_v15  ;;  %v464_v19 = vadd.f32 %v4482_v10, %v463_v18  ;;  %v3080_v38 = vpop.f32.mrb[0].mxu1 }
  0xde   :  { %3454 = vtanh.f32 %v472_v17  ;;  %v716_v41 = vpop.f32.mrb[1].mxu1  ;;  %v725_v44 = vadd.f32 %v3080_v38, %v4482_v10 }
  0xdf   :  { %3456 = vtanh.f32 %v464_v19  ;;  %v3081_v45 = vpop.f32.mrb[2].mxu1  ;;  %v717_v47 = vadd.f32 %v4482_v10, %v716_v41 }
  0xe0   :  { %v719_v48 = vpop.f32.mrb[3].mxu1  ;;  %v728_v50 = vadd.f32 %v3081_v45, %v4482_v10 }
  0xe1   :  { %v3020_v21 = vpop.f32.mrb[4].mxu0  ;;  %v720_v53 = vadd.f32 %v4482_v10, %v719_v48 }
  0xe2   :  { %v485_v22 = vadd.f32 %v3020_v21, %v4482_v10  ;;  %v476_v23 = vpop.f32.mrb[5].mxu0 }
  0xe3   :  { %v477_v24 = vadd.f32 %v4482_v10, %v476_v23  ;;  %v3021_v25 = vpop.f32.mrb[6].mxu0 }
  0xe4   :  { %3458 = vtanh.f32 %v485_v22  ;;  %v488_v26 = vadd.f32 %v3021_v25, %v4482_v10  ;;  %v479_v27 = vpop.f32.mrb[7].mxu0 }
  0xe5   :  { %3460 = vtanh.f32 %v477_v24  ;;  %v480_v28 = vadd.f32 %v4482_v10, %v479_v27  ;;  %v3084_v61 = vpop.f32.mrb[4].mxu1 }
  0xe6   :  { %v3451_v29 = vpop.eup %3450  ;;  %3462 = vtanh.f32 %v488_v26  ;;  %v732_v0 = vpop.f32.mrb[5].mxu1  ;;  %v741_v3 = vadd.f32 %v3084_v61, %v4482_v10 }
  0xe7   :  { %v3453_v30 = vpop.eup %3452  ;;  %3464 = vtanh.f32 %v480_v28  ;;  %v3085_v4 = vpop.f32.mrb[6].mxu1  ;;  %v733_v6 = vadd.f32 %v4482_v10, %v732_v0 }
  0xe8   :  { %v3455_v31 = vpop.eup %3454  ;;  %v735_v7 = vpop.f32.mrb[7].mxu1  ;;  %v744_v9 = vadd.f32 %v3085_v4, %v4482_v10 }
  0xe9   :  { %v3457_v32 = vpop.eup %3456  ;;  %v3024_v33 = vpop.f32.mrb[8].mxu0  ;;  %v1100_v34 = vpack.c.bf16 %v3455_v31, %v3451_v29  ;;  %v736_v12 = vadd.f32 %v4482_v10, %v735_v7 }
  0xea   :  { %v501_v35 = vadd.f32 %v3024_v33, %v4482_v10  ;;  %v492_v36 = vpop.f32.mrb[9].mxu0  ;;  %v1099_v37 = vpack.c.bf16 %v3457_v32, %v3453_v30 }
  0xeb   :  { %v493_v39 = vadd.f32 %v4482_v10, %v492_v36  ;;  %v3025_v40 = vpop.f32.mrb[10].mxu0 }
  0xec   :  { %3466 = vtanh.f32 %v501_v35  ;;  %v504_v42 = vadd.f32 %v3025_v40, %v4482_v10  ;;  %v495_v43 = vpop.f32.mrb[11].mxu0  ;;  %3158 = vmatprep.mubr.bf16.mxu1 %v1099_v37 }
  0xed   :  { %3468 = vtanh.f32 %v493_v39  ;;  %v496_v46 = vadd.f32 %v4482_v10, %v495_v43  ;;  %3159 = vmatmul.mubr.bf16.vlgmr.msra.gmra.mrb[64].mxu1 %v1100_v34  ;;  %v3088_v21 = vpop.f32.mrb[8].mxu1  ;;  %v3445_v39 = vld [vmem:[%s5716_s5 + $0x18] sm:$0xff]  }
  0xee   :  { %v3459_v49 = vpop.eup %3458  ;;  %3470 = vtanh.f32 %v504_v42  ;;  %v748_v25 = vpop.f32.mrb[9].mxu1  ;;  %v757_v29 = vadd.f32 %v3088_v21, %v4482_v10  ;;  %3292 = vmatprep.subr.bf16.mxu0 %v3445_v39 }
  0xef   :  { %v3461_v52 = vpop.eup %3460  ;;  %3472 = vtanh.f32 %v496_v46  ;;  %v3089_v30 = vpop.f32.mrb[10].mxu1  ;;  %v749_v33 = vadd.f32 %v4482_v10, %v748_v25  ;;  %3293 = vmatpush3.bf16.msra.mxu0 %v3445_v39  ;;  %v3446_v39 = vld [vmem:[%s5716_s5 + $0x20] sm:$0xff]  }
  0xf0   :  { %v3463_v54 = vpop.eup %3462  ;;  %3474 = vtanh.f32 %v725_v44  ;;  %v751_v34 = vpop.f32.mrb[11].mxu1  ;;  %v760_v37 = vadd.f32 %v3089_v30, %v4482_v10  ;;  %3294 = vmatprep.subr.bf16.mxu0 %v3446_v39 }
  0xf1   :  { %v3465_v55 = vpop.eup %3464  ;;  %v3028_v56 = vpop.f32.mrb[12].mxu0  ;;  %v1102_v57 = vpack.c.bf16 %v3463_v54, %v3459_v49  ;;  %3476 = vtanh.f32 %v717_v47  ;;  %v752_v41 = vadd.f32 %v4482_v10, %v751_v34 }
  0xf2   :  { %v517_v58 = vadd.f32 %v3028_v56, %v4482_v10  ;;  %v508_v59 = vpop.f32.mrb[13].mxu0  ;;  %v1101_v60 = vpack.c.bf16 %v3465_v55, %v3461_v52  ;;  %3478 = vtanh.f32 %v728_v50 }
  0xf3   :  { %v509_v62 = vadd.f32 %v4482_v10, %v508_v59  ;;  %v3029_v63 = vpop.f32.mrb[14].mxu0  ;;  %3480 = vtanh.f32 %v720_v53  ;;  %3295 = vmatpush3.bf16.msra.mxu0 %v3446_v39 }
  0xf4   :  { %3482 = vtanh.f32 %v517_v58  ;;  %v520_v1 = vadd.f32 %v3029_v63, %v4482_v10  ;;  %v511_v2 = vpop.f32.mrb[15].mxu0  ;;  %3162 = vmatprep.mubr.bf16.mxu1 %v1101_v60 }
  0xf5   :  { %3484 = vtanh.f32 %v509_v62  ;;  %v512_v5 = vadd.f32 %v4482_v10, %v511_v2  ;;  %3163 = vmatmul.mubr.bf16.gmra.mrb[68].mxu1 %v1102_v57  ;;  %v3092_v50 = vpop.f32.mrb[12].mxu1 }
  0xf6   :  { %v3467_v8 = vpop.eup %3466  ;;  %3486 = vtanh.f32 %v520_v1  ;;  %v764_v54 = vpop.f32.mrb[13].mxu1  ;;  %v773_v58 = vadd.f32 %v3092_v50, %v4482_v10 }
  0xf7   :  { %v3469_v11 = vpop.eup %3468  ;;  %3488 = vtanh.f32 %v512_v5  ;;  %v3093_v59 = vpop.f32.mrb[14].mxu1  ;;  %v765_v62 = vadd.f32 %v4482_v10, %v764_v54 }
  0xf8   :  { %v3471_v13 = vpop.eup %3470  ;;  %3490 = vtanh.f32 %v741_v3  ;;  %v767_v63 = vpop.f32.mrb[15].mxu1  ;;  %v776_v2 = vadd.f32 %v3093_v59, %v4482_v10 }
  0xf9   :  { %v3473_v14 = vpop.eup %3472  ;;  %v3032_v15 = vpop.f32.mrb[16].mxu0  ;;  %v1104_v16 = vpack.c.bf16 %v3471_v13, %v3467_v8  ;;  %3492 = vtanh.f32 %v733_v6  ;;  %v768_v5 = vadd.f32 %v4482_v10, %v767_v63 }
  0xfa   :  { %v4517_v17 = vpop.eup %3474  ;;  %v533_v18 = vadd.f32 %v3032_v15, %v4482_v10  ;;  %v524_v19 = vpop.f32.mrb[17].mxu0  ;;  %v1103_v20 = vpack.c.bf16 %v3473_v14, %v3469_v11  ;;  %3494 = vtanh.f32 %v744_v9 }
  0xfb   :  { %v4520_v22 = vpop.eup %3476  ;;  %v525_v23 = vadd.f32 %v4482_v10, %v524_v19  ;;  %v3033_v24 = vpop.f32.mrb[18].mxu0  ;;  %3496 = vtanh.f32 %v736_v12 }
  0xfc   :  { %v4523_v26 = vpop.eup %3478  ;;  %3498 = vtanh.f32 %v533_v18  ;;  %v536_v27 = vadd.f32 %v3033_v24, %v4482_v10  ;;  %v527_v28 = vpop.f32.mrb[19].mxu0  ;;  %3166 = vmatprep.mubr.bf16.mxu1 %v1103_v20 }
  0xfd   :  { %v4527_v31 = vpop.eup %3480  ;;  %3500 = vtanh.f32 %v525_v23  ;;  %v528_v32 = vadd.f32 %v4482_v10, %v527_v28  ;;  %3167 = vmatmul.mubr.bf16.gmra.mrb[72].mxu1 %v1104_v16  ;;  %v3096_v15 = vpop.f32.mrb[16].mxu1 }
  0xfe   :  { %v3483_v36 = vpop.eup %3482  ;;  %3502 = vtanh.f32 %v536_v27  ;;  %v780_v20 = vpop.f32.mrb[17].mxu1  ;;  %v789_v25 = vadd.f32 %v3096_v15, %v4482_v10 }
  0xff   :  { %v3485_v40 = vpop.eup %3484  ;;  %3504 = vtanh.f32 %v528_v32  ;;  %v3097_v27 = vpop.f32.mrb[18].mxu1  ;;  %v781_v30 = vadd.f32 %v4482_v10, %v780_v20 }
 0x100   :  { %v3487_v42 = vpop.eup %3486  ;;  %3506 = vtanh.f32 %v757_v29  ;;  %v783_v32 = vpop.f32.mrb[19].mxu1 }
 0x101   :  { %v3489_v43 = vpop.eup %3488  ;;  %v3036_v44 = vpop.f32.mrb[20].mxu0  ;;  %v1106_v45 = vpack.c.bf16 %v3487_v42, %v3483_v36  ;;  %3508 = vtanh.f32 %v749_v33  ;;  %v792_v36 = vadd.f32 %v3097_v27, %v4482_v10 }
 0x102   :  { %v4540_v46 = vpop.eup %3490  ;;  %v549_v47 = vadd.f32 %v3036_v44, %v4482_v10  ;;  %v540_v48 = vpop.f32.mrb[21].mxu0  ;;  %v1105_v49 = vpack.c.bf16 %v3489_v43, %v3485_v40  ;;  %3510 = vtanh.f32 %v760_v37 }
 0x103   :  { %v4543_v51 = vpop.eup %3492  ;;  %v541_v52 = vadd.f32 %v4482_v10, %v540_v48  ;;  %v3037_v53 = vpop.f32.mrb[22].mxu0  ;;  %3512 = vtanh.f32 %v752_v41  ;;  %v784_v41 = vadd.f32 %v4482_v10, %v783_v32 }
 0x104   :  { %v4546_v55 = vpop.eup %3494  ;;  %3514 = vtanh.f32 %v549_v47  ;;  %v552_v56 = vadd.f32 %v3037_v53, %v4482_v10  ;;  %v543_v57 = vpop.f32.mrb[23].mxu0  ;;  %3170 = vmatprep.mubr.bf16.mxu1 %v1105_v49 }
 0x105   :  { %v4550_v60 = vpop.eup %3496  ;;  %3516 = vtanh.f32 %v541_v52  ;;  %v544_v61 = vadd.f32 %v4482_v10, %v543_v57  ;;  %3171 = vmatmul.mubr.bf16.gmra.mrb[76].mxu1 %v1106_v45  ;;  %v3100_v52 = vpop.f32.mrb[20].mxu1 }
 0x106   :  { %v3499_v1 = vpop.eup %3498  ;;  %3518 = vtanh.f32 %v552_v56  ;;  %v796_v57 = vpop.f32.mrb[21].mxu1 }
 0x107   :  { %v3501_v4 = vpop.eup %3500  ;;  %3520 = vtanh.f32 %v544_v61  ;;  %v3101_v63 = vpop.f32.mrb[22].mxu1 }
 0x108   :  { %v3503_v6 = vpop.eup %3502  ;;  %3522 = vtanh.f32 %v773_v58 }
 0x109   :  { %v3505_v7 = vpop.eup %3504  ;;  %v3040_v8 = vpop.f32.mrb[24].mxu0  ;;  %v1108_v9 = vpack.c.bf16 %v3503_v6, %v3499_v1  ;;  %3524 = vtanh.f32 %v765_v62  ;;  %v805_v62 = vadd.f32 %v3100_v52, %v4482_v10 }
 0x10a   :  { %v4560_v11 = vpop.eup %3506  ;;  %v565_v12 = vadd.f32 %v3040_v8, %v4482_v10  ;;  %v556_v13 = vpop.f32.mrb[25].mxu0  ;;  %v1107_v14 = vpack.c.bf16 %v3505_v7, %v3501_v4  ;;  %3526 = vtanh.f32 %v776_v2  ;;  %v797_v4 = vadd.f32 %v4482_v10, %v796_v57 }
 0x10b   :  { %v4563_v16 = vpop.eup %3508  ;;  %v557_v18 = vadd.f32 %v4482_v10, %v556_v13  ;;  %v3041_v19 = vpop.f32.mrb[26].mxu0  ;;  %3528 = vtanh.f32 %v768_v5  ;;  %v808_v8 = vadd.f32 %v3101_v63, %v4482_v10 }
 0x10c   :  { %v4566_v21 = vpop.eup %3510  ;;  %3530 = vtanh.f32 %v565_v12  ;;  %v568_v23 = vadd.f32 %v3041_v19, %v4482_v10  ;;  %v559_v24 = vpop.f32.mrb[27].mxu0  ;;  %3174 = vmatprep.mubr.bf16.mxu1 %v1107_v14 }
 0x10d   :  { %v4570_v28 = vpop.eup %3512  ;;  %3532 = vtanh.f32 %v557_v18  ;;  %v560_v29 = vadd.f32 %v4482_v10, %v559_v24  ;;  %3175 = vmatmul.mubr.bf16.gmra.mrb[80].mxu1 %v1108_v9  ;;  %v799_v5 = vpop.f32.mrb[23].mxu1 }
 0x10e   :  { %v3515_v34 = vpop.eup %3514  ;;  %3534 = vtanh.f32 %v568_v23  ;;  %v800_v13 = vadd.f32 %v4482_v10, %v799_v5  ;;  %v3104_v27 = vpop.f32.mrb[24].mxu1 }
 0x10f   :  { %v3517_v40 = vpop.eup %3516  ;;  %3536 = vtanh.f32 %v560_v29 }
 0x110   :  { %v3519_v42 = vpop.eup %3518  ;;  %3538 = vtanh.f32 %v789_v25 }
 0x111   :  { %v3521_v43 = vpop.eup %3520  ;;  %v3044_v44 = vpop.f32.mrb[28].mxu0  ;;  %v1110_v45 = vpack.c.bf16 %v3519_v42, %v3515_v34  ;;  %3540 = vtanh.f32 %v781_v30 }
 0x112   :  { %v4583_v47 = vpop.eup %3522  ;;  %v581_v48 = vadd.f32 %v3044_v44, %v4482_v10  ;;  %v572_v49 = vpop.f32.mrb[29].mxu0  ;;  %v1109_v50 = vpack.c.bf16 %v3521_v43, %v3517_v40  ;;  %3542 = vtanh.f32 %v792_v36 }
 0x113   :  { %v4586_v53 = vpop.eup %3524  ;;  %v573_v54 = vadd.f32 %v4482_v10, %v572_v49  ;;  %v3045_v56 = vpop.f32.mrb[30].mxu0  ;;  %3544 = vtanh.f32 %v784_v41  ;;  %v821_v41 = vadd.f32 %v3104_v27, %v4482_v10 }
 0x114   :  { %v4589_v58 = vpop.eup %3526  ;;  %3546 = vtanh.f32 %v581_v48  ;;  %v584_v59 = vadd.f32 %v3045_v56, %v4482_v10  ;;  %v575_v61 = vpop.f32.mrb[31].mxu0  ;;  %3178 = vmatprep.mubr.bf16.mxu1 %v1109_v50  ;;  %v3447_v56 = vld [vmem:[%s5716_s5 + $0x28] sm:$0xff]  }
 0x115   :  { %v4593_v1 = vpop.eup %3528  ;;  %3548 = vtanh.f32 %v573_v54  ;;  %v576_v2 = vadd.f32 %v4482_v10, %v575_v61  ;;  %3179 = vmatmul.mubr.bf16.gmra.mrb[84].mxu1 %v1110_v45  ;;  %v812_v34 = vpop.f32.mrb[25].mxu1  ;;  %3296 = vmatprep.subr.bf16.mxu0 %v3447_v56 }
 0x116   :  { %v3531_v7 = vpop.eup %3530  ;;  %3550 = vtanh.f32 %v584_v59  ;;  %v3105_v42 = vpop.f32.mrb[26].mxu1  ;;  %v813_v45 = vadd.f32 %v4482_v10, %v812_v34  ;;  %3297 = vmatpush3.bf16.msra.mxu0 %v3447_v56 }
 0x117   :  { %v3533_v12 = vpop.eup %3532  ;;  %3552 = vtanh.f32 %v576_v2  ;;  %v815_v48 = vpop.f32.mrb[27].mxu1  ;;  %v824_v52 = vadd.f32 %v3105_v42, %v4482_v10 }
 0x118   :  { %v3535_v14 = vpop.eup %3534  ;;  %3554 = vtanh.f32 %v805_v62  ;;  %v816_v59 = vadd.f32 %v4482_v10, %v815_v48 }
 0x119   :  { %v3537_v15 = vpop.eup %3536  ;;  %v3048_v18 = vpop.f32.mrb[32].mxu0  ;;  %v1112_v19 = vpack.c.bf16 %v3535_v14, %v3531_v7  ;;  %3556 = vtanh.f32 %v797_v4 }
 0x11a   :  { %v4603_v20 = vpop.eup %3538  ;;  %v597_v23 = vadd.f32 %v3048_v18, %v4482_v10  ;;  %v588_v24 = vpop.f32.mrb[33].mxu0  ;;  %v1111_v25 = vpack.c.bf16 %v3537_v15, %v3533_v12  ;;  %3558 = vtanh.f32 %v808_v8 }
 0x11b   :  { %v4606_v29 = vpop.eup %3540  ;;  %v589_v30 = vadd.f32 %v4482_v10, %v588_v24  ;;  %v3049_v32 = vpop.f32.mrb[34].mxu0  ;;  %3560 = vtanh.f32 %v800_v13 }
 0x11c   :  { %v4609_v36 = vpop.eup %3542  ;;  %3562 = vtanh.f32 %v597_v23  ;;  %v600_v39 = vadd.f32 %v3049_v32, %v4482_v10  ;;  %v591_v40 = vpop.f32.mrb[35].mxu0  ;;  %3182 = vmatprep.mubr.bf16.mxu1 %v1111_v25 }
 0x11d   :  { %v4613_v43 = vpop.eup %3544  ;;  %3564 = vtanh.f32 %v589_v30  ;;  %v592_v44 = vadd.f32 %v4482_v10, %v591_v40  ;;  %3183 = vmatmul.mubr.bf16.gmra.mrb[88].mxu1 %v1112_v19  ;;  %v3108_v12 = vpop.f32.mrb[28].mxu1 }
 0x11e   :  { %v3547_v50 = vpop.eup %3546  ;;  %3566 = vtanh.f32 %v600_v39  ;;  %v828_v18 = vpop.f32.mrb[29].mxu1  ;;  %v837_v25 = vadd.f32 %v3108_v12, %v4482_v10 }
 0x11f   :  { %v3549_v57 = vpop.eup %3548  ;;  %3568 = vtanh.f32 %v592_v44  ;;  %v3109_v27 = vpop.f32.mrb[30].mxu1  ;;  %v829_v34 = vadd.f32 %v4482_v10, %v828_v18 }
 0x120   :  { %v3551_v61 = vpop.eup %3550  ;;  %3570 = vtanh.f32 %v821_v41  ;;  %v831_v39 = vpop.f32.mrb[31].mxu1  ;;  %v840_v42 = vadd.f32 %v3109_v27, %v4482_v10 }
 0x121   :  { %v3553_v62 = vpop.eup %3552  ;;  %v3052_v63 = vpop.f32.mrb[36].mxu0  ;;  %v1114_v2 = vpack.c.bf16 %v3551_v61, %v3547_v50  ;;  %3572 = vtanh.f32 %v813_v45  ;;  %v832_v48 = vadd.f32 %v4482_v10, %v831_v39 }
 0x122   :  { %v4626_v4 = vpop.eup %3554  ;;  %v613_v5 = vadd.f32 %v3052_v63, %v4482_v10  ;;  %v604_v7 = vpop.f32.mrb[37].mxu0  ;;  %v1113_v8 = vpack.c.bf16 %v3553_v62, %v3549_v57  ;;  %3574 = vtanh.f32 %v824_v52 }
 0x123   :  { %v4629_v13 = vpop.eup %3556  ;;  %v605_v14 = vadd.f32 %v4482_v10, %v604_v7  ;;  %v3053_v15 = vpop.f32.mrb[38].mxu0  ;;  %3576 = vtanh.f32 %v816_v59 }
 0x124   :  { %v4632_v19 = vpop.eup %3558  ;;  %3578 = vtanh.f32 %v613_v5  ;;  %v616_v23 = vadd.f32 %v3053_v15, %v4482_v10  ;;  %v607_v24 = vpop.f32.mrb[39].mxu0  ;;  %3186 = vmatprep.mubr.bf16.mxu1 %v1113_v8 }
 0x125   :  { %v4636_v30 = vpop.eup %3560  ;;  %3580 = vtanh.f32 %v605_v14  ;;  %v608_v32 = vadd.f32 %v4482_v10, %v607_v24  ;;  %3187 = vmatmul.mubr.bf16.gmra.mrb[92].mxu1 %v1114_v2  ;;  %v3112_v2 = vpop.f32.mrb[32].mxu1 }
 0x126   :  { %v3563_v41 = vpop.eup %3562  ;;  %3582 = vtanh.f32 %v616_v23  ;;  %v844_v12 = vpop.f32.mrb[33].mxu1  ;;  %v853_v23 = vadd.f32 %v3112_v2, %v4482_v10 }
 0x127   :  { %v3565_v45 = vpop.eup %3564  ;;  %3584 = vtanh.f32 %v608_v32  ;;  %v3113_v24 = vpop.f32.mrb[34].mxu1  ;;  %v845_v32 = vadd.f32 %v4482_v10, %v844_v12 }
 0x128   :  { %v3567_v50 = vpop.eup %3566  ;;  %3586 = vtanh.f32 %v837_v25 }
 0x129   :  { %v3569_v52 = vpop.eup %3568  ;;  %v3056_v56 = vpop.f32.mrb[40].mxu0  ;;  %v1116_v57 = vpack.c.bf16 %v3567_v50, %v3563_v41  ;;  %3588 = vtanh.f32 %v829_v34 }
 0x12a   :  { %v4646_v59 = vpop.eup %3570  ;;  %v629_v61 = vadd.f32 %v3056_v56, %v4482_v10  ;;  %v620_v62 = vpop.f32.mrb[41].mxu0  ;;  %v1115_v63 = vpack.c.bf16 %v3569_v52, %v3565_v45  ;;  %3590 = vtanh.f32 %v840_v42  ;;  %v856_v42 = vadd.f32 %v3113_v24, %v4482_v10 }
 0x12b   :  { %v4649_v5 = vpop.eup %3572  ;;  %v621_v7 = vadd.f32 %v4482_v10, %v620_v62  ;;  %v3057_v8 = vpop.f32.mrb[42].mxu0  ;;  %3592 = vtanh.f32 %v832_v48  ;;  %v3448_v48 = vld [vmem:[%s5716_s5 + $0x30] sm:$0xff]  }
 0x12c   :  { %v4652_v14 = vpop.eup %3574  ;;  %3594 = vtanh.f32 %v629_v61  ;;  %v632_v15 = vadd.f32 %v3057_v8, %v4482_v10  ;;  %v623_v18 = vpop.f32.mrb[43].mxu0  ;;  %3190 = vmatprep.mubr.bf16.mxu1 %v1115_v63  ;;  %3298 = vmatprep.subr.bf16.mxu0 %v3448_v48 }
 0x12d   :  { %v4656_v25 = vpop.eup %3576  ;;  %3596 = vtanh.f32 %v621_v7  ;;  %v624_v27 = vadd.f32 %v4482_v10, %v623_v18  ;;  %3191 = vmatmul.mubr.bf16.gmra.mrb[96].mxu1 %v1116_v57  ;;  %v847_v34 = vpop.f32.mrb[35].mxu1  ;;  %3299 = vmatpush3.bf16.msra.mxu0 %v3448_v48 }
 0x12e   :  { %v3579_v41 = vpop.eup %3578  ;;  %3598 = vtanh.f32 %v632_v15  ;;  %v848_v52 = vadd.f32 %v4482_v10, %v847_v34  ;;  %v3116_v12 = vpop.f32.mrb[36].mxu1 }
 0x12f   :  { %v3581_v50 = vpop.eup %3580  ;;  %3600 = vtanh.f32 %v624_v27 }
 0x130   :  { %v3583_v56 = vpop.eup %3582  ;;  %3602 = vtanh.f32 %v853_v23  ;;  %v860_v23 = vpop.f32.mrb[37].mxu1 }
 0x131   :  { %v3585_v57 = vpop.eup %3584  ;;  %v3060_v61 = vpop.f32.mrb[44].mxu0  ;;  %v1118_v62 = vpack.c.bf16 %v3583_v56, %v3579_v41  ;;  %3604 = vtanh.f32 %v845_v32  ;;  %v869_v41 = vadd.f32 %v3116_v12, %v4482_v10  ;;  %v861_v56 = vadd.f32 %v4482_v10, %v860_v23 }
 0x132   :  { %v4669_v63 = vpop.eup %3586  ;;  %v645_v2 = vadd.f32 %v3060_v61, %v4482_v10  ;;  %v636_v7 = vpop.f32.mrb[45].mxu0  ;;  %v1117_v8 = vpack.c.bf16 %v3585_v57, %v3581_v50  ;;  %3606 = vtanh.f32 %v856_v42 }
 0x133   :  { %v4672_v15 = vpop.eup %3588  ;;  %v637_v18 = vadd.f32 %v4482_v10, %v636_v7  ;;  %v3061_v24 = vpop.f32.mrb[46].mxu0  ;;  %3608 = vtanh.f32 %v848_v52 }
 0x134   :  { %v4675_v27 = vpop.eup %3590  ;;  %3610 = vtanh.f32 %v645_v2  ;;  %v648_v32 = vadd.f32 %v3061_v24, %v4482_v10  ;;  %v639_v34 = vpop.f32.mrb[47].mxu0  ;;  %3194 = vmatprep.mubr.bf16.mxu1 %v1117_v8 }
 0x135   :  { %v3117_v48 = vpop.f32.mrb[38].mxu1  ;;  %v4679_v50 = vpop.eup %3592  ;;  %3612 = vtanh.f32 %v637_v18  ;;  %v640_v42 = vadd.f32 %v4482_v10, %v639_v34  ;;  %3195 = vmatmul.mubr.bf16.gmra.mrb[100].mxu1 %v1118_v62 }
 0x136   :  { %v863_v52 = vpop.f32.mrb[39].mxu1  ;;  %v3595_v61 = vpop.eup %3594  ;;  %3614 = vtanh.f32 %v648_v32  ;;  %v872_v2 = vadd.f32 %v3117_v48, %v4482_v10 }
 0x137   :  { %v3597_v8 = vpop.eup %3596  ;;  %3616 = vtanh.f32 %v640_v42  ;;  %v864_v12 = vadd.f32 %v4482_v10, %v863_v52  ;;  %v3120_v48 = vpop.f32.mrb[40].mxu1 }
 0x138   :  { %v3599_v18 = vpop.eup %3598  ;;  %3618 = vtanh.f32 %v869_v41  ;;  %v876_v52 = vpop.f32.mrb[41].mxu1 }
 0x139   :  { %v3601_v62 = vpop.eup %3600  ;;  %v3064_v24 = vpop.f32.mrb[48].mxu0  ;;  %v1120_v23 = vpack.c.bf16 %v3599_v18, %v3595_v61  ;;  %3620 = vtanh.f32 %v861_v56  ;;  %v885_v18 = vadd.f32 %v3120_v48, %v4482_v10 }
 0x13a   :  { %v4689_v34 = vpop.eup %3602  ;;  %v661_v57 = vadd.f32 %v3064_v24, %v4482_v10  ;;  %v652_v32 = vpop.f32.mrb[49].mxu0  ;;  %v1119_v39 = vpack.c.bf16 %v3601_v62, %v3597_v8  ;;  %3622 = vtanh.f32 %v872_v2  ;;  %v877_v62 = vadd.f32 %v4482_v10, %v876_v52 }
 0x13b   :  { %v4692_v45 = vpop.eup %3604  ;;  %v653_v42 = vadd.f32 %v4482_v10, %v652_v32  ;;  %v3065_v7 = vpop.f32.mrb[50].mxu0  ;;  %3624 = vtanh.f32 %v864_v12 }
 0x13c   :  { %v4695_v41 = vpop.eup %3606  ;;  %3626 = vtanh.f32 %v661_v57  ;;  %v664_v56 = vadd.f32 %v3065_v7, %v4482_v10  ;;  %v655_v61 = vpop.f32.mrb[51].mxu0  ;;  %3198 = vmatprep.mubr.bf16.mxu1 %v1119_v39 }
 0x13d   :  { %v3121_v24 = vpop.f32.mrb[42].mxu1  ;;  %v4699_v8 = vpop.eup %3608  ;;  %3628 = vtanh.f32 %v653_v42  ;;  %v656_v2 = vadd.f32 %v4482_v10, %v655_v61  ;;  %3199 = vmatmul.mubr.bf16.gmra.mrb[104].mxu1 %v1120_v23 }
 0x13e   :  { %v879_v12 = vpop.f32.mrb[43].mxu1  ;;  %v3611_v57 = vpop.eup %3610  ;;  %3630 = vtanh.f32 %v664_v56  ;;  %v888_v7 = vadd.f32 %v3121_v24, %v4482_v10 }
 0x13f   :  { %v3613_v48 = vpop.eup %3612  ;;  %3632 = vtanh.f32 %v656_v2  ;;  %v880_v42 = vadd.f32 %v4482_v10, %v879_v12  ;;  %v3124_v24 = vpop.f32.mrb[44].mxu1 }
 0x140   :  { %v3615_v40 = vpop.eup %3614  ;;  %3634 = vtanh.f32 %v885_v18  ;;  %v892_v12 = vpop.f32.mrb[45].mxu1 }
 0x141   :  { %v3617_v23 = vpop.eup %3616  ;;  %v3068_v61 = vpop.f32.mrb[52].mxu0  ;;  %v1122_v52 = vpack.c.bf16 %v3615_v40, %v3611_v57  ;;  %3636 = vtanh.f32 %v877_v62  ;;  %v901_v57 = vadd.f32 %v3124_v24, %v4482_v10  ;;  %v3449_v24 = vld [vmem:[%s5716_s5 + $0x38] sm:$0xff]  }
 0x142   :  { %v4709_v44 = vpop.eup %3618  ;;  %v677_v32 = vadd.f32 %v3068_v61, %v4482_v10  ;;  %v668_v56 = vpop.f32.mrb[53].mxu0  ;;  %v1121_v49 = vpack.c.bf16 %v3617_v23, %v3613_v48  ;;  %3638 = vtanh.f32 %v888_v7  ;;  %v893_v23 = vadd.f32 %v4482_v10, %v892_v12  ;;  %3300 = vmatprep.subr.bf16.mxu0 %v3449_v24 }
 0x143   :  { %v4712_v54 = vpop.eup %3620  ;;  %v669_v2 = vadd.f32 %v4482_v10, %v668_v56  ;;  %v3069_v39 = vpop.f32.mrb[54].mxu0  ;;  %3640 = vtanh.f32 %v880_v42  ;;  %3301 = vmatpush3.bf16.msra.mxu0 %v3449_v24 }
 0x144   :  { %v4715_v18 = vpop.eup %3622  ;;  %3642 = vtanh.f32 %v677_v32  ;;  %v680_v40 = vadd.f32 %v3069_v39, %v4482_v10  ;;  %v671_v62 = vpop.f32.mrb[55].mxu0  ;;  %3202 = vmatprep.mubr.bf16.mxu1 %v1121_v49 }
 0x145   :  { %v3125_v61 = vpop.f32.mrb[46].mxu1  ;;  %v4719_v48 = vpop.eup %3624  ;;  %3644 = vtanh.f32 %v669_v2  ;;  %v672_v7 = vadd.f32 %v4482_v10, %v671_v62  ;;  %3203 = vmatmul.mubr.bf16.gmra.mrb[108].mxu1 %v1122_v52 }
 0x146   :  { %v895_v42 = vpop.f32.mrb[47].mxu1  ;;  %v3627_v32 = vpop.eup %3626  ;;  %3646 = vtanh.f32 %v680_v40  ;;  %v904_v39 = vadd.f32 %v3125_v61, %v4482_v10  ;;  %v4737_v61 = vld [vmem:[%s5715_s2] ss:$0 sm:$0xff] }
 0x147   :  { %v3629_v2 = vpop.eup %3628  ;;  %3648 = vtanh.f32 %v672_v7  ;;  %v896_v52 = vadd.f32 %v4482_v10, %v895_v42  ;;  %v3128_v10 = vpop.f32.mrb[48].mxu1 }
 0x148   :  { %v3631_v12 = vpop.eup %3630  ;;  %3650 = vtanh.f32 %v901_v57 }
 0x149   :  { %v3633_v62 = vpop.eup %3632  ;;  %v3072_v56 = vpop.f32.mrb[56].mxu0  ;;  %v1124_v6 = vpack.c.bf16 %v3631_v12, %v3627_v32  ;;  %3652 = vtanh.f32 %v893_v23 }
 0x14a   :  { %v4732_v40 = vpop.eup %3634  ;;  %v693_v49 = vadd.f32 %v4737_v61, %v3072_v56  ;;  %v684_v7 = vpop.f32.mrb[57].mxu0  ;;  %v1123_v9 = vpack.c.bf16 %v3633_v62, %v3629_v2  ;;  %3654 = vtanh.f32 %v904_v39  ;;  %v917_v56 = vadd.f32 %v4737_v61, %v3128_v10 }
 0x14b   :  { %5725 = vst [vmem:[#allocation3_spill] sm:$0xff] %v4732_v40  ;;  %v4740_v57 = vpop.eup %3636  ;;  %v685_v42 = vadd.f32 %v4737_v61, %v684_v7  ;;  %v3073_v32 = vpop.f32.mrb[58].mxu0  ;;  %3656 = vtanh.f32 %v896_v52 }
 0x14c   :  { %v908_v23 = vpop.f32.mrb[49].mxu1  ;;  %v4743_v24 = vpop.eup %3638  ;;  %3658 = vtanh.f32 %v693_v49  ;;  %v696_v12 = vadd.f32 %v4737_v61, %v3073_v32  ;;  %3206 = vmatprep.mubr.bf16.mxu1 %v1123_v9 }
 0x14d   :  { %5726 = vst [vmem:[#allocation4_spill] sm:$0xff] %v4743_v24  ;;  %v687_v33 = vpop.f32.mrb[59].mxu0  ;;  %v3129_v37 = vpop.f32.mrb[50].mxu1  ;;  %3660 = vtanh.f32 %v685_v42  ;;  %3207 = vmatmul.mubr.bf16.gmra.mrb[112].mxu1 %v1124_v6  ;;  %v909_v62 = vadd.f32 %v4737_v61, %v908_v23 }
 0x14e   :  { %v4747_v2 = vpop.eup %3640  ;;  %v688_v39 = vadd.f32 %v4737_v61, %v687_v33  ;;  %v911_v52 = vpop.f32.mrb[51].mxu1  ;;  %3662 = vtanh.f32 %v696_v12  ;;  %v920_v32 = vadd.f32 %v4737_v61, %v3129_v37 }
 0x14f   :  { %v3643_v49 = vpop.eup %3642  ;;  %v912_v42 = vadd.f32 %v4737_v61, %v911_v52  ;;  %v3132_v37 = vpop.f32.mrb[52].mxu1 }
 0x150   :  { %v3645_v10 = vpop.eup %3644  ;;  %3664 = vtanh.f32 %v688_v39  ;;  %v924_v52 = vpop.f32.mrb[53].mxu1 }
 0x151   :  { %v3647_v0 = vpop.eup %3646  ;;  %3666 = vtanh.f32 %v917_v56  ;;  %v3076_v6 = vpop.f32.mrb[60].mxu0 }
 0x152   :  { %v3649_v33 = vpop.eup %3648  ;;  %v1126_v23 = vpack.c.bf16 %v3647_v0, %v3643_v49  ;;  %3668 = vtanh.f32 %v909_v62  ;;  %v709_v7 = vadd.f32 %v4737_v61, %v3076_v6  ;;  %v700_v12 = vpop.f32.mrb[61].mxu0  ;;  %v933_v49 = vadd.f32 %v4737_v61, %v3132_v37 }
 0x153   :  { %v4757_v3 = vpop.eup %3650  ;;  %v1125_v35 = vpack.c.bf16 %v3649_v33, %v3645_v10  ;;  %3670 = vtanh.f32 %v920_v32  ;;  %v701_v39 = vadd.f32 %v4737_v61, %v700_v12  ;;  %v3077_v9 = vpop.f32.mrb[62].mxu0  ;;  %v925_v33 = vadd.f32 %v4737_v61, %v924_v52 }
 0x154   :  { %5727 = vst [vmem:[#allocation5_spill] sm:$0xff] %v4757_v3  ;;  %v4760_v38 = vpop.eup %3652  ;;  %3672 = vtanh.f32 %v912_v42  ;;  %v712_v0 = vadd.f32 %v4737_v61, %v3077_v9  ;;  %v703_v62 = vpop.f32.mrb[63].mxu0 }
 0x155   :  { %v4763_v56 = vpop.eup %3654  ;;  %3674 = vtanh.f32 %v709_v7  ;;  %3210 = vmatprep.mubr.bf16.mxu1 %v1125_v35  ;;  %v3133_v6 = vpop.f32.mrb[54].mxu1  ;;  %v704_v32 = vadd.f32 %v4737_v61, %v703_v62 }
 0x156   :  { %5728 = vst [vmem:[#allocation6_spill] sm:$0xff] %v4763_v56  ;;  %v4767_v10 = vpop.eup %3656  ;;  %3676 = vtanh.f32 %v701_v39  ;;  %3211 = vmatmul.mubr.bf16.gmra.mrb[116].mxu1 %v1126_v23  ;;  %v927_v42 = vpop.f32.mrb[55].mxu1  ;;  %v936_v9 = vadd.f32 %v4737_v61, %v3133_v6 }
 0x157   :  { %v3659_v7 = vpop.eup %3658  ;;  %3678 = vtanh.f32 %v712_v0  ;;  %v928_v39 = vadd.f32 %v4737_v61, %v927_v42  ;;  %v3136_v12 = vpop.f32.mrb[56].mxu1 }
 0x158   :  { %v3661_v37 = vpop.eup %3660  ;;  %3680 = vtanh.f32 %v704_v32  ;;  %v949_v6 = vadd.f32 %v4737_v61, %v3136_v12  ;;  %v940_v35 = vpop.f32.mrb[57].mxu1 }
 0x159   :  { %v3663_v40 = vpop.eup %3662  ;;  %3682 = vtanh.f32 %v933_v49  ;;  %v941_v32 = vadd.f32 %v4737_v61, %v940_v35  ;;  %v3137_v49 = vpop.f32.mrb[58].mxu1 }
 0x15a   :  { %v3665_v23 = vpop.eup %3664  ;;  %v1128_v62 = vpack.c.bf16 %v3663_v40, %v3659_v7  ;;  %3684 = vtanh.f32 %v925_v33  ;;  %v952_v40 = vadd.f32 %v4737_v61, %v3137_v49  ;;  %v943_v33 = vpop.f32.mrb[59].mxu1 }
 0x15b   :  { %v4777_v52 = vpop.eup %3666  ;;  %v1127_v24 = vpack.c.bf16 %v3665_v23, %v3661_v37  ;;  %3686 = vtanh.f32 %v936_v9  ;;  %v944_v12 = vadd.f32 %v4737_v61, %v943_v33  ;;  %v3140_v49 = vpop.f32.mrb[60].mxu1 }
 0x15c   :  { %5729 = vst [vmem:[#allocation7_spill] sm:$0xff] %v4777_v52  ;;  %v4779_v0 = vpop.eup %3668  ;;  %3688 = vtanh.f32 %v928_v39  ;;  %v965_v7 = vadd.f32 %v4737_v61, %v3140_v49 }
 0x15d   :  { %v4782_v3 = vpop.eup %3670  ;;  %3214 = vmatprep.mubr.bf16.mxu1 %v1127_v24  ;;  %3690 = vtanh.f32 %v949_v6 }
 0x15e   :  { %v4785_v42 = vpop.eup %3672  ;;  %3215 = vmatmul.mubr.bf16.gmra.mrb[120].mxu1 %v1128_v62  ;;  %3692 = vtanh.f32 %v941_v32  ;;  %v956_v32 = vpop.f32.mrb[61].mxu1 }
 0x15f   :  { %v3675_v9 = vpop.eup %3674  ;;  %3694 = vtanh.f32 %v952_v40  ;;  %v957_v33 = vadd.f32 %v4737_v61, %v956_v32  ;;  %v3141_v24 = vpop.f32.mrb[62].mxu1  ;;  %v5732_v32 = vpack.c.bf16 %v4550_v60, %v4543_v51  ;;  %v5735_v51 = vpack.c.bf16 %v4566_v21, %v4560_v11 }
 0x160   :  { %v3677_v37 = vpop.eup %3676  ;;  %3696 = vtanh.f32 %v944_v12  ;;  %v959_v12 = vpop.f32.mrb[63].mxu1  ;;  %v5736_v60 = vpack.c.bf16 %v4593_v1, %v4586_v53  ;;  %v5740_v11 = vpack.c.bf16 %v4636_v30, %v4629_v13  ;;  %v5742_v21 = vpack.c.bf16 %v4656_v25, %v4649_v5 }
 0x161   :  { %v3679_v35 = vpop.eup %3678  ;;  %3698 = vtanh.f32 %v965_v7  ;;  %v5745_v53 = vpack.c.bf16 %v4675_v27, %v4669_v63  ;;  %v5747_v1 = vpack.c.bf16 %v4695_v41, %v4689_v34  ;;  %v5755_v63 = vld [vmem:[#allocation6_spill] sm:$0xff] }
 0x162   :  { %v3681_v39 = vpop.eup %3680  ;;  %v1130_v23 = vpack.c.bf16 %v3679_v35, %v3675_v9  ;;  %v968_v9 = vadd.f32 %v4737_v61, %v3141_v24  ;;  %v5730_v35 = vpack.c.bf16 %v4527_v31, %v4520_v22  ;;  %3700 = vtanh.f32 %v957_v33 }
 0x163   :  { %v4793_v62 = vpop.eup %3682  ;;  %v1129_v6 = vpack.c.bf16 %v3681_v39, %v3677_v37  ;;  %v960_v39 = vadd.f32 %v4737_v61, %v959_v12  ;;  %v5731_v61 = vpack.c.bf16 %v4523_v26, %v4517_v17  ;;  %v5733_v17 = vpack.c.bf16 %v4546_v55, %v4540_v46 }
 0x164   :  { %v4795_v56 = vpop.eup %3684  ;;  %3702 = vtanh.f32 %v968_v9  ;;  %v5734_v26 = vpack.c.bf16 %v4570_v28, %v4563_v16  ;;  %v5738_v46 = vpack.c.bf16 %v4613_v43, %v4606_v29  ;;  %v5739_v55 = vpack.c.bf16 %v4609_v36, %v4603_v20  ;;  %v5751_v43 = vld [vmem:[#allocation4_spill] sm:$0xff] }
 0x165   :  { %v4798_v52 = vpop.eup %3686  ;;  %3218 = vmatprep.mubr.bf16.mxu1 %v1129_v6  ;;  %3704 = vtanh.f32 %v960_v39  ;;  %v5741_v16 = vpack.c.bf16 %v4632_v19, %v4626_v4  ;;  %v5743_v28 = vpack.c.bf16 %v4652_v14, %v4646_v59  ;;  %v5748_v20 = vpack.c.bf16 %v4719_v48, %v4712_v54  ;;  %v5752_v4 = vld [vmem:[#allocation3_spill] sm:$0xff]  ;;  %v4905_v54 = vld [vmem:[%s5717_s4] ss:$0 sm:$0xff] }
 0x166   :  { %v4801_v40 = vpop.eup %3688  ;;  %3219 = vmatmul.mubr.bf16.gmra.mrb[124].mxu1 %v1130_v23  ;;  %v1158_v37 = vpack.c.bf16 %v4798_v52, %v4793_v62  ;;  %v5749_v29 = vpack.c.bf16 %v4715_v18, %v4709_v44  ;;  %v5750_v36 = vpack.c.bf16 %v4747_v2, %v4740_v57  ;;  %v5753_v13 = vpack.c.bf16 %v5751_v43, %v5752_v4 }
 0x167   :  { %3222 = vmatprep.mubr.bf16.mxu1 %v5730_v35  ;;  %v1157_v6 = vpack.c.bf16 %v4801_v40, %v4795_v56  ;;  %v4812_v49 = vpop.eup %3690  ;;  %v5754_v19 = vpack.c.bf16 %v4767_v10, %v4760_v38 }
 0x168   :  { %v4814_v7 = vpop.eup %3692 }
 0x169   :  { %v4816_v24 = vpop.eup %3694 }
 0x16a   :  { %v4818_v23 = vpop.eup %3696 }
 0x16b   :  { %v1159_v31 = vpack.c.bf16 %v4818_v23, %v4814_v7  ;;  %v4830_v33 = vpop.eup %3698  ;;  %v5761_v23 = vpack.c.bf16 %v4816_v24, %v4812_v49 }
 0x16c   :  { %v4832_v9 = vpop.eup %3700 }
 0x16e   :  { %3223 = vmatmul.mubr.bf16.gmra.mrb[128].mxu1 %v5731_v61  ;;  %v4834_v12 = vpop.eup %3702  ;;  %v5737_v61 = vpack.c.bf16 %v4589_v58, %v4583_v47  ;;  %v5744_v47 = vpack.c.bf16 %v4679_v50, %v4672_v15  ;;  %v5746_v58 = vpack.c.bf16 %v4699_v8, %v4692_v45  ;;  %v5756_v15 = vld [vmem:[#allocation5_spill] sm:$0xff]  ;;  %v5758_v50 = vpack.c.bf16 %v4785_v42, %v4779_v0 }
 0x16f   :  { %3226 = vmatprep.mubr.bf16.mxu1 %v5732_v32  ;;  %v4836_v35 = vpop.eup %3704  ;;  %v1162_v39 = vpack.c.bf16 %v4834_v12, %v4830_v33  ;;  %v5757_v27 = vpack.c.bf16 %v5755_v63, %v5756_v15 }
 0x170   :  { %v1161_v22 = vpack.c.bf16 %v4836_v35, %v4832_v9 }
 0x176   :  { %3227 = vmatmul.mubr.bf16.gmra.mrb[132].mxu1 %v5733_v17  ;;  %v5759_v17 = vld [vmem:[#allocation7_spill] sm:$0xff] }
 0x177   :  { %3230 = vmatprep.mubr.bf16.mxu1 %v5734_v26  ;;  %v5760_v0 = vpack.c.bf16 %v4782_v3, %v5759_v17 }
 0x17e   :  { %3231 = vmatmul.mubr.bf16.gmra.mrb[136].mxu1 %v5735_v51 }
 0x17f   :  { %3234 = vmatprep.mubr.bf16.mxu1 %v5736_v60 }
 0x186   :  { %3235 = vmatmul.mubr.bf16.gmra.mrb[140].mxu1 %v5737_v61 }
 0x187   :  { %3238 = vmatprep.mubr.bf16.mxu1 %v5738_v46 }
 0x18e   :  { %3239 = vmatmul.mubr.bf16.gmra.mrb[144].mxu1 %v5739_v55 }
 0x18f   :  { %3242 = vmatprep.mubr.bf16.mxu1 %v5740_v11 }
 0x196   :  { %3243 = vmatmul.mubr.bf16.gmra.mrb[148].mxu1 %v5741_v16 }
 0x197   :  { %3246 = vmatprep.mubr.bf16.mxu1 %v5742_v21 }
 0x19e   :  { %3247 = vmatmul.mubr.bf16.gmra.mrb[152].mxu1 %v5743_v28 }
 0x19f   :  { %3250 = vmatprep.mubr.bf16.mxu1 %v5744_v47 }
 0x1a6   :  { %3251 = vmatmul.mubr.bf16.gmra.mrb[156].mxu1 %v5745_v53 }
 0x1a7   :  { %3254 = vmatprep.mubr.bf16.mxu1 %v5746_v58 }
 0x1ae   :  { %3255 = vmatmul.mubr.bf16.gmra.mrb[160].mxu1 %v5747_v1 }
 0x1af   :  { %3258 = vmatprep.mubr.bf16.mxu1 %v5748_v20 }
 0x1b6   :  { %3259 = vmatmul.mubr.bf16.gmra.mrb[164].mxu1 %v5749_v29 }
 0x1b7   :  { %3262 = vmatprep.mubr.bf16.mxu1 %v5750_v36 }
 0x1be   :  { %3263 = vmatmul.mubr.bf16.gmra.mrb[168].mxu1 %v5753_v13 }
 0x1bf   :  { %3266 = vmatprep.mubr.bf16.mxu1 %v5754_v19 }
 0x1c0   :  { %v3160_v30 = vpop.f32.mrb[64].mxu1 }
 0x1c1   :  { %v1277_v44 = vadd.f32 %v3160_v30, %v4905_v54  ;;  %v1268_v59 = vpop.f32.mrb[65].mxu1 }
 0x1c2   :  { %v1269_v5 = vadd.f32 %v4905_v54, %v1268_v59  ;;  %v3161_v14 = vpop.f32.mrb[66].mxu1 }
 0x1c3   :  { %3706 = vtanh.f32 %v1277_v44  ;;  %v1280_v25 = vadd.f32 %v3161_v14, %v4905_v54  ;;  %v1271_v45 = vpop.f32.mrb[67].mxu1 }
 0x1c4   :  { %3708 = vtanh.f32 %v1269_v5  ;;  %v1272_v38 = vadd.f32 %v4905_v54, %v1271_v45 }
 0x1c5   :  { %3710 = vtanh.f32 %v1280_v25 }
 0x1c6   :  { %3267 = vmatmul.mubr.bf16.gmra.mrb[172].mxu1 %v5757_v27  ;;  %3712 = vtanh.f32 %v1272_v38 }
 0x1c7   :  { %3270 = vmatprep.mubr.bf16.mxu1 %v5758_v50 }
 0x1c8   :  { %v3164_v34 = vpop.f32.mrb[68].mxu1 }
 0x1c9   :  { %v1293_v41 = vadd.f32 %v3164_v34, %v4905_v54  ;;  %v1284_v8 = vpop.f32.mrb[69].mxu1 }
 0x1ca   :  { %v1285_v18 = vadd.f32 %v4905_v54, %v1284_v8  ;;  %v3165_v48 = vpop.f32.mrb[70].mxu1 }
 0x1cb   :  { %3714 = vtanh.f32 %v1293_v41  ;;  %v1296_v57 = vadd.f32 %v3165_v48, %v4905_v54  ;;  %v1287_v2 = vpop.f32.mrb[71].mxu1 }
 0x1cc   :  { %3716 = vtanh.f32 %v1285_v18  ;;  %v1288_v10 = vadd.f32 %v4905_v54, %v1287_v2 }
 0x1cd   :  { %v3707_v32 = vpop.eup %3706  ;;  %3718 = vtanh.f32 %v1296_v57 }
 0x1ce   :  { %3271 = vmatmul.mubr.bf16.gmra.mrb[176].mxu1 %v5760_v0  ;;  %v3709_v42 = vpop.eup %3708  ;;  %3720 = vtanh.f32 %v1288_v10 }
 0x1cf   :  { %3274 = vmatprep.mubr.bf16.mxu1 %v1157_v6  ;;  %v3711_v26 = vpop.eup %3710 }
 0x1d0   :  { %v3713_v51 = vpop.eup %3712  ;;  %v3168_v60 = vpop.f32.mrb[72].mxu1  ;;  %v1908_v61 = vpack.c.bf16 %v3711_v26, %v3707_v32 }
 0x1d1   :  { %v1309_v46 = vadd.f32 %v3168_v60, %v4905_v54  ;;  %v1300_v55 = vpop.f32.mrb[73].mxu1  ;;  %v1907_v11 = vpack.c.bf16 %v3713_v51, %v3709_v42 }
 0x1d2   :  { %v1301_v16 = vadd.f32 %v4905_v54, %v1300_v55  ;;  %v3169_v21 = vpop.f32.mrb[74].mxu1 }
 0x1d3   :  { %3722 = vtanh.f32 %v1309_v46  ;;  %v1312_v3 = vadd.f32 %v3169_v21, %v4905_v54  ;;  %v1303_v28 = vpop.f32.mrb[75].mxu1  ;;  %3302 = vmatprep.mubr.bf16.mxu0 %v1907_v11 }
 0x1d4   :  { %3724 = vtanh.f32 %v1301_v16  ;;  %v1304_v56 = vadd.f32 %v4905_v54, %v1303_v28  ;;  %3303 = vmatmul.mubr.bf16.vlgmr.msra.gmra.mrb[64].mxu0 %v1908_v61 }
 0x1d5   :  { %v3715_v40 = vpop.eup %3714  ;;  %3726 = vtanh.f32 %v1312_v3 }
 0x1d6   :  { %3275 = vmatmul.mubr.bf16.gmra.mrb[180].mxu1 %v1158_v37  ;;  %v3717_v6 = vpop.eup %3716  ;;  %3728 = vtanh.f32 %v1304_v56 }
 0x1d7   :  { %3278 = vmatprep.mubr.bf16.mxu1 %v1159_v31  ;;  %v3719_v47 = vpop.eup %3718 }
 0x1d8   :  { %v3721_v53 = vpop.eup %3720  ;;  %v3172_v58 = vpop.f32.mrb[76].mxu1  ;;  %v1910_v1 = vpack.c.bf16 %v3719_v47, %v3715_v40 }
 0x1d9   :  { %v1325_v20 = vadd.f32 %v3172_v58, %v4905_v54  ;;  %v1316_v29 = vpop.f32.mrb[77].mxu1  ;;  %v1909_v36 = vpack.c.bf16 %v3721_v53, %v3717_v6 }
 0x1da   :  { %v1317_v43 = vadd.f32 %v4905_v54, %v1316_v29  ;;  %v3173_v4 = vpop.f32.mrb[78].mxu1 }
 0x1db   :  { %3730 = vtanh.f32 %v1325_v20  ;;  %v1328_v52 = vadd.f32 %v3173_v4, %v4905_v54  ;;  %v1319_v62 = vpop.f32.mrb[79].mxu1  ;;  %3306 = vmatprep.mubr.bf16.mxu0 %v1909_v36 }
 0x1dc   :  { %3732 = vtanh.f32 %v1317_v43  ;;  %v1320_v37 = vadd.f32 %v4905_v54, %v1319_v62  ;;  %3307 = vmatmul.mubr.bf16.gmra.mrb[68].mxu0 %v1910_v1 }
 0x1dd   :  { %v3723_v7 = vpop.eup %3722  ;;  %3734 = vtanh.f32 %v1328_v52 }
 0x1de   :  { %3279 = vmatmul.mubr.bf16.gmra.mrb[184].mxu1 %v5761_v23  ;;  %v3725_v31 = vpop.eup %3724  ;;  %3736 = vtanh.f32 %v1320_v37 }
 0x1df   :  { %3282 = vmatprep.mubr.bf16.mxu1 %v1161_v22  ;;  %v3727_v13 = vpop.eup %3726 }
 0x1e0   :  { %v3729_v19 = vpop.eup %3728  ;;  %v3176_v30 = vpop.f32.mrb[80].mxu1  ;;  %v1912_v44 = vpack.c.bf16 %v3727_v13, %v3723_v7 }
 0x1e1   :  { %v1341_v59 = vadd.f32 %v3176_v30, %v4905_v54  ;;  %v1332_v5 = vpop.f32.mrb[81].mxu1  ;;  %v1911_v14 = vpack.c.bf16 %v3729_v19, %v3725_v31 }
 0x1e2   :  { %v1333_v25 = vadd.f32 %v4905_v54, %v1332_v5  ;;  %v3177_v45 = vpop.f32.mrb[82].mxu1 }
 0x1e3   :  { %3738 = vtanh.f32 %v1341_v59  ;;  %v1344_v49 = vadd.f32 %v3177_v45, %v4905_v54  ;;  %v1335_v24 = vpop.f32.mrb[83].mxu1  ;;  %3310 = vmatprep.mubr.bf16.mxu0 %v1911_v14 }
 0x1e4   :  { %3740 = vtanh.f32 %v1333_v25  ;;  %v1336_v9 = vadd.f32 %v4905_v54, %v1335_v24  ;;  %3311 = vmatmul.mubr.bf16.gmra.mrb[72].mxu0 %v1912_v44 }
 0x1e5   :  { %v3731_v22 = vpop.eup %3730  ;;  %3742 = vtanh.f32 %v1344_v49 }
 0x1e6   :  { %3283 = vmatmul.mubr.bf16.gmra.mrb[188].mxu1 %v1162_v39  ;;  %v3733_v35 = vpop.eup %3732  ;;  %3744 = vtanh.f32 %v1336_v9 }
 0x1e7   :  { %v3735_v38 = vpop.eup %3734 }
 0x1e8   :  { %v3737_v63 = vpop.eup %3736  ;;  %v3180_v15 = vpop.f32.mrb[84].mxu1  ;;  %v1914_v27 = vpack.c.bf16 %v3735_v38, %v3731_v22 }
 0x1e9   :  { %v1357_v50 = vadd.f32 %v3180_v15, %v4905_v54  ;;  %v1348_v34 = vpop.f32.mrb[85].mxu1  ;;  %v1913_v41 = vpack.c.bf16 %v3737_v63, %v3733_v35 }
 0x1ea   :  { %v1349_v8 = vadd.f32 %v4905_v54, %v1348_v34  ;;  %v3181_v18 = vpop.f32.mrb[86].mxu1 }
 0x1eb   :  { %3746 = vtanh.f32 %v1357_v50  ;;  %v1360_v48 = vadd.f32 %v3181_v18, %v4905_v54  ;;  %v1351_v57 = vpop.f32.mrb[87].mxu1  ;;  %3314 = vmatprep.mubr.bf16.mxu0 %v1913_v41 }
 0x1ec   :  { %3748 = vtanh.f32 %v1349_v8  ;;  %v1352_v33 = vadd.f32 %v4905_v54, %v1351_v57  ;;  %3315 = vmatmul.mubr.bf16.gmra.mrb[76].mxu0 %v1914_v27 }
 0x1ed   :  { %v3739_v12 = vpop.eup %3738  ;;  %3750 = vtanh.f32 %v1360_v48 }
 0x1ee   :  { %v3741_v39 = vpop.eup %3740  ;;  %3752 = vtanh.f32 %v1352_v33 }
 0x1ef   :  { %v3743_v2 = vpop.eup %3742 }
 0x1f0   :  { %v3745_v10 = vpop.eup %3744  ;;  %v3184_v32 = vpop.f32.mrb[88].mxu1  ;;  %v1916_v17 = vpack.c.bf16 %v3743_v2, %v3739_v12 }
 0x1f1   :  { %v1373_v0 = vadd.f32 %v3184_v32, %v4905_v54  ;;  %v1364_v42 = vpop.f32.mrb[89].mxu1  ;;  %v1915_v26 = vpack.c.bf16 %v3745_v10, %v3741_v39 }
 0x1f2   :  { %v1365_v51 = vadd.f32 %v4905_v54, %v1364_v42  ;;  %v3185_v60 = vpop.f32.mrb[90].mxu1 }
 0x1f3   :  { %3754 = vtanh.f32 %v1373_v0  ;;  %v1376_v61 = vadd.f32 %v3185_v60, %v4905_v54  ;;  %v1367_v46 = vpop.f32.mrb[91].mxu1  ;;  %3318 = vmatprep.mubr.bf16.mxu0 %v1915_v26 }
 0x1f4   :  { %3756 = vtanh.f32 %v1365_v51  ;;  %v1368_v55 = vadd.f32 %v4905_v54, %v1367_v46  ;;  %3319 = vmatmul.mubr.bf16.gmra.mrb[80].mxu0 %v1916_v17 }
 0x1f5   :  { %v3747_v11 = vpop.eup %3746  ;;  %3758 = vtanh.f32 %v1376_v61 }
 0x1f6   :  { %v3749_v16 = vpop.eup %3748  ;;  %3760 = vtanh.f32 %v1368_v55 }
 0x1f7   :  { %v3751_v21 = vpop.eup %3750 }
 0x1f8   :  { %v3753_v3 = vpop.eup %3752  ;;  %v3188_v28 = vpop.f32.mrb[92].mxu1  ;;  %v1918_v56 = vpack.c.bf16 %v3751_v21, %v3747_v11 }
 0x1f9   :  { %v1389_v40 = vadd.f32 %v3188_v28, %v4905_v54  ;;  %v1380_v6 = vpop.f32.mrb[93].mxu1  ;;  %v1917_v47 = vpack.c.bf16 %v3753_v3, %v3749_v16 }
 0x1fa   :  { %v1381_v53 = vadd.f32 %v4905_v54, %v1380_v6  ;;  %v3189_v58 = vpop.f32.mrb[94].mxu1 }
 0x1fb   :  { %3762 = vtanh.f32 %v1389_v40  ;;  %v1392_v1 = vadd.f32 %v3189_v58, %v4905_v54  ;;  %v1383_v20 = vpop.f32.mrb[95].mxu1  ;;  %3322 = vmatprep.mubr.bf16.mxu0 %v1917_v47  ;;  %v12_v58 = vstv %s5718_s6 }
 0x1fc   :  { %3764 = vtanh.f32 %v1381_v53  ;;  %v1384_v29 = vadd.f32 %v4905_v54, %v1383_v20  ;;  %3323 = vmatmul.mubr.bf16.gmra.mrb[84].mxu0 %v1918_v56  ;;  %13 = vst [vmem:[#allocation2] sm:$0x1] %v12_v58 }
 0x1fd   :  { %v3755_v36 = vpop.eup %3754  ;;  %3766 = vtanh.f32 %v1392_v1 }
 0x1fe   :  { %v3757_v43 = vpop.eup %3756  ;;  %3768 = vtanh.f32 %v1384_v29 }
 0x1ff   :  { %v3759_v4 = vpop.eup %3758 }
 0x200   :  { %v3761_v52 = vpop.eup %3760  ;;  %v3192_v62 = vpop.f32.mrb[96].mxu1  ;;  %v1920_v37 = vpack.c.bf16 %v3759_v4, %v3755_v36 }
 0x201   :  { %v1405_v7 = vadd.f32 %v3192_v62, %v4905_v54  ;;  %v1396_v23 = vpop.f32.mrb[97].mxu1  ;;  %v1919_v31 = vpack.c.bf16 %v3761_v52, %v3757_v43 }
 0x202   :  { %v1397_v13 = vadd.f32 %v4905_v54, %v1396_v23  ;;  %v3193_v19 = vpop.f32.mrb[98].mxu1 }
 0x203   :  { %3770 = vtanh.f32 %v1405_v7  ;;  %v1408_v30 = vadd.f32 %v3193_v19, %v4905_v54  ;;  %v1399_v44 = vpop.f32.mrb[99].mxu1  ;;  %3326 = vmatprep.mubr.bf16.mxu0 %v1919_v31 }
 0x204   :  { %3772 = vtanh.f32 %v1397_v13  ;;  %v1400_v59 = vadd.f32 %v4905_v54, %v1399_v44  ;;  %3327 = vmatmul.mubr.bf16.gmra.mrb[88].mxu0 %v1920_v37 }
 0x205   :  { %v3763_v5 = vpop.eup %3762  ;;  %3774 = vtanh.f32 %v1408_v30 }
 0x206   :  { %v3765_v14 = vpop.eup %3764  ;;  %3776 = vtanh.f32 %v1400_v59 }
 0x207   :  { %v3767_v25 = vpop.eup %3766 }
 0x208   :  { %v3769_v45 = vpop.eup %3768  ;;  %v3196_v49 = vpop.f32.mrb[100].mxu1  ;;  %v1922_v24 = vpack.c.bf16 %v3767_v25, %v3763_v5 }
 0x209   :  { %v1421_v9 = vadd.f32 %v3196_v49, %v4905_v54  ;;  %v1412_v22 = vpop.f32.mrb[101].mxu1  ;;  %v1921_v35 = vpack.c.bf16 %v3769_v45, %v3765_v14 }
 0x20a   :  { %v1413_v38 = vadd.f32 %v4905_v54, %v1412_v22  ;;  %v3197_v63 = vpop.f32.mrb[102].mxu1 }
 0x20b   :  { %3778 = vtanh.f32 %v1421_v9  ;;  %v1424_v15 = vadd.f32 %v3197_v63, %v4905_v54  ;;  %v1415_v27 = vpop.f32.mrb[103].mxu1  ;;  %3330 = vmatprep.mubr.bf16.mxu0 %v1921_v35 }
 0x20c   :  { %3780 = vtanh.f32 %v1413_v38  ;;  %v1416_v50 = vadd.f32 %v4905_v54, %v1415_v27  ;;  %3331 = vmatmul.mubr.bf16.gmra.mrb[92].mxu0 %v1922_v24 }
 0x20d   :  { %v3771_v34 = vpop.eup %3770  ;;  %3782 = vtanh.f32 %v1424_v15 }
 0x20e   :  { %v3773_v41 = vpop.eup %3772  ;;  %3784 = vtanh.f32 %v1416_v50 }
 0x20f   :  { %v3775_v8 = vpop.eup %3774 }
 0x210   :  { %v3777_v18 = vpop.eup %3776  ;;  %v3200_v48 = vpop.f32.mrb[104].mxu1  ;;  %v1924_v57 = vpack.c.bf16 %v3775_v8, %v3771_v34 }
 0x211   :  { %v1437_v33 = vadd.f32 %v3200_v48, %v4905_v54  ;;  %v1428_v12 = vpop.f32.mrb[105].mxu1  ;;  %v1923_v39 = vpack.c.bf16 %v3777_v18, %v3773_v41 }
 0x212   :  { %v1429_v2 = vadd.f32 %v4905_v54, %v1428_v12  ;;  %v3201_v10 = vpop.f32.mrb[106].mxu1 }
 0x213   :  { %3786 = vtanh.f32 %v1437_v33  ;;  %v1440_v32 = vadd.f32 %v3201_v10, %v4905_v54  ;;  %v1431_v17 = vpop.f32.mrb[107].mxu1  ;;  %3334 = vmatprep.mubr.bf16.mxu0 %v1923_v39 }
 0x214   :  { %3788 = vtanh.f32 %v1429_v2  ;;  %v1432_v0 = vadd.f32 %v4905_v54, %v1431_v17  ;;  %3335 = vmatmul.mubr.bf16.gmra.mrb[96].mxu0 %v1924_v57 }
 0x215   :  { %v3779_v42 = vpop.eup %3778  ;;  %3790 = vtanh.f32 %v1440_v32 }
 0x216   :  { %v3781_v26 = vpop.eup %3780  ;;  %3792 = vtanh.f32 %v1432_v0 }
 0x217   :  { %v3783_v51 = vpop.eup %3782 }
 0x218   :  { %v3785_v60 = vpop.eup %3784  ;;  %v3204_v61 = vpop.f32.mrb[108].mxu1  ;;  %v1926_v46 = vpack.c.bf16 %v3783_v51, %v3779_v42 }
 0x219   :  { %v1453_v55 = vadd.f32 %v3204_v61, %v4905_v54  ;;  %v1444_v11 = vpop.f32.mrb[109].mxu1  ;;  %v1925_v16 = vpack.c.bf16 %v3785_v60, %v3781_v26 }
 0x21a   :  { %v1445_v21 = vadd.f32 %v4905_v54, %v1444_v11  ;;  %v3205_v3 = vpop.f32.mrb[110].mxu1 }
 0x21b   :  { %3794 = vtanh.f32 %v1453_v55  ;;  %v1456_v28 = vadd.f32 %v3205_v3, %v4905_v54  ;;  %v1447_v56 = vpop.f32.mrb[111].mxu1  ;;  %3338 = vmatprep.mubr.bf16.mxu0 %v1925_v16 }
 0x21c   :  { %3796 = vtanh.f32 %v1445_v21  ;;  %v1448_v40 = vadd.f32 %v4905_v54, %v1447_v56  ;;  %3339 = vmatmul.mubr.bf16.gmra.mrb[100].mxu0 %v1926_v46 }
 0x21d   :  { %v3787_v6 = vpop.eup %3786  ;;  %3798 = vtanh.f32 %v1456_v28 }
 0x21e   :  { %v3789_v47 = vpop.eup %3788  ;;  %3800 = vtanh.f32 %v1448_v40 }
 0x21f   :  { %v3791_v53 = vpop.eup %3790 }
 0x220   :  { %v3793_v1 = vpop.eup %3792  ;;  %v3208_v20 = vpop.f32.mrb[112].mxu1  ;;  %v1928_v29 = vpack.c.bf16 %v3791_v53, %v3787_v6 }
 0x221   :  { %v1469_v36 = vadd.f32 %v3208_v20, %v4905_v54  ;;  %v1460_v43 = vpop.f32.mrb[113].mxu1  ;;  %v1927_v4 = vpack.c.bf16 %v3793_v1, %v3789_v47 }
 0x222   :  { %v1461_v52 = vadd.f32 %v4905_v54, %v1460_v43  ;;  %v3209_v62 = vpop.f32.mrb[114].mxu1 }
 0x223   :  { %3802 = vtanh.f32 %v1469_v36  ;;  %v1472_v37 = vadd.f32 %v3209_v62, %v4905_v54  ;;  %v1463_v7 = vpop.f32.mrb[115].mxu1  ;;  %3342 = vmatprep.mubr.bf16.mxu0 %v1927_v4 }
 0x224   :  { %3804 = vtanh.f32 %v1461_v52  ;;  %v1464_v23 = vadd.f32 %v4905_v54, %v1463_v7  ;;  %3343 = vmatmul.mubr.bf16.gmra.mrb[104].mxu0 %v1928_v29 }
 0x225   :  { %v3795_v31 = vpop.eup %3794  ;;  %3806 = vtanh.f32 %v1472_v37 }
 0x226   :  { %v3797_v13 = vpop.eup %3796  ;;  %3808 = vtanh.f32 %v1464_v23 }
 0x227   :  { %v3799_v19 = vpop.eup %3798 }
 0x228   :  { %v3801_v30 = vpop.eup %3800  ;;  %v1930_v59 = vpack.c.bf16 %v3799_v19, %v3795_v31 }
 0x229   :  { %v3212_v44 = vpop.f32.mrb[116].mxu1  ;;  %v1929_v25 = vpack.c.bf16 %v3801_v30, %v3797_v13 }
 0x22a   :  { %v1485_v5 = vadd.f32 %v3212_v44, %v4905_v54  ;;  %v1476_v14 = vpop.f32.mrb[117].mxu1 }
 0x22b   :  { %v1477_v45 = vadd.f32 %v4905_v54, %v1476_v14  ;;  %v3213_v49 = vpop.f32.mrb[118].mxu1  ;;  %3346 = vmatprep.mubr.bf16.mxu0 %v1929_v25 }
 0x22c   :  { %3810 = vtanh.f32 %v1485_v5  ;;  %v1488_v24 = vadd.f32 %v3213_v49, %v4905_v54  ;;  %v1479_v9 = vpop.f32.mrb[119].mxu1  ;;  %3347 = vmatmul.mubr.bf16.gmra.mrb[108].mxu0 %v1930_v59 }
 0x22d   :  { %3812 = vtanh.f32 %v1477_v45  ;;  %v1480_v22 = vadd.f32 %v4905_v54, %v1479_v9  ;;  %v3803_v35 = vpop.eup %3802 }
 0x22e   :  { %3814 = vtanh.f32 %v1488_v24  ;;  %v3805_v38 = vpop.eup %3804 }
 0x22f   :  { %3816 = vtanh.f32 %v1480_v22  ;;  %v3807_v63 = vpop.eup %3806 }
 0x230   :  { %v3809_v15 = vpop.eup %3808  ;;  %v1932_v50 = vpack.c.bf16 %v3807_v63, %v3803_v35 }
 0x231   :  { %v3216_v27 = vpop.f32.mrb[120].mxu1  ;;  %v1931_v8 = vpack.c.bf16 %v3809_v15, %v3805_v38 }
 0x232   :  { %v1501_v34 = vadd.f32 %v3216_v27, %v4905_v54  ;;  %v1492_v41 = vpop.f32.mrb[121].mxu1 }
 0x233   :  { %v1493_v18 = vadd.f32 %v4905_v54, %v1492_v41  ;;  %v3217_v48 = vpop.f32.mrb[122].mxu1  ;;  %3350 = vmatprep.mubr.bf16.mxu0 %v1931_v8 }
 0x234   :  { %3818 = vtanh.f32 %v1501_v34  ;;  %v1504_v57 = vadd.f32 %v3217_v48, %v4905_v54  ;;  %v1495_v33 = vpop.f32.mrb[123].mxu1  ;;  %3351 = vmatmul.mubr.bf16.gmra.mrb[112].mxu0 %v1932_v50 }
 0x235   :  { %3820 = vtanh.f32 %v1493_v18  ;;  %v1496_v12 = vadd.f32 %v4905_v54, %v1495_v33 }
 0x236   :  { %v3811_v39 = vpop.eup %3810  ;;  %3822 = vtanh.f32 %v1504_v57 }
 0x237   :  { %v3813_v2 = vpop.eup %3812  ;;  %3824 = vtanh.f32 %v1496_v12 }
 0x238   :  { %v3815_v10 = vpop.eup %3814 }
 0x239   :  { %v3817_v32 = vpop.eup %3816  ;;  %v3220_v17 = vpop.f32.mrb[124].mxu1  ;;  %v1934_v0 = vpack.c.bf16 %v3815_v10, %v3811_v39 }
 0x23a   :  { %v1517_v42 = vadd.f32 %v3220_v17, %v4905_v54  ;;  %v1508_v26 = vpop.f32.mrb[125].mxu1  ;;  %v1933_v51 = vpack.c.bf16 %v3817_v32, %v3813_v2 }
 0x23b   :  { %v1509_v60 = vadd.f32 %v4905_v54, %v1508_v26  ;;  %v3221_v61 = vpop.f32.mrb[126].mxu1 }
 0x23c   :  { %3826 = vtanh.f32 %v1517_v42  ;;  %v1520_v46 = vadd.f32 %v3221_v61, %v4905_v54  ;;  %v1511_v55 = vpop.f32.mrb[127].mxu1  ;;  %3354 = vmatprep.mubr.bf16.mxu0 %v1933_v51 }
 0x23d   :  { %3828 = vtanh.f32 %v1509_v60  ;;  %v1512_v11 = vadd.f32 %v4905_v54, %v1511_v55  ;;  %3355 = vmatmul.mubr.bf16.gmra.mrb[116].mxu0 %v1934_v0 }
 0x23e   :  { %v3819_v16 = vpop.eup %3818  ;;  %3830 = vtanh.f32 %v1520_v46 }
 0x23f   :  { %v3821_v21 = vpop.eup %3820  ;;  %3832 = vtanh.f32 %v1512_v11 }
 0x240   :  { %v3823_v3 = vpop.eup %3822 }
 0x241   :  { %v3825_v28 = vpop.eup %3824  ;;  %v3224_v56 = vpop.f32.mrb[128].mxu1  ;;  %v1936_v40 = vpack.c.bf16 %v3823_v3, %v3819_v16 }
 0x242   :  { %v1533_v6 = vadd.f32 %v3224_v56, %v4905_v54  ;;  %v1524_v47 = vpop.f32.mrb[129].mxu1  ;;  %v1935_v53 = vpack.c.bf16 %v3825_v28, %v3821_v21 }
 0x243   :  { %v1525_v58 = vadd.f32 %v4905_v54, %v1524_v47  ;;  %v3225_v1 = vpop.f32.mrb[130].mxu1 }
 0x244   :  { %3834 = vtanh.f32 %v1533_v6  ;;  %v1536_v20 = vadd.f32 %v3225_v1, %v4905_v54  ;;  %v1527_v29 = vpop.f32.mrb[131].mxu1  ;;  %3358 = vmatprep.mubr.bf16.mxu0 %v1935_v53 }
 0x245   :  { %3836 = vtanh.f32 %v1525_v58  ;;  %v1528_v36 = vadd.f32 %v4905_v54, %v1527_v29  ;;  %3359 = vmatmul.mubr.bf16.gmra.mrb[120].mxu0 %v1936_v40 }
 0x246   :  { %v3827_v43 = vpop.eup %3826  ;;  %3838 = vtanh.f32 %v1536_v20 }
 0x247   :  { %v3829_v4 = vpop.eup %3828  ;;  %3840 = vtanh.f32 %v1528_v36 }
 0x248   :  { %v3831_v52 = vpop.eup %3830 }
 0x249   :  { %v3833_v62 = vpop.eup %3832  ;;  %v3228_v37 = vpop.f32.mrb[132].mxu1  ;;  %v1938_v7 = vpack.c.bf16 %v3831_v52, %v3827_v43 }
 0x24a   :  { %v1549_v23 = vadd.f32 %v3228_v37, %v4905_v54  ;;  %v1540_v31 = vpop.f32.mrb[133].mxu1  ;;  %v1937_v13 = vpack.c.bf16 %v3833_v62, %v3829_v4 }
 0x24b   :  { %v1541_v19 = vadd.f32 %v4905_v54, %v1540_v31  ;;  %v3229_v30 = vpop.f32.mrb[134].mxu1 }
 0x24c   :  { %3842 = vtanh.f32 %v1549_v23  ;;  %v1552_v44 = vadd.f32 %v3229_v30, %v4905_v54  ;;  %v1543_v59 = vpop.f32.mrb[135].mxu1  ;;  %3362 = vmatprep.mubr.bf16.mxu0 %v1937_v13 }
 0x24d   :  { %3844 = vtanh.f32 %v1541_v19  ;;  %v1544_v5 = vadd.f32 %v4905_v54, %v1543_v59  ;;  %3363 = vmatmul.mubr.bf16.gmra.mrb[124].mxu0 %v1938_v7 }
 0x24e   :  { %v3835_v14 = vpop.eup %3834  ;;  %3846 = vtanh.f32 %v1552_v44 }
 0x24f   :  { %v3837_v25 = vpop.eup %3836  ;;  %3848 = vtanh.f32 %v1544_v5 }
 0x250   :  { %v3839_v45 = vpop.eup %3838 }
 0x251   :  { %v3841_v49 = vpop.eup %3840  ;;  %v3232_v24 = vpop.f32.mrb[136].mxu1  ;;  %v1940_v9 = vpack.c.bf16 %v3839_v45, %v3835_v14 }
 0x252   :  { %v1565_v22 = vadd.f32 %v3232_v24, %v4905_v54  ;;  %v1556_v35 = vpop.f32.mrb[137].mxu1  ;;  %v1939_v38 = vpack.c.bf16 %v3841_v49, %v3837_v25 }
 0x253   :  { %v1557_v63 = vadd.f32 %v4905_v54, %v1556_v35  ;;  %v3233_v15 = vpop.f32.mrb[138].mxu1 }
 0x254   :  { %3850 = vtanh.f32 %v1565_v22  ;;  %v1568_v27 = vadd.f32 %v3233_v15, %v4905_v54  ;;  %v1559_v50 = vpop.f32.mrb[139].mxu1  ;;  %3366 = vmatprep.mubr.bf16.mxu0 %v1939_v38 }
 0x255   :  { %3852 = vtanh.f32 %v1557_v63  ;;  %v1560_v34 = vadd.f32 %v4905_v54, %v1559_v50  ;;  %3367 = vmatmul.mubr.bf16.gmra.mrb[128].mxu0 %v1940_v9 }
 0x256   :  { %v3843_v41 = vpop.eup %3842  ;;  %3854 = vtanh.f32 %v1568_v27 }
 0x257   :  { %v3845_v8 = vpop.eup %3844  ;;  %3856 = vtanh.f32 %v1560_v34 }
 0x258   :  { %v3847_v18 = vpop.eup %3846 }
 0x259   :  { %v3849_v48 = vpop.eup %3848  ;;  %v3236_v57 = vpop.f32.mrb[140].mxu1  ;;  %v1942_v33 = vpack.c.bf16 %v3847_v18, %v3843_v41 }
 0x25a   :  { %v1581_v12 = vadd.f32 %v3236_v57, %v4905_v54  ;;  %v1572_v39 = vpop.f32.mrb[141].mxu1  ;;  %v1941_v2 = vpack.c.bf16 %v3849_v48, %v3845_v8 }
 0x25b   :  { %v1573_v10 = vadd.f32 %v4905_v54, %v1572_v39  ;;  %v3237_v32 = vpop.f32.mrb[142].mxu1 }
 0x25c   :  { %3858 = vtanh.f32 %v1581_v12  ;;  %v1584_v17 = vadd.f32 %v3237_v32, %v4905_v54  ;;  %v1575_v0 = vpop.f32.mrb[143].mxu1  ;;  %3370 = vmatprep.mubr.bf16.mxu0 %v1941_v2 }
 0x25d   :  { %3860 = vtanh.f32 %v1573_v10  ;;  %v1576_v42 = vadd.f32 %v4905_v54, %v1575_v0  ;;  %3371 = vmatmul.mubr.bf16.gmra.mrb[132].mxu0 %v1942_v33 }
 0x25e   :  { %v3851_v26 = vpop.eup %3850  ;;  %3862 = vtanh.f32 %v1584_v17 }
 0x25f   :  { %v3853_v51 = vpop.eup %3852  ;;  %3864 = vtanh.f32 %v1576_v42 }
 0x260   :  { %v3855_v60 = vpop.eup %3854 }
 0x261   :  { %v3857_v61 = vpop.eup %3856  ;;  %v3240_v46 = vpop.f32.mrb[144].mxu1  ;;  %v1944_v55 = vpack.c.bf16 %v3855_v60, %v3851_v26 }
 0x262   :  { %v1597_v11 = vadd.f32 %v3240_v46, %v4905_v54  ;;  %v1588_v16 = vpop.f32.mrb[145].mxu1  ;;  %v1943_v21 = vpack.c.bf16 %v3857_v61, %v3853_v51 }
 0x263   :  { %v1589_v3 = vadd.f32 %v4905_v54, %v1588_v16  ;;  %v3241_v28 = vpop.f32.mrb[146].mxu1 }
 0x264   :  { %3866 = vtanh.f32 %v1597_v11  ;;  %v1600_v56 = vadd.f32 %v3241_v28, %v4905_v54  ;;  %v1591_v40 = vpop.f32.mrb[147].mxu1  ;;  %3374 = vmatprep.mubr.bf16.mxu0 %v1943_v21 }
 0x265   :  { %3868 = vtanh.f32 %v1589_v3  ;;  %v1592_v6 = vadd.f32 %v4905_v54, %v1591_v40  ;;  %3375 = vmatmul.mubr.bf16.gmra.mrb[136].mxu0 %v1944_v55 }
 0x266   :  { %v3859_v47 = vpop.eup %3858  ;;  %3870 = vtanh.f32 %v1600_v56 }
 0x267   :  { %v3861_v53 = vpop.eup %3860  ;;  %3872 = vtanh.f32 %v1592_v6 }
 0x268   :  { %v3863_v58 = vpop.eup %3862 }
 0x269   :  { %v3865_v1 = vpop.eup %3864  ;;  %v3244_v20 = vpop.f32.mrb[148].mxu1  ;;  %v1946_v29 = vpack.c.bf16 %v3863_v58, %v3859_v47 }
 0x26a   :  { %v1613_v36 = vadd.f32 %v3244_v20, %v4905_v54  ;;  %v1604_v43 = vpop.f32.mrb[149].mxu1  ;;  %v1945_v4 = vpack.c.bf16 %v3865_v1, %v3861_v53 }
 0x26b   :  { %v1605_v52 = vadd.f32 %v4905_v54, %v1604_v43  ;;  %v3245_v62 = vpop.f32.mrb[150].mxu1 }
 0x26c   :  { %3874 = vtanh.f32 %v1613_v36  ;;  %v1616_v37 = vadd.f32 %v3245_v62, %v4905_v54  ;;  %v1607_v7 = vpop.f32.mrb[151].mxu1  ;;  %3378 = vmatprep.mubr.bf16.mxu0 %v1945_v4  ;;  %v5043_v36 = vld [vmem:[%s5717_s4] ss:$0 sm:$0xff] }
 0x26d   :  { %3876 = vtanh.f32 %v1605_v52  ;;  %v1608_v23 = vadd.f32 %v4905_v54, %v1607_v7  ;;  %3379 = vmatmul.mubr.bf16.gmra.mrb[140].mxu0 %v1946_v29 }
 0x26e   :  { %v3867_v31 = vpop.eup %3866  ;;  %3878 = vtanh.f32 %v1616_v37 }
 0x26f   :  { %v3869_v13 = vpop.eup %3868  ;;  %3880 = vtanh.f32 %v1608_v23 }
 0x270   :  { %v3871_v19 = vpop.eup %3870 }
 0x271   :  { %v3873_v30 = vpop.eup %3872  ;;  %v3248_v44 = vpop.f32.mrb[152].mxu1  ;;  %v1948_v59 = vpack.c.bf16 %v3871_v19, %v3867_v31 }
 0x272   :  { %v1629_v5 = vadd.f32 %v3248_v44, %v4905_v54  ;;  %v1620_v14 = vpop.f32.mrb[153].mxu1  ;;  %v1947_v25 = vpack.c.bf16 %v3873_v30, %v3869_v13 }
 0x273   :  { %v1621_v45 = vadd.f32 %v4905_v54, %v1620_v14  ;;  %v3249_v49 = vpop.f32.mrb[154].mxu1 }
 0x274   :  { %3882 = vtanh.f32 %v1629_v5  ;;  %v1632_v24 = vadd.f32 %v3249_v49, %v4905_v54  ;;  %v1623_v9 = vpop.f32.mrb[155].mxu1  ;;  %3382 = vmatprep.mubr.bf16.mxu0 %v1947_v25 }
 0x275   :  { %3884 = vtanh.f32 %v1621_v45  ;;  %v1624_v22 = vadd.f32 %v4905_v54, %v1623_v9  ;;  %3383 = vmatmul.mubr.bf16.gmra.mrb[144].mxu0 %v1948_v59 }
 0x276   :  { %v3875_v35 = vpop.eup %3874  ;;  %3886 = vtanh.f32 %v1632_v24 }
 0x277   :  { %v3877_v38 = vpop.eup %3876  ;;  %3888 = vtanh.f32 %v1624_v22 }
 0x278   :  { %v3879_v63 = vpop.eup %3878 }
 0x279   :  { %v3881_v15 = vpop.eup %3880  ;;  %v3252_v27 = vpop.f32.mrb[156].mxu1  ;;  %v1950_v50 = vpack.c.bf16 %v3879_v63, %v3875_v35 }
 0x27a   :  { %v1645_v34 = vadd.f32 %v3252_v27, %v4905_v54  ;;  %v1636_v41 = vpop.f32.mrb[157].mxu1  ;;  %v1949_v8 = vpack.c.bf16 %v3881_v15, %v3877_v38 }
 0x27b   :  { %v1637_v18 = vadd.f32 %v4905_v54, %v1636_v41  ;;  %v3253_v48 = vpop.f32.mrb[158].mxu1 }
 0x27c   :  { %3890 = vtanh.f32 %v1645_v34  ;;  %v1648_v57 = vadd.f32 %v3253_v48, %v4905_v54  ;;  %v1639_v33 = vpop.f32.mrb[159].mxu1  ;;  %3386 = vmatprep.mubr.bf16.mxu0 %v1949_v8 }
 0x27d   :  { %3892 = vtanh.f32 %v1637_v18  ;;  %v1640_v12 = vadd.f32 %v4905_v54, %v1639_v33  ;;  %3387 = vmatmul.mubr.bf16.gmra.mrb[148].mxu0 %v1950_v50 }
 0x27e   :  { %v3883_v39 = vpop.eup %3882  ;;  %3894 = vtanh.f32 %v1648_v57 }
 0x27f   :  { %v3885_v2 = vpop.eup %3884  ;;  %3896 = vtanh.f32 %v1640_v12 }
 0x280   :  { %v3887_v10 = vpop.eup %3886 }
 0x281   :  { %v3889_v32 = vpop.eup %3888  ;;  %v3256_v17 = vpop.f32.mrb[160].mxu1  ;;  %v1952_v0 = vpack.c.bf16 %v3887_v10, %v3883_v39 }
 0x282   :  { %v1661_v42 = vadd.f32 %v3256_v17, %v4905_v54  ;;  %v1652_v26 = vpop.f32.mrb[161].mxu1  ;;  %v1951_v51 = vpack.c.bf16 %v3889_v32, %v3885_v2 }
 0x283   :  { %v1653_v60 = vadd.f32 %v4905_v54, %v1652_v26  ;;  %v3257_v61 = vpop.f32.mrb[162].mxu1 }
 0x284   :  { %3898 = vtanh.f32 %v1661_v42  ;;  %v1664_v46 = vadd.f32 %v3257_v61, %v4905_v54  ;;  %v1655_v55 = vpop.f32.mrb[163].mxu1  ;;  %3390 = vmatprep.mubr.bf16.mxu0 %v1951_v51  ;;  %v5058_v51 = vld [vmem:[#allocation2] ss:$0 sm:$0xff] }
 0x285   :  { %3900 = vtanh.f32 %v1653_v60  ;;  %v1656_v11 = vadd.f32 %v4905_v54, %v1655_v55  ;;  %3391 = vmatmul.mubr.bf16.gmra.mrb[152].mxu0 %v1952_v0 }
 0x286   :  { %v3891_v16 = vpop.eup %3890  ;;  %3902 = vtanh.f32 %v1664_v46 }
 0x287   :  { %v3893_v21 = vpop.eup %3892  ;;  %3904 = vtanh.f32 %v1656_v11 }
 0x288   :  { %v3895_v3 = vpop.eup %3894 }
 0x289   :  { %v3897_v28 = vpop.eup %3896  ;;  %v3260_v56 = vpop.f32.mrb[164].mxu1  ;;  %v1954_v40 = vpack.c.bf16 %v3895_v3, %v3891_v16 }
 0x28a   :  { %v1677_v6 = vadd.f32 %v3260_v56, %v4905_v54  ;;  %v1668_v47 = vpop.f32.mrb[165].mxu1  ;;  %v1953_v53 = vpack.c.bf16 %v3897_v28, %v3893_v21 }
 0x28b   :  { %v1669_v58 = vadd.f32 %v4905_v54, %v1668_v47  ;;  %v3261_v1 = vpop.f32.mrb[166].mxu1 }
 0x28c   :  { %3906 = vtanh.f32 %v1677_v6  ;;  %v1680_v20 = vadd.f32 %v3261_v1, %v4905_v54  ;;  %v1671_v29 = vpop.f32.mrb[167].mxu1  ;;  %3394 = vmatprep.mubr.bf16.mxu0 %v1953_v53 }
 0x28d   :  { %3908 = vtanh.f32 %v1669_v58  ;;  %v1672_v43 = vadd.f32 %v5043_v36, %v1671_v29  ;;  %3395 = vmatmul.mubr.bf16.gmra.mrb[156].mxu0 %v1954_v40 }
 0x28e   :  { %v3899_v4 = vpop.eup %3898  ;;  %3910 = vtanh.f32 %v1680_v20 }
 0x28f   :  { %v3901_v52 = vpop.eup %3900  ;;  %3912 = vtanh.f32 %v1672_v43 }
 0x290   :  { %v3903_v62 = vpop.eup %3902 }
 0x291   :  { %v3905_v37 = vpop.eup %3904  ;;  %v3264_v7 = vpop.f32.mrb[168].mxu1  ;;  %v1956_v23 = vpack.c.bf16 %v3903_v62, %v3899_v4 }
 0x292   :  { %v1693_v54 = vadd.f32 %v5043_v36, %v3264_v7  ;;  %v1684_v31 = vpop.f32.mrb[169].mxu1  ;;  %v1955_v13 = vpack.c.bf16 %v3905_v37, %v3901_v52 }
 0x293   :  { %v1685_v19 = vadd.f32 %v5043_v36, %v1684_v31  ;;  %v3265_v30 = vpop.f32.mrb[170].mxu1 }
 0x294   :  { %3914 = vtanh.f32 %v1693_v54  ;;  %v1696_v44 = vadd.f32 %v5043_v36, %v3265_v30  ;;  %v1687_v59 = vpop.f32.mrb[171].mxu1  ;;  %3398 = vmatprep.mubr.bf16.mxu0 %v1955_v13 }
 0x295   :  { %3916 = vtanh.f32 %v1685_v19  ;;  %v1688_v5 = vadd.f32 %v5043_v36, %v1687_v59  ;;  %3399 = vmatmul.mubr.bf16.gmra.mrb[160].mxu0 %v1956_v23 }
 0x296   :  { %v3907_v14 = vpop.eup %3906  ;;  %3918 = vtanh.f32 %v1696_v44 }
 0x297   :  { %v3909_v25 = vpop.eup %3908  ;;  %3920 = vtanh.f32 %v1688_v5 }
 0x298   :  { %v3911_v45 = vpop.eup %3910 }
 0x299   :  { %v3913_v49 = vpop.eup %3912  ;;  %v3268_v24 = vpop.f32.mrb[172].mxu1  ;;  %v1958_v9 = vpack.c.bf16 %v3911_v45, %v3907_v14 }
 0x29a   :  { %v1709_v22 = vadd.f32 %v5043_v36, %v3268_v24  ;;  %v1700_v35 = vpop.f32.mrb[173].mxu1  ;;  %v1957_v38 = vpack.c.bf16 %v3913_v49, %v3909_v25 }
 0x29b   :  { %v1701_v63 = vadd.f32 %v5043_v36, %v1700_v35  ;;  %v3269_v15 = vpop.f32.mrb[174].mxu1 }
 0x29c   :  { %3922 = vtanh.f32 %v1709_v22  ;;  %v1712_v27 = vadd.f32 %v5043_v36, %v3269_v15  ;;  %v1703_v50 = vpop.f32.mrb[175].mxu1  ;;  %3402 = vmatprep.mubr.bf16.mxu0 %v1957_v38 }
 0x29d   :  { %3924 = vtanh.f32 %v1701_v63  ;;  %v1704_v34 = vadd.f32 %v5043_v36, %v1703_v50  ;;  %3403 = vmatmul.mubr.bf16.gmra.mrb[164].mxu0 %v1958_v9 }
 0x29e   :  { %v3915_v41 = vpop.eup %3914  ;;  %3926 = vtanh.f32 %v1712_v27 }
 0x29f   :  { %v3917_v8 = vpop.eup %3916  ;;  %3928 = vtanh.f32 %v1704_v34 }
 0x2a0   :  { %v3919_v18 = vpop.eup %3918 }
 0x2a1   :  { %v3921_v48 = vpop.eup %3920  ;;  %v3272_v57 = vpop.f32.mrb[176].mxu1  ;;  %v1960_v33 = vpack.c.bf16 %v3919_v18, %v3915_v41 }
 0x2a2   :  { %v1725_v12 = vadd.f32 %v5043_v36, %v3272_v57  ;;  %v1716_v39 = vpop.f32.mrb[177].mxu1  ;;  %v1959_v2 = vpack.c.bf16 %v3921_v48, %v3917_v8 }
 0x2a3   :  { %v1717_v10 = vadd.f32 %v5043_v36, %v1716_v39  ;;  %v3273_v32 = vpop.f32.mrb[178].mxu1 }
 0x2a4   :  { %3930 = vtanh.f32 %v1725_v12  ;;  %v1728_v17 = vadd.f32 %v5043_v36, %v3273_v32  ;;  %v1719_v0 = vpop.f32.mrb[179].mxu1  ;;  %3406 = vmatprep.mubr.bf16.mxu0 %v1959_v2 }
 0x2a5   :  { %3932 = vtanh.f32 %v1717_v10  ;;  %v1720_v42 = vadd.f32 %v5043_v36, %v1719_v0  ;;  %3407 = vmatmul.mubr.bf16.gmra.mrb[168].mxu0 %v1960_v33 }
 0x2a6   :  { %v3923_v26 = vpop.eup %3922  ;;  %3934 = vtanh.f32 %v1728_v17 }
 0x2a7   :  { %v3925_v60 = vpop.eup %3924  ;;  %3936 = vtanh.f32 %v1720_v42  ;;  %v3304_v46 = vpop.f32.mrb[64].mxu0 }
 0x2a8   :  { %v3927_v61 = vpop.eup %3926  ;;  %v2085_v11 = vadd.f32 %v3304_v46, %v5058_v51  ;;  %v2076_v21 = vpop.f32.mrb[65].mxu0 }
 0x2a9   :  { %v3929_v55 = vpop.eup %3928  ;;  %v3276_v16 = vpop.f32.mrb[180].mxu1  ;;  %v1962_v3 = vpack.c.bf16 %v3927_v61, %v3923_v26  ;;  %v2077_v56 = vadd.f32 %v5058_v51, %v2076_v21 }
 0x2aa   :  { %v1741_v28 = vadd.f32 %v5043_v36, %v3276_v16  ;;  %v1732_v40 = vpop.f32.mrb[181].mxu1  ;;  %v3305_v6 = vpop.f32.mrb[66].mxu0  ;;  %v1961_v47 = vpack.c.bf16 %v3929_v55, %v3925_v60  ;;  %2590 = vst.msk [vmem:[%s5719_s7 + $0x10] sm:$0xff] %vm2587_vm2, %v2085_v11 }
 0x2ab   :  { %v1733_v53 = vadd.f32 %v5043_v36, %v1732_v40  ;;  %v2088_v58 = vadd.f32 %v3305_v6, %v5058_v51  ;;  %v3277_v1 = vpop.f32.mrb[182].mxu1  ;;  %v2079_v20 = vpop.f32.mrb[67].mxu0  ;;  %2588 = vst.msk [vmem:[%s5719_s7] sm:$0xff] %vm2587_vm2, %v2077_v56 }
 0x2ac   :  { %3938 = vtanh.f32 %v1741_v28  ;;  %v1744_v29 = vadd.f32 %v5043_v36, %v3277_v1  ;;  %v2080_v43 = vadd.f32 %v5058_v51, %v2079_v20  ;;  %v1735_v4 = vpop.f32.mrb[183].mxu1  ;;  %3410 = vmatprep.mubr.bf16.mxu0 %v1961_v47 }
 0x2ad   :  { %3940 = vtanh.f32 %v1733_v53  ;;  %2591 = vst.msk [vmem:[%s5719_s7 + $0x18] sm:$0xff] %vm2587_vm2, %v2088_v58  ;;  %v1736_v52 = vadd.f32 %v5043_v36, %v1735_v4  ;;  %3411 = vmatmul.mubr.bf16.gmra.mrb[172].mxu0 %v1962_v3 }
 0x2ae   :  { %v3931_v62 = vpop.eup %3930  ;;  %3942 = vtanh.f32 %v1744_v29  ;;  %2589 = vst.msk [vmem:[%s5719_s7 + $0x8] sm:$0xff] %vm2587_vm2, %v2080_v43 }
 0x2af   :  { %v3933_v37 = vpop.eup %3932  ;;  %3944 = vtanh.f32 %v1736_v52  ;;  %v3308_v23 = vpop.f32.mrb[68].mxu0 }
 0x2b0   :  { %v3935_v7 = vpop.eup %3934  ;;  %v2101_v31 = vadd.f32 %v3308_v23, %v5058_v51  ;;  %v2092_v19 = vpop.f32.mrb[69].mxu0 }
 0x2b1   :  { %v3937_v54 = vpop.eup %3936  ;;  %v3280_v13 = vpop.f32.mrb[184].mxu1  ;;  %v1964_v30 = vpack.c.bf16 %v3935_v7, %v3931_v62  ;;  %v2093_v59 = vadd.f32 %v5058_v51, %v2092_v19 }
 0x2b2   :  { %v1757_v44 = vadd.f32 %v5043_v36, %v3280_v13  ;;  %v1748_v5 = vpop.f32.mrb[185].mxu1  ;;  %v3309_v14 = vpop.f32.mrb[70].mxu0  ;;  %v1963_v25 = vpack.c.bf16 %v3937_v54, %v3933_v37  ;;  %2594 = vst.msk [vmem:[%s5719_s7 + $0x30] sm:$0xff] %vm2587_vm2, %v2101_v31 }
 0x2b3   :  { %v1749_v45 = vadd.f32 %v5043_v36, %v1748_v5  ;;  %v2104_v49 = vadd.f32 %v3309_v14, %v5058_v51  ;;  %v3281_v24 = vpop.f32.mrb[186].mxu1  ;;  %v2095_v9 = vpop.f32.mrb[71].mxu0  ;;  %2592 = vst.msk [vmem:[%s5719_s7 + $0x20] sm:$0xff] %vm2587_vm2, %v2093_v59 }
 0x2b4   :  { %3946 = vtanh.f32 %v1757_v44  ;;  %v1760_v22 = vadd.f32 %v5043_v36, %v3281_v24  ;;  %v2096_v35 = vadd.f32 %v5058_v51, %v2095_v9  ;;  %v1751_v38 = vpop.f32.mrb[187].mxu1  ;;  %3414 = vmatprep.mubr.bf16.mxu0 %v1963_v25 }
 0x2b5   :  { %3948 = vtanh.f32 %v1749_v45  ;;  %2595 = vst.msk [vmem:[%s5719_s7 + $0x38] sm:$0xff] %vm2587_vm2, %v2104_v49  ;;  %v1752_v63 = vadd.f32 %v5043_v36, %v1751_v38  ;;  %3415 = vmatmul.mubr.bf16.gmra.mrb[176].mxu0 %v1964_v30 }
 0x2b6   :  { %v3939_v15 = vpop.eup %3938  ;;  %3950 = vtanh.f32 %v1760_v22  ;;  %2593 = vst.msk [vmem:[%s5719_s7 + $0x28] sm:$0xff] %vm2587_vm2, %v2096_v35 }
 0x2b7   :  { %v3941_v27 = vpop.eup %3940  ;;  %3952 = vtanh.f32 %v1752_v63  ;;  %v3312_v34 = vpop.f32.mrb[72].mxu0 }
 0x2b8   :  { %v3943_v50 = vpop.eup %3942  ;;  %v2117_v8 = vadd.f32 %v3312_v34, %v5058_v51  ;;  %v2108_v48 = vpop.f32.mrb[73].mxu0 }
 0x2b9   :  { %v3945_v41 = vpop.eup %3944  ;;  %v3284_v18 = vpop.f32.mrb[188].mxu1  ;;  %v1966_v57 = vpack.c.bf16 %v3943_v50, %v3939_v15  ;;  %v2109_v12 = vadd.f32 %v5058_v51, %v2108_v48 }
 0x2ba   :  { %v1773_v33 = vadd.f32 %v5043_v36, %v3284_v18  ;;  %v1764_v39 = vpop.f32.mrb[189].mxu1  ;;  %v3313_v2 = vpop.f32.mrb[74].mxu0  ;;  %v1965_v10 = vpack.c.bf16 %v3945_v41, %v3941_v27  ;;  %2598 = vst.msk [vmem:[%s5719_s7 + $0x50] sm:$0xff] %vm2587_vm2, %v2117_v8 }
 0x2bb   :  { %v1765_v32 = vadd.f32 %v5043_v36, %v1764_v39  ;;  %v2120_v17 = vadd.f32 %v3313_v2, %v5058_v51  ;;  %v3285_v0 = vpop.f32.mrb[190].mxu1  ;;  %v2111_v42 = vpop.f32.mrb[75].mxu0  ;;  %2596 = vst.msk [vmem:[%s5719_s7 + $0x40] sm:$0xff] %vm2587_vm2, %v2109_v12 }
 0x2bc   :  { %3954 = vtanh.f32 %v1773_v33  ;;  %v1776_v26 = vadd.f32 %v5043_v36, %v3285_v0  ;;  %v2112_v60 = vadd.f32 %v5058_v51, %v2111_v42  ;;  %v1767_v61 = vpop.f32.mrb[191].mxu1  ;;  %3418 = vmatprep.mubr.bf16.mxu0 %v1965_v10 }
 0x2bd   :  { %3956 = vtanh.f32 %v1765_v32  ;;  %2599 = vst.msk [vmem:[%s5719_s7 + $0x58] sm:$0xff] %vm2587_vm2, %v2120_v17  ;;  %v1768_v46 = vadd.f32 %v5043_v36, %v1767_v61  ;;  %3419 = vmatmul.mubr.bf16.gmra.mrb[180].mxu0 %v1966_v57 }
 0x2be   :  { %v3947_v55 = vpop.eup %3946  ;;  %3958 = vtanh.f32 %v1776_v26  ;;  %2597 = vst.msk [vmem:[%s5719_s7 + $0x48] sm:$0xff] %vm2587_vm2, %v2112_v60 }
 0x2bf   :  { %v3949_v11 = vpop.eup %3948  ;;  %3960 = vtanh.f32 %v1768_v46  ;;  %v3316_v21 = vpop.f32.mrb[76].mxu0 }
 0x2c0   :  { %v3951_v16 = vpop.eup %3950  ;;  %v2133_v28 = vadd.f32 %v3316_v21, %v5058_v51  ;;  %v2124_v56 = vpop.f32.mrb[77].mxu0 }
 0x2c1   :  { %v3953_v3 = vpop.eup %3952  ;;  %v1968_v40 = vpack.c.bf16 %v3951_v16, %v3947_v55  ;;  %v2125_v6 = vadd.f32 %v5058_v51, %v2124_v56  ;;  %v3317_v36 = vpop.f32.mrb[78].mxu0 }
 0x2c2   :  { %v1967_v47 = vpack.c.bf16 %v3953_v3, %v3949_v11  ;;  %2602 = vst.msk [vmem:[%s5719_s7 + $0x70] sm:$0xff] %vm2587_vm2, %v2133_v28  ;;  %v2136_v53 = vadd.f32 %v3317_v36, %v5058_v51  ;;  %v2127_v58 = vpop.f32.mrb[79].mxu0 }
 0x2c3   :  { %2600 = vst.msk [vmem:[%s5719_s7 + $0x60] sm:$0xff] %vm2587_vm2, %v2125_v6  ;;  %v2128_v1 = vadd.f32 %v5058_v51, %v2127_v58 }
 0x2c4   :  { %3422 = vmatprep.mubr.bf16.mxu0 %v1967_v47  ;;  %2603 = vst.msk [vmem:[%s5719_s7 + $0x78] sm:$0xff] %vm2587_vm2, %v2136_v53 }
 0x2c5   :  { %3423 = vmatmul.mubr.bf16.gmra.mrb[184].mxu0 %v1968_v40  ;;  %2601 = vst.msk [vmem:[%s5719_s7 + $0x68] sm:$0xff] %vm2587_vm2, %v2128_v1 }
 0x2c6   :  { %v3955_v20 = vpop.eup %3954 }
 0x2c7   :  { %v3957_v29 = vpop.eup %3956  ;;  %v3320_v4 = vpop.f32.mrb[80].mxu0 }
 0x2c8   :  { %v3959_v43 = vpop.eup %3958  ;;  %v2149_v62 = vadd.f32 %v3320_v4, %v5058_v51  ;;  %v2140_v37 = vpop.f32.mrb[81].mxu0 }
 0x2c9   :  { %v3961_v52 = vpop.eup %3960  ;;  %v1970_v7 = vpack.c.bf16 %v3959_v43, %v3955_v20  ;;  %v2141_v23 = vadd.f32 %v5058_v51, %v2140_v37  ;;  %v3321_v54 = vpop.f32.mrb[82].mxu0 }
 0x2ca   :  { %v1969_v31 = vpack.c.bf16 %v3961_v52, %v3957_v29  ;;  %2606 = vst.msk [vmem:[%s5719_s7 + $0x90] sm:$0xff] %vm2587_vm2, %v2149_v62  ;;  %v2152_v13 = vadd.f32 %v3321_v54, %v5058_v51  ;;  %v2143_v19 = vpop.f32.mrb[83].mxu0 }
 0x2cb   :  { %2604 = vst.msk [vmem:[%s5719_s7 + $0x80] sm:$0xff] %vm2587_vm2, %v2141_v23  ;;  %v2144_v30 = vadd.f32 %v5058_v51, %v2143_v19 }
 0x2cc   :  { %3426 = vmatprep.mubr.bf16.mxu0 %v1969_v31  ;;  %2607 = vst.msk [vmem:[%s5719_s7 + $0x98] sm:$0xff] %vm2587_vm2, %v2152_v13 }
 0x2cd   :  { %3427 = vmatmul.mubr.bf16.gmra.mrb[188].mxu0 %v1970_v7  ;;  %2605 = vst.msk [vmem:[%s5719_s7 + $0x88] sm:$0xff] %vm2587_vm2, %v2144_v30 }
 0x2cf   :  { %v3324_v44 = vpop.f32.mrb[84].mxu0 }
 0x2d0   :  { %v2165_v59 = vadd.f32 %v3324_v44, %v5058_v51  ;;  %v2156_v5 = vpop.f32.mrb[85].mxu0 }
 0x2d1   :  { %v2157_v14 = vadd.f32 %v5058_v51, %v2156_v5  ;;  %v3325_v25 = vpop.f32.mrb[86].mxu0 }
 0x2d2   :  { %2610 = vst.msk [vmem:[%s5719_s7 + $0xb0] sm:$0xff] %vm2587_vm2, %v2165_v59  ;;  %v2168_v45 = vadd.f32 %v3325_v25, %v5058_v51  ;;  %v2159_v49 = vpop.f32.mrb[87].mxu0 }
 0x2d3   :  { %2608 = vst.msk [vmem:[%s5719_s7 + $0xa0] sm:$0xff] %vm2587_vm2, %v2157_v14  ;;  %v2160_v24 = vadd.f32 %v5058_v51, %v2159_v49 }
 0x2d4   :  { %2611 = vst.msk [vmem:[%s5719_s7 + $0xb8] sm:$0xff] %vm2587_vm2, %v2168_v45 }
 0x2d5   :  { %2609 = vst.msk [vmem:[%s5719_s7 + $0xa8] sm:$0xff] %vm2587_vm2, %v2160_v24 }
 0x2d7   :  { %v3328_v9 = vpop.f32.mrb[88].mxu0 }
 0x2d8   :  { %v2181_v22 = vadd.f32 %v3328_v9, %v5058_v51  ;;  %v2172_v35 = vpop.f32.mrb[89].mxu0 }
 0x2d9   :  { %v2173_v38 = vadd.f32 %v5058_v51, %v2172_v35  ;;  %v3329_v63 = vpop.f32.mrb[90].mxu0 }
 0x2da   :  { %2614 = vst.msk [vmem:[%s5719_s7 + $0xd0] sm:$0xff] %vm2587_vm2, %v2181_v22  ;;  %v2184_v15 = vadd.f32 %v3329_v63, %v5058_v51  ;;  %v2175_v27 = vpop.f32.mrb[91].mxu0 }
 0x2db   :  { %2612 = vst.msk [vmem:[%s5719_s7 + $0xc0] sm:$0xff] %vm2587_vm2, %v2173_v38  ;;  %v2176_v50 = vadd.f32 %v5058_v51, %v2175_v27 }
 0x2dc   :  { %2615 = vst.msk [vmem:[%s5719_s7 + $0xd8] sm:$0xff] %vm2587_vm2, %v2184_v15 }
 0x2dd   :  { %2613 = vst.msk [vmem:[%s5719_s7 + $0xc8] sm:$0xff] %vm2587_vm2, %v2176_v50 }
 0x2df   :  { %v3332_v34 = vpop.f32.mrb[92].mxu0 }
 0x2e0   :  { %v2197_v41 = vadd.f32 %v3332_v34, %v5058_v51  ;;  %v2188_v8 = vpop.f32.mrb[93].mxu0 }
 0x2e1   :  { %v2189_v18 = vadd.f32 %v5058_v51, %v2188_v8  ;;  %v3333_v48 = vpop.f32.mrb[94].mxu0 }
 0x2e2   :  { %2618 = vst.msk [vmem:[%s5719_s7 + $0xf0] sm:$0xff] %vm2587_vm2, %v2197_v41  ;;  %v2200_v57 = vadd.f32 %v3333_v48, %v5058_v51  ;;  %v2191_v33 = vpop.f32.mrb[95].mxu0 }
 0x2e3   :  { %2616 = vst.msk [vmem:[%s5719_s7 + $0xe0] sm:$0xff] %vm2587_vm2, %v2189_v18  ;;  %v2192_v12 = vadd.f32 %v5058_v51, %v2191_v33 }
 0x2e4   :  { %2619 = vst.msk [vmem:[%s5719_s7 + $0xf8] sm:$0xff] %vm2587_vm2, %v2200_v57 }
 0x2e5   :  { %2617 = vst.msk [vmem:[%s5719_s7 + $0xe8] sm:$0xff] %vm2587_vm2, %v2192_v12 }
 0x2e7   :  { %v3336_v39 = vpop.f32.mrb[96].mxu0 }
 0x2e8   :  { %v2213_v2 = vadd.f32 %v3336_v39, %v5058_v51  ;;  %v2204_v10 = vpop.f32.mrb[97].mxu0 }
 0x2e9   :  { %v2205_v32 = vadd.f32 %v5058_v51, %v2204_v10  ;;  %v3337_v17 = vpop.f32.mrb[98].mxu0 }
 0x2ea   :  { %2622 = vst.msk [vmem:[%s5719_s7 + $0x110] sm:$0xff] %vm2587_vm2, %v2213_v2  ;;  %v2216_v0 = vadd.f32 %v3337_v17, %v5058_v51  ;;  %v2207_v42 = vpop.f32.mrb[99].mxu0 }
 0x2eb   :  { %2620 = vst.msk [vmem:[%s5719_s7 + $0x100] sm:$0xff] %vm2587_vm2, %v2205_v32  ;;  %v2208_v26 = vadd.f32 %v5058_v51, %v2207_v42 }
 0x2ec   :  { %2623 = vst.msk [vmem:[%s5719_s7 + $0x118] sm:$0xff] %vm2587_vm2, %v2216_v0 }
 0x2ed   :  { %2621 = vst.msk [vmem:[%s5719_s7 + $0x108] sm:$0xff] %vm2587_vm2, %v2208_v26 }
 0x2ef   :  { %v3340_v60 = vpop.f32.mrb[100].mxu0 }
 0x2f0   :  { %v2229_v61 = vadd.f32 %v3340_v60, %v5058_v51  ;;  %v2220_v46 = vpop.f32.mrb[101].mxu0 }
 0x2f1   :  { %v2221_v55 = vadd.f32 %v5058_v51, %v2220_v46  ;;  %v3341_v11 = vpop.f32.mrb[102].mxu0 }
 0x2f2   :  { %2626 = vst.msk [vmem:[%s5719_s7 + $0x130] sm:$0xff] %vm2587_vm2, %v2229_v61  ;;  %v2232_v16 = vadd.f32 %v3341_v11, %v5058_v51  ;;  %v2223_v21 = vpop.f32.mrb[103].mxu0 }
 0x2f3   :  { %2624 = vst.msk [vmem:[%s5719_s7 + $0x120] sm:$0xff] %vm2587_vm2, %v2221_v55  ;;  %v2224_v3 = vadd.f32 %v5058_v51, %v2223_v21 }
 0x2f4   :  { %2627 = vst.msk [vmem:[%s5719_s7 + $0x138] sm:$0xff] %vm2587_vm2, %v2232_v16 }
 0x2f5   :  { %2625 = vst.msk [vmem:[%s5719_s7 + $0x128] sm:$0xff] %vm2587_vm2, %v2224_v3 }
 0x2f7   :  { %v3344_v28 = vpop.f32.mrb[104].mxu0 }
 0x2f8   :  { %v2245_v56 = vadd.f32 %v3344_v28, %v5058_v51  ;;  %v2236_v40 = vpop.f32.mrb[105].mxu0 }
 0x2f9   :  { %v2237_v6 = vadd.f32 %v5058_v51, %v2236_v40  ;;  %v3345_v36 = vpop.f32.mrb[106].mxu0 }
 0x2fa   :  { %2630 = vst.msk [vmem:[%s5719_s7 + $0x150] sm:$0xff] %vm2587_vm2, %v2245_v56  ;;  %v2248_v47 = vadd.f32 %v3345_v36, %v5058_v51  ;;  %v2239_v53 = vpop.f32.mrb[107].mxu0 }
 0x2fb   :  { %2628 = vst.msk [vmem:[%s5719_s7 + $0x140] sm:$0xff] %vm2587_vm2, %v2237_v6  ;;  %v2240_v58 = vadd.f32 %v5058_v51, %v2239_v53 }
 0x2fc   :  { %2631 = vst.msk [vmem:[%s5719_s7 + $0x158] sm:$0xff] %vm2587_vm2, %v2248_v47 }
 0x2fd   :  { %2629 = vst.msk [vmem:[%s5719_s7 + $0x148] sm:$0xff] %vm2587_vm2, %v2240_v58 }
 0x2ff   :  { %v3348_v1 = vpop.f32.mrb[108].mxu0 }
 0x300   :  { %v2261_v20 = vadd.f32 %v3348_v1, %v5058_v51  ;;  %v2252_v29 = vpop.f32.mrb[109].mxu0 }
 0x301   :  { %v2253_v43 = vadd.f32 %v5058_v51, %v2252_v29  ;;  %v3349_v4 = vpop.f32.mrb[110].mxu0 }
 0x302   :  { %2634 = vst.msk [vmem:[%s5719_s7 + $0x170] sm:$0xff] %vm2587_vm2, %v2261_v20  ;;  %v2264_v52 = vadd.f32 %v3349_v4, %v5058_v51  ;;  %v2255_v62 = vpop.f32.mrb[111].mxu0 }
 0x303   :  { %2632 = vst.msk [vmem:[%s5719_s7 + $0x160] sm:$0xff] %vm2587_vm2, %v2253_v43  ;;  %v2256_v37 = vadd.f32 %v5058_v51, %v2255_v62 }
 0x304   :  { %2635 = vst.msk [vmem:[%s5719_s7 + $0x178] sm:$0xff] %vm2587_vm2, %v2264_v52 }
 0x305   :  { %2633 = vst.msk [vmem:[%s5719_s7 + $0x168] sm:$0xff] %vm2587_vm2, %v2256_v37 }
 0x307   :  { %v3352_v7 = vpop.f32.mrb[112].mxu0 }
 0x308   :  { %v2277_v23 = vadd.f32 %v3352_v7, %v5058_v51  ;;  %v2268_v54 = vpop.f32.mrb[113].mxu0 }
 0x309   :  { %v2269_v31 = vadd.f32 %v5058_v51, %v2268_v54  ;;  %v3353_v13 = vpop.f32.mrb[114].mxu0 }
 0x30a   :  { %2638 = vst.msk [vmem:[%s5719_s7 + $0x190] sm:$0xff] %vm2587_vm2, %v2277_v23  ;;  %v2280_v19 = vadd.f32 %v3353_v13, %v5058_v51  ;;  %v2271_v30 = vpop.f32.mrb[115].mxu0 }
 0x30b   :  { %2636 = vst.msk [vmem:[%s5719_s7 + $0x180] sm:$0xff] %vm2587_vm2, %v2269_v31  ;;  %v2272_v44 = vadd.f32 %v5058_v51, %v2271_v30 }
 0x30c   :  { %2639 = vst.msk [vmem:[%s5719_s7 + $0x198] sm:$0xff] %vm2587_vm2, %v2280_v19 }
 0x30d   :  { %2637 = vst.msk [vmem:[%s5719_s7 + $0x188] sm:$0xff] %vm2587_vm2, %v2272_v44 }
 0x310   :  { %v3356_v59 = vpop.f32.mrb[116].mxu0 }
 0x311   :  { %v2293_v5 = vadd.f32 %v3356_v59, %v5058_v51  ;;  %v2284_v14 = vpop.f32.mrb[117].mxu0 }
 0x312   :  { %v2285_v25 = vadd.f32 %v5058_v51, %v2284_v14  ;;  %v3357_v45 = vpop.f32.mrb[118].mxu0 }
 0x313   :  { %2642 = vst.msk [vmem:[%s5719_s7 + $0x1b0] sm:$0xff] %vm2587_vm2, %v2293_v5  ;;  %v2296_v49 = vadd.f32 %v3357_v45, %v5058_v51  ;;  %v2287_v24 = vpop.f32.mrb[119].mxu0 }
 0x314   :  { %2640 = vst.msk [vmem:[%s5719_s7 + $0x1a0] sm:$0xff] %vm2587_vm2, %v2285_v25  ;;  %v2288_v9 = vadd.f32 %v5058_v51, %v2287_v24 }
 0x315   :  { %2643 = vst.msk [vmem:[%s5719_s7 + $0x1b8] sm:$0xff] %vm2587_vm2, %v2296_v49 }
 0x316   :  { %2641 = vst.msk [vmem:[%s5719_s7 + $0x1a8] sm:$0xff] %vm2587_vm2, %v2288_v9 }
 0x318   :  { %v3360_v22 = vpop.f32.mrb[120].mxu0 }
 0x319   :  { %v2309_v35 = vadd.f32 %v3360_v22, %v5058_v51  ;;  %v2300_v38 = vpop.f32.mrb[121].mxu0 }
 0x31a   :  { %v2301_v63 = vadd.f32 %v5058_v51, %v2300_v38  ;;  %v3361_v15 = vpop.f32.mrb[122].mxu0 }
 0x31b   :  { %2646 = vst.msk [vmem:[%s5719_s7 + $0x1d0] sm:$0xff] %vm2587_vm2, %v2309_v35  ;;  %v2312_v27 = vadd.f32 %v3361_v15, %v5058_v51  ;;  %v2303_v50 = vpop.f32.mrb[123].mxu0 }
 0x31c   :  { %2644 = vst.msk [vmem:[%s5719_s7 + $0x1c0] sm:$0xff] %vm2587_vm2, %v2301_v63  ;;  %v2304_v34 = vadd.f32 %v5058_v51, %v2303_v50 }
 0x31d   :  { %2647 = vst.msk [vmem:[%s5719_s7 + $0x1d8] sm:$0xff] %vm2587_vm2, %v2312_v27 }
 0x31e   :  { %2645 = vst.msk [vmem:[%s5719_s7 + $0x1c8] sm:$0xff] %vm2587_vm2, %v2304_v34 }
 0x320   :  { %v3364_v41 = vpop.f32.mrb[124].mxu0 }
 0x321   :  { %v2325_v8 = vadd.f32 %v3364_v41, %v5058_v51  ;;  %v2316_v18 = vpop.f32.mrb[125].mxu0 }
 0x322   :  { %v2317_v48 = vadd.f32 %v5058_v51, %v2316_v18  ;;  %v3365_v57 = vpop.f32.mrb[126].mxu0 }
 0x323   :  { %2650 = vst.msk [vmem:[%s5719_s7 + $0x1f0] sm:$0xff] %vm2587_vm2, %v2325_v8  ;;  %v2328_v33 = vadd.f32 %v3365_v57, %v5058_v51  ;;  %v2319_v12 = vpop.f32.mrb[127].mxu0 }
 0x324   :  { %2648 = vst.msk [vmem:[%s5719_s7 + $0x1e0] sm:$0xff] %vm2587_vm2, %v2317_v48  ;;  %v2320_v39 = vadd.f32 %v5058_v51, %v2319_v12 }
 0x325   :  { %2651 = vst.msk [vmem:[%s5719_s7 + $0x1f8] sm:$0xff] %vm2587_vm2, %v2328_v33 }
 0x326   :  { %2649 = vst.msk [vmem:[%s5719_s7 + $0x1e8] sm:$0xff] %vm2587_vm2, %v2320_v39 }
 0x328   :  { %v3368_v2 = vpop.f32.mrb[128].mxu0 }
 0x329   :  { %v2341_v10 = vadd.f32 %v3368_v2, %v5058_v51  ;;  %v2332_v32 = vpop.f32.mrb[129].mxu0 }
 0x32a   :  { %v2333_v17 = vadd.f32 %v5058_v51, %v2332_v32  ;;  %v3369_v0 = vpop.f32.mrb[130].mxu0 }
 0x32b   :  { %2654 = vst.msk [vmem:[%s5719_s7 + $0x210] sm:$0xff] %vm2587_vm2, %v2341_v10  ;;  %v2344_v42 = vadd.f32 %v3369_v0, %v5058_v51  ;;  %v2335_v26 = vpop.f32.mrb[131].mxu0 }
 0x32c   :  { %2652 = vst.msk [vmem:[%s5719_s7 + $0x200] sm:$0xff] %vm2587_vm2, %v2333_v17  ;;  %v2336_v60 = vadd.f32 %v5058_v51, %v2335_v26 }
 0x32d   :  { %2655 = vst.msk [vmem:[%s5719_s7 + $0x218] sm:$0xff] %vm2587_vm2, %v2344_v42 }
 0x32e   :  { %2653 = vst.msk [vmem:[%s5719_s7 + $0x208] sm:$0xff] %vm2587_vm2, %v2336_v60 }
 0x330   :  { %v3372_v61 = vpop.f32.mrb[132].mxu0 }
 0x331   :  { %v2357_v46 = vadd.f32 %v3372_v61, %v5058_v51  ;;  %v2348_v55 = vpop.f32.mrb[133].mxu0 }
 0x332   :  { %v2349_v11 = vadd.f32 %v5058_v51, %v2348_v55  ;;  %v3373_v16 = vpop.f32.mrb[134].mxu0 }
 0x333   :  { %2658 = vst.msk [vmem:[%s5719_s7 + $0x230] sm:$0xff] %vm2587_vm2, %v2357_v46  ;;  %v2360_v21 = vadd.f32 %v3373_v16, %v5058_v51  ;;  %v2351_v3 = vpop.f32.mrb[135].mxu0 }
 0x334   :  { %2656 = vst.msk [vmem:[%s5719_s7 + $0x220] sm:$0xff] %vm2587_vm2, %v2349_v11  ;;  %v2352_v28 = vadd.f32 %v5058_v51, %v2351_v3 }
 0x335   :  { %2659 = vst.msk [vmem:[%s5719_s7 + $0x238] sm:$0xff] %vm2587_vm2, %v2360_v21 }
 0x336   :  { %2657 = vst.msk [vmem:[%s5719_s7 + $0x228] sm:$0xff] %vm2587_vm2, %v2352_v28 }
 0x338   :  { %v3376_v56 = vpop.f32.mrb[136].mxu0 }
 0x339   :  { %v2373_v40 = vadd.f32 %v3376_v56, %v5058_v51  ;;  %v2364_v6 = vpop.f32.mrb[137].mxu0 }
 0x33a   :  { %v2365_v36 = vadd.f32 %v5058_v51, %v2364_v6  ;;  %v3377_v47 = vpop.f32.mrb[138].mxu0 }
 0x33b   :  { %2662 = vst.msk [vmem:[%s5719_s7 + $0x250] sm:$0xff] %vm2587_vm2, %v2373_v40  ;;  %v2376_v53 = vadd.f32 %v3377_v47, %v5058_v51  ;;  %v2367_v58 = vpop.f32.mrb[139].mxu0 }
 0x33c   :  { %2660 = vst.msk [vmem:[%s5719_s7 + $0x240] sm:$0xff] %vm2587_vm2, %v2365_v36  ;;  %v2368_v1 = vadd.f32 %v5058_v51, %v2367_v58 }
 0x33d   :  { %2663 = vst.msk [vmem:[%s5719_s7 + $0x258] sm:$0xff] %vm2587_vm2, %v2376_v53 }
 0x33e   :  { %2661 = vst.msk [vmem:[%s5719_s7 + $0x248] sm:$0xff] %vm2587_vm2, %v2368_v1 }
 0x340   :  { %v3380_v20 = vpop.f32.mrb[140].mxu0 }
 0x341   :  { %v2389_v29 = vadd.f32 %v3380_v20, %v5058_v51  ;;  %v2380_v43 = vpop.f32.mrb[141].mxu0 }
 0x342   :  { %v2381_v4 = vadd.f32 %v5058_v51, %v2380_v43  ;;  %v3381_v52 = vpop.f32.mrb[142].mxu0 }
 0x343   :  { %2666 = vst.msk [vmem:[%s5719_s7 + $0x270] sm:$0xff] %vm2587_vm2, %v2389_v29  ;;  %v2392_v62 = vadd.f32 %v3381_v52, %v5058_v51  ;;  %v2383_v37 = vpop.f32.mrb[143].mxu0 }
 0x344   :  { %2664 = vst.msk [vmem:[%s5719_s7 + $0x260] sm:$0xff] %vm2587_vm2, %v2381_v4  ;;  %v2384_v7 = vadd.f32 %v5058_v51, %v2383_v37 }
 0x345   :  { %2667 = vst.msk [vmem:[%s5719_s7 + $0x278] sm:$0xff] %vm2587_vm2, %v2392_v62 }
 0x346   :  { %2665 = vst.msk [vmem:[%s5719_s7 + $0x268] sm:$0xff] %vm2587_vm2, %v2384_v7 }
 0x348   :  { %v3384_v23 = vpop.f32.mrb[144].mxu0 }
 0x349   :  { %v2405_v54 = vadd.f32 %v3384_v23, %v5058_v51  ;;  %v2396_v31 = vpop.f32.mrb[145].mxu0 }
 0x34a   :  { %v2397_v13 = vadd.f32 %v5058_v51, %v2396_v31  ;;  %v3385_v19 = vpop.f32.mrb[146].mxu0 }
 0x34b   :  { %2670 = vst.msk [vmem:[%s5719_s7 + $0x290] sm:$0xff] %vm2587_vm2, %v2405_v54  ;;  %v2408_v30 = vadd.f32 %v3385_v19, %v5058_v51  ;;  %v2399_v44 = vpop.f32.mrb[147].mxu0 }
 0x34c   :  { %2668 = vst.msk [vmem:[%s5719_s7 + $0x280] sm:$0xff] %vm2587_vm2, %v2397_v13  ;;  %v2400_v59 = vadd.f32 %v5058_v51, %v2399_v44 }
 0x34d   :  { %2671 = vst.msk [vmem:[%s5719_s7 + $0x298] sm:$0xff] %vm2587_vm2, %v2408_v30 }
 0x34e   :  { %2669 = vst.msk [vmem:[%s5719_s7 + $0x288] sm:$0xff] %vm2587_vm2, %v2400_v59 }
 0x350   :  { %v3388_v5 = vpop.f32.mrb[148].mxu0 }
 0x351   :  { %v2421_v14 = vadd.f32 %v3388_v5, %v5058_v51  ;;  %v2412_v25 = vpop.f32.mrb[149].mxu0 }
 0x352   :  { %v2413_v45 = vadd.f32 %v5058_v51, %v2412_v25  ;;  %v3389_v49 = vpop.f32.mrb[150].mxu0 }
 0x353   :  { %2674 = vst.msk [vmem:[%s5719_s7 + $0x2b0] sm:$0xff] %vm2587_vm2, %v2421_v14  ;;  %v2424_v24 = vadd.f32 %v3389_v49, %v5058_v51  ;;  %v2415_v9 = vpop.f32.mrb[151].mxu0 }
 0x354   :  { %2672 = vst.msk [vmem:[%s5719_s7 + $0x2a0] sm:$0xff] %vm2587_vm2, %v2413_v45  ;;  %v2416_v22 = vadd.f32 %v5058_v51, %v2415_v9 }
 0x355   :  { %2675 = vst.msk [vmem:[%s5719_s7 + $0x2b8] sm:$0xff] %vm2587_vm2, %v2424_v24 }
 0x356   :  { %2673 = vst.msk [vmem:[%s5719_s7 + $0x2a8] sm:$0xff] %vm2587_vm2, %v2416_v22 }
 0x358   :  { %v3392_v35 = vpop.f32.mrb[152].mxu0 }
 0x359   :  { %v2437_v38 = vadd.f32 %v3392_v35, %v5058_v51  ;;  %v2428_v63 = vpop.f32.mrb[153].mxu0 }
 0x35a   :  { %v2429_v15 = vadd.f32 %v5058_v51, %v2428_v63  ;;  %v3393_v27 = vpop.f32.mrb[154].mxu0 }
 0x35b   :  { %2678 = vst.msk [vmem:[%s5719_s7 + $0x2d0] sm:$0xff] %vm2587_vm2, %v2437_v38  ;;  %v2440_v50 = vadd.f32 %v3393_v27, %v5058_v51  ;;  %v2431_v34 = vpop.f32.mrb[155].mxu0 }
 0x35c   :  { %2676 = vst.msk [vmem:[%s5719_s7 + $0x2c0] sm:$0xff] %vm2587_vm2, %v2429_v15  ;;  %v2432_v41 = vadd.f32 %v5058_v51, %v2431_v34 }
 0x35d   :  { %2679 = vst.msk [vmem:[%s5719_s7 + $0x2d8] sm:$0xff] %vm2587_vm2, %v2440_v50 }
 0x35e   :  { %2677 = vst.msk [vmem:[%s5719_s7 + $0x2c8] sm:$0xff] %vm2587_vm2, %v2432_v41 }
 0x360   :  { %v3396_v8 = vpop.f32.mrb[156].mxu0 }
 0x361   :  { %v2453_v18 = vadd.f32 %v3396_v8, %v5058_v51  ;;  %v2444_v48 = vpop.f32.mrb[157].mxu0 }
 0x362   :  { %v2445_v57 = vadd.f32 %v5058_v51, %v2444_v48  ;;  %v3397_v33 = vpop.f32.mrb[158].mxu0 }
 0x363   :  { %2682 = vst.msk [vmem:[%s5719_s7 + $0x2f0] sm:$0xff] %vm2587_vm2, %v2453_v18  ;;  %v2456_v12 = vadd.f32 %v3397_v33, %v5058_v51  ;;  %v2447_v39 = vpop.f32.mrb[159].mxu0 }
 0x364   :  { %2680 = vst.msk [vmem:[%s5719_s7 + $0x2e0] sm:$0xff] %vm2587_vm2, %v2445_v57  ;;  %v2448_v2 = vadd.f32 %v5058_v51, %v2447_v39 }
 0x365   :  { %2683 = vst.msk [vmem:[%s5719_s7 + $0x2f8] sm:$0xff] %vm2587_vm2, %v2456_v12 }
 0x366   :  { %2681 = vst.msk [vmem:[%s5719_s7 + $0x2e8] sm:$0xff] %vm2587_vm2, %v2448_v2 }
 0x368   :  { %v3400_v10 = vpop.f32.mrb[160].mxu0 }
 0x369   :  { %v2469_v32 = vadd.f32 %v3400_v10, %v5058_v51  ;;  %v2460_v17 = vpop.f32.mrb[161].mxu0 }
 0x36a   :  { %v2461_v0 = vadd.f32 %v5058_v51, %v2460_v17  ;;  %v3401_v42 = vpop.f32.mrb[162].mxu0 }
 0x36b   :  { %2686 = vst.msk [vmem:[%s5719_s7 + $0x310] sm:$0xff] %vm2587_vm2, %v2469_v32  ;;  %v2472_v26 = vadd.f32 %v3401_v42, %v5058_v51  ;;  %v2463_v60 = vpop.f32.mrb[163].mxu0 }
 0x36c   :  { %2684 = vst.msk [vmem:[%s5719_s7 + $0x300] sm:$0xff] %vm2587_vm2, %v2461_v0  ;;  %v2464_v61 = vadd.f32 %v5058_v51, %v2463_v60 }
 0x36d   :  { %2687 = vst.msk [vmem:[%s5719_s7 + $0x318] sm:$0xff] %vm2587_vm2, %v2472_v26 }
 0x36e   :  { %2685 = vst.msk [vmem:[%s5719_s7 + $0x308] sm:$0xff] %vm2587_vm2, %v2464_v61 }
 0x370   :  { %v3404_v46 = vpop.f32.mrb[164].mxu0 }
 0x371   :  { %v2485_v55 = vadd.f32 %v3404_v46, %v5058_v51  ;;  %v2476_v11 = vpop.f32.mrb[165].mxu0 }
 0x372   :  { %v2477_v16 = vadd.f32 %v5058_v51, %v2476_v11  ;;  %v3405_v21 = vpop.f32.mrb[166].mxu0 }
 0x373   :  { %2690 = vst.msk [vmem:[%s5719_s7 + $0x330] sm:$0xff] %vm2587_vm2, %v2485_v55  ;;  %v2488_v3 = vadd.f32 %v3405_v21, %v5058_v51  ;;  %v2479_v28 = vpop.f32.mrb[167].mxu0 }
 0x374   :  { %2688 = vst.msk [vmem:[%s5719_s7 + $0x320] sm:$0xff] %vm2587_vm2, %v2477_v16  ;;  %v2480_v56 = vadd.f32 %v5058_v51, %v2479_v28 }
 0x375   :  { %2691 = vst.msk [vmem:[%s5719_s7 + $0x338] sm:$0xff] %vm2587_vm2, %v2488_v3 }
 0x376   :  { %2689 = vst.msk [vmem:[%s5719_s7 + $0x328] sm:$0xff] %vm2587_vm2, %v2480_v56 }
 0x378   :  { %v3408_v40 = vpop.f32.mrb[168].mxu0 }
 0x379   :  { %v2501_v6 = vadd.f32 %v3408_v40, %v5058_v51  ;;  %v2492_v36 = vpop.f32.mrb[169].mxu0 }
 0x37a   :  { %v2493_v47 = vadd.f32 %v5058_v51, %v2492_v36  ;;  %v3409_v53 = vpop.f32.mrb[170].mxu0 }
 0x37b   :  { %2694 = vst.msk [vmem:[%s5719_s7 + $0x350] sm:$0xff] %vm2587_vm2, %v2501_v6  ;;  %v2504_v58 = vadd.f32 %v3409_v53, %v5058_v51  ;;  %v2495_v1 = vpop.f32.mrb[171].mxu0 }
 0x37c   :  { %2692 = vst.msk [vmem:[%s5719_s7 + $0x340] sm:$0xff] %vm2587_vm2, %v2493_v47  ;;  %v2496_v20 = vadd.f32 %v5058_v51, %v2495_v1 }
 0x37d   :  { %2695 = vst.msk [vmem:[%s5719_s7 + $0x358] sm:$0xff] %vm2587_vm2, %v2504_v58 }
 0x37e   :  { %2693 = vst.msk [vmem:[%s5719_s7 + $0x348] sm:$0xff] %vm2587_vm2, %v2496_v20 }
 0x380   :  { %v3412_v29 = vpop.f32.mrb[172].mxu0 }
 0x381   :  { %v2517_v43 = vadd.f32 %v3412_v29, %v5058_v51  ;;  %v2508_v4 = vpop.f32.mrb[173].mxu0 }
 0x382   :  { %v2509_v52 = vadd.f32 %v5058_v51, %v2508_v4  ;;  %v3413_v62 = vpop.f32.mrb[174].mxu0 }
 0x383   :  { %2698 = vst.msk [vmem:[%s5719_s7 + $0x370] sm:$0xff] %vm2587_vm2, %v2517_v43  ;;  %v2520_v37 = vadd.f32 %v3413_v62, %v5058_v51  ;;  %v2511_v7 = vpop.f32.mrb[175].mxu0 }
 0x384   :  { %2696 = vst.msk [vmem:[%s5719_s7 + $0x360] sm:$0xff] %vm2587_vm2, %v2509_v52  ;;  %v2512_v23 = vadd.f32 %v5058_v51, %v2511_v7 }
 0x385   :  { %2699 = vst.msk [vmem:[%s5719_s7 + $0x378] sm:$0xff] %vm2587_vm2, %v2520_v37 }
 0x386   :  { %2697 = vst.msk [vmem:[%s5719_s7 + $0x368] sm:$0xff] %vm2587_vm2, %v2512_v23 }
 0x388   :  { %v3416_v54 = vpop.f32.mrb[176].mxu0 }
 0x389   :  { %v2533_v31 = vadd.f32 %v3416_v54, %v5058_v51  ;;  %v2524_v13 = vpop.f32.mrb[177].mxu0 }
 0x38a   :  { %v2525_v19 = vadd.f32 %v5058_v51, %v2524_v13  ;;  %v3417_v30 = vpop.f32.mrb[178].mxu0 }
 0x38b   :  { %2702 = vst.msk [vmem:[%s5719_s7 + $0x390] sm:$0xff] %vm2587_vm2, %v2533_v31  ;;  %v2536_v44 = vadd.f32 %v3417_v30, %v5058_v51  ;;  %v2527_v59 = vpop.f32.mrb[179].mxu0 }
 0x38c   :  { %2700 = vst.msk [vmem:[%s5719_s7 + $0x380] sm:$0xff] %vm2587_vm2, %v2525_v19  ;;  %v2528_v5 = vadd.f32 %v5058_v51, %v2527_v59 }
 0x38d   :  { %2703 = vst.msk [vmem:[%s5719_s7 + $0x398] sm:$0xff] %vm2587_vm2, %v2536_v44 }
 0x38e   :  { %2701 = vst.msk [vmem:[%s5719_s7 + $0x388] sm:$0xff] %vm2587_vm2, %v2528_v5 }
 0x390   :  { %v3420_v14 = vpop.f32.mrb[180].mxu0 }
 0x391   :  { %v2549_v25 = vadd.f32 %v3420_v14, %v5058_v51  ;;  %v2540_v45 = vpop.f32.mrb[181].mxu0 }
 0x392   :  { %v2541_v49 = vadd.f32 %v5058_v51, %v2540_v45  ;;  %v3421_v24 = vpop.f32.mrb[182].mxu0 }
 0x393   :  { %2706 = vst.msk [vmem:[%s5719_s7 + $0x3b0] sm:$0xff] %vm2587_vm2, %v2549_v25  ;;  %v2552_v9 = vadd.f32 %v3421_v24, %v5058_v51  ;;  %v2543_v22 = vpop.f32.mrb[183].mxu0 }
 0x394   :  { %2704 = vst.msk [vmem:[%s5719_s7 + $0x3a0] sm:$0xff] %vm2587_vm2, %v2541_v49  ;;  %v2544_v35 = vadd.f32 %v5058_v51, %v2543_v22 }
 0x395   :  { %2707 = vst.msk [vmem:[%s5719_s7 + $0x3b8] sm:$0xff] %vm2587_vm2, %v2552_v9 }
 0x396   :  { %2705 = vst.msk [vmem:[%s5719_s7 + $0x3a8] sm:$0xff] %vm2587_vm2, %v2544_v35 }
 0x398   :  { %v3424_v38 = vpop.f32.mrb[184].mxu0 }
 0x399   :  { %v2565_v63 = vadd.f32 %v3424_v38, %v5058_v51  ;;  %v2556_v15 = vpop.f32.mrb[185].mxu0 }
 0x39a   :  { %v2557_v27 = vadd.f32 %v5058_v51, %v2556_v15  ;;  %v3425_v50 = vpop.f32.mrb[186].mxu0 }
 0x39b   :  { %2710 = vst.msk [vmem:[%s5719_s7 + $0x3d0] sm:$0xff] %vm2587_vm2, %v2565_v63  ;;  %v2568_v34 = vadd.f32 %v3425_v50, %v5058_v51  ;;  %v2559_v41 = vpop.f32.mrb[187].mxu0 }
 0x39c   :  { %2708 = vst.msk [vmem:[%s5719_s7 + $0x3c0] sm:$0xff] %vm2587_vm2, %v2557_v27  ;;  %v2560_v8 = vadd.f32 %v5058_v51, %v2559_v41 }
 0x39d   :  { %2711 = vst.msk [vmem:[%s5719_s7 + $0x3d8] sm:$0xff] %vm2587_vm2, %v2568_v34 }
 0x39e   :  { %2709 = vst.msk [vmem:[%s5719_s7 + $0x3c8] sm:$0xff] %vm2587_vm2, %v2560_v8 }
 0x3a0   :  { %v3428_v18 = vpop.f32.mrb[188].mxu0 }
 0x3a1   :  { %v2581_v48 = vadd.f32 %v3428_v18, %v5058_v51  ;;  %v2572_v57 = vpop.f32.mrb[189].mxu0 }
 0x3a2   :  { %v2573_v33 = vadd.f32 %v5058_v51, %v2572_v57  ;;  %v3429_v12 = vpop.f32.mrb[190].mxu0 }
 0x3a3   :  { %2714 = vst.msk [vmem:[%s5719_s7 + $0x3f0] sm:$0xff] %vm2587_vm2, %v2581_v48  ;;  %v2584_v39 = vadd.f32 %v3429_v12, %v5058_v51  ;;  %v2575_v2 = vpop.f32.mrb[191].mxu0 }
 0x3a4   :  { %2712 = vst.msk [vmem:[%s5719_s7 + $0x3e0] sm:$0xff] %vm2587_vm2, %v2573_v33  ;;  %v2576_v10 = vadd.f32 %v5058_v51, %v2575_v2 }
 0x3a5   :  { %2715 = vst.msk [vmem:[%s5719_s7 + $0x3f8] sm:$0xff] %vm2587_vm2, %v2584_v39 }
 0x3a6   :  { %2713 = vst.msk [vmem:[%s5719_s7 + $0x3e8] sm:$0xff] %vm2587_vm2, %v2576_v10 }

</bundles_post_ra>
